<compile_context>
chip_gen: v7x
topology: tpu7x:2x2x1
jax: 0.10.0
libtpu: 0.0.40
codegen_flags: <defaults>
</compile_context>

<pallas_src>
import math
import numpy as np
import jax
import jax.numpy as jnp
from jax.experimental import pallas as pl
from jax.experimental.pallas import tpu as pltpu


# ----------------------------------------------------------------------------
# Static tiling math (pure Python/numpy, mirrors TilingModule helpers exactly)
# ----------------------------------------------------------------------------
def calc_tile_coords(d, tile_dim, overlap=0.0):
    c, tile_start, coords, overlaps = 1, 0, [0], []
    while tile_start + tile_dim < d:
        tile_start = int(tile_dim * (1 - overlap)) * c
        if tile_start + tile_dim >= d:
            coords.append(d - tile_dim)
        else:
            coords.append(tile_start)
        lin_size = int(math.ceil(tile_dim * overlap))
        lin_size = lin_size if lin_size > 1 else 0
        if tile_start + tile_dim >= d:
            i = len(coords) - 1
            zeros_size = coords[i - 1] + tile_dim - lin_size - coords[i]
            if tile_dim > d / 2 and tile_dim != d:
                lin_size = lin_size + zeros_size
                zeros_size = 0
            ovlp = [zeros_size, lin_size]
        else:
            ovlp = [0, lin_size]
        if len(overlaps) == 0:
            overlaps.append(ovlp)
        overlaps.append(ovlp)
        c += 1
    return coords, overlaps


def create_mask_part(shape, overlap):
    # shape: [1, C, H, W]; ramp lies along the last dim.
    zeros_size, lin_size = overlap[0], overlap[1]
    ones_size = shape[3] - (zeros_size + lin_size)
    parts = [
        np.zeros(zeros_size, dtype=np.float32),
        np.linspace(0.0, 1.0, lin_size, dtype=np.float32)
        if lin_size > 0 else np.zeros(0, dtype=np.float32),
        np.ones(ones_size, dtype=np.float32),
    ]
    row = np.concatenate(parts, axis=0)                # (W,)
    mask = np.tile(row, (shape[2], 1))                 # (H, W)
    mask = np.tile(mask, (shape[1], 1, 1))             # (C, H, W)
    return mask[None].astype(np.float32)               # (1, C, H, W)


def build_mask(position, grid_dim, rot_list, shape, ovlp):
    if position == 0:
        mask = np.rot90(create_mask_part(shape, ovlp), rot_list[0], axes=(2, 3))
    elif 0 < position < grid_dim - 1:
        mask = np.rot90(create_mask_part(shape, ovlp), rot_list[0], axes=(2, 3))
        mask = mask * np.rot90(create_mask_part(shape, ovlp), rot_list[1], axes=(2, 3))
    else:
        mask = np.rot90(create_mask_part(shape, ovlp), rot_list[1], axes=(2, 3))
    return np.ascontiguousarray(mask)


def create_tile_masks(tile_shape, coords, overlaps):
    # tile_shape: [num_tiles, C, tile_h, tile_w]
    masks = []
    for column, _y in enumerate(coords[0]):
        for row, _x in enumerate(coords[1]):
            tile_mask = np.ones([1] + list(tile_shape[1:]), dtype=np.float32)
            if coords[0] != [0]:
                shape_h = tile_shape[:2] + tile_shape[2:][::-1]
                tile_mask = tile_mask * build_mask(
                    position=column, grid_dim=len(coords[0]), rot_list=[1, 3],
                    shape=shape_h, ovlp=overlaps[0][column])
            if coords[1] != [0]:
                tile_mask = tile_mask * build_mask(
                    position=row, grid_dim=len(coords[1]), rot_list=[2, 0],
                    shape=tile_shape, ovlp=overlaps[1][row])
            masks.append(tile_mask.astype(np.float32))
    return np.concatenate(masks, axis=0)


# ----------------------------------------------------------------------------
# Static helpers for the kernel construction
# ----------------------------------------------------------------------------
def _round_up(v, m):
    return -(-v // m) * m


def _sublane_multiple(itemsize):
    # f32 -> 8 rows per packed sublane tile, bf16 -> 16, int8/fp8 -> 32.
    return max(8, 32 // int(itemsize))


def _vmem_capacity_bytes():
    try:
        return int(pltpu.get_tpu_info().vmem_capacity_bytes)
    except Exception:
        return 64 * 1024 * 1024   # conservative default (v7x per-core VMEM)


def _tile_regions(y_coords, x_coords, th, tw, th_p, tw_p):
    """Per output tile: static list of disjoint regions and their contributors.

    Returns, for every output tile, a list of
        (r0, r1, c0, c1, ((t_in, in_row0, in_col0), ...))
    where [r0:r1, c0:c1] is a region of the (padded) output tile and each
    contributor supplies x[t_in, :, in_row0:in_row0+rh, in_col0:in_col0+rw]
    masked by the same slice of its blending mask.  Bands whose edge coincides
    with the true tile border are extended into the zero-padded strip so the
    regions (and stores) stay as wide as possible; padded data/mask are zero
    and padded output rows/cols are stripped by the wrapper.
    """
    rects = [(y, x) for y in y_coords for x in x_coords]
    all_regions = []
    for (yo, xo) in rects:
        contribs = []
        for t_in, (yi, xi) in enumerate(rects):
            gy0, gy1 = max(yo, yi), min(yo + th, yi + th)
            gx0, gx1 = max(xo, xi), min(xo + tw, xi + tw)
            if gy0 >= gy1 or gx0 >= gx1:
                continue
            oy0, oy1 = gy0 - yo, gy1 - yo
            ox0, ox1 = gx0 - xo, gx1 - xo
            iy0, ix0 = gy0 - yi, gx0 - xi
            # Extend border-touching bands into the padded strip (in-bounds by
            # construction: iy0 <= oy0 / ix0 <= ox0 whenever oy1==th / ox1==tw).
            if oy1 == th:
                oy1 = th_p
            if ox1 == tw:
                ox1 = tw_p
            contribs.append((t_in, oy0, oy1, ox0, ox1, iy0, ix0))
        y_bounds = sorted({0, th_p} | {v for (_, a, b, _, _, _, _) in contribs
                                       for v in (a, b)})
        x_bounds = sorted({0, tw_p} | {v for (_, _, _, a, b, _, _) in contribs
                                       for v in (a, b)})
        regions = []
        for r0, r1 in zip(y_bounds[:-1], y_bounds[1:]):
            for c0, c1 in zip(x_bounds[:-1], x_bounds[1:]):
                rc = []
                for (t_in, oy0, oy1, ox0, ox1, iy0, ix0) in contribs:
                    if oy0 <= r0 and r1 <= oy1 and ox0 <= c0 and c1 <= ox1:
                        rc.append((t_in, iy0 + (r0 - oy0), ix0 + (c0 - ox0)))
                if rc:   # self always covers everything, so rc is never empty
                    regions.append((r0, r1, c0, c1, tuple(rc)))
        all_regions.append(regions)
    return all_regions


def _choose_channel_block(C, T, th_p, tw_p, itemsize, io_budget, min_steps=4):
    """Channel block size: largest divisor of C that fits the VMEM I/O budget
    while still leaving >= min_steps grid steps for pipelining / v7x megacore
    sharding.  Falls back gracefully to c_blk=1 if nothing fits."""
    mask_bytes = 2 * T * th_p * tw_p * 4            # (T,1,th_p,tw_p) f32, 2 bufs

    def est(d):
        # x block + out block, each double-buffered, plus the shared mask.
        return 4 * T * d * th_p * tw_p * itemsize + mask_bytes

    fitting = [d for d in range(1, C + 1) if C % d == 0 and est(d) <= io_budget]
    if not fitting:
        # TODO(synk): sub-tile spatially (manual DMA of cross-tile bands) when
        # even a single channel of all T tiles exceeds the VMEM budget.
        return 1, est(1)
    pipelined = [d for d in fitting if C // d >= min(min_steps, C)]
    pool = pipelined if pipelined else fitting
    d = max(pool)
    return d, est(d)


# ----------------------------------------------------------------------------
# Pallas kernel: per-output-tile region-decomposed masked overlap-add
# ----------------------------------------------------------------------------
def make_blend_fn(y_coords, x_coords, tile_hw, padded_hw, num_tiles, channels,
                  dtype):
    th, tw = tile_hw
    th_p, tw_p = padded_hw
    T, C = num_tiles, channels
    itemsize = jnp.dtype(dtype).itemsize

    vmem_cap = _vmem_capacity_bytes()
    io_budget = int(vmem_cap * 0.45)           # leave room for compiler scratch
    c_blk, est_bytes = _choose_channel_block(C, T, th_p, tw_p, itemsize,
                                             io_budget)
    n_cblk = C // c_blk
    vmem_limit = int(min(vmem_cap * 0.9,
                         max(32 * 1024 * 1024, 3 * est_bytes)))

    regions = _tile_regions(y_coords, x_coords, th, tw, th_p, tw_p)

    def kernel(x_ref, m_ref, o_ref):
        # x_ref / o_ref: (T, c_blk, th_p, tw_p) in x dtype.
        # m_ref:         (T, 1, th_p, tw_p) f32, shared across channel blocks.
        # Every output element is computed in vector registers and stored
        # exactly once — no scratch, no read-modify-write.  Low-precision
        # inputs are upcast exactly once per slice use.
        for t_out, tile_regions in enumerate(regions):
            for (r0, r1, c0, c1, contribs) in tile_regions:
                rh, rw = r1 - r0, c1 - c0
                acc = None
                for (t_in, iy0, ix0) in contribs:
                    xs = x_ref[t_in, :, iy0:iy0 + rh, ix0:ix0 + rw].astype(
                        jnp.float32)
                    ms = m_ref[t_in, :, iy0:iy0 + rh, ix0:ix0 + rw]
                    term = xs * ms                      # (c_blk, rh, rw)
                    acc = term if acc is None else acc + term
                o_ref[t_out, :, r0:r1, c0:c1] = acc.astype(o_ref.dtype)

    grid_spec = pltpu.PrefetchScalarGridSpec(
        num_scalar_prefetch=0,
        grid=(n_cblk,),
        in_specs=[
            pl.BlockSpec((T, c_blk, th_p, tw_p), lambda c: (0, c, 0, 0)),
            # mask is channel-independent -> constant index_map (single block).
            pl.BlockSpec((T, 1, th_p, tw_p), lambda c: (0, 0, 0, 0)),
        ],
        out_specs=pl.BlockSpec((T, c_blk, th_p, tw_p), lambda c: (0, c, 0, 0)),
    )
    return pl.pallas_call(
        kernel,
        out_shape=jax.ShapeDtypeStruct((T, C, th_p, tw_p), dtype),
        grid_spec=grid_spec,
        compiler_params=pltpu.CompilerParams(
            dimension_semantics=("parallel",),
            vmem_limit_bytes=vmem_limit,
        ),
    )


# ----------------------------------------------------------------------------
# Module wrapper
# ----------------------------------------------------------------------------
class TilingModuleJAX:
    """JAX/Pallas equivalent of blended_tiling.TilingModule (forward pass)."""

    def __init__(self, tile_size=(8, 8), tile_overlap=(0.25, 0.25),
                 base_size=(16, 16)):
        assert tile_size[0] <= base_size[0] and tile_size[1] <= base_size[1]
        y_coords, y_overlaps = calc_tile_coords(base_size[0], tile_size[0],
                                                tile_overlap[0])
        x_coords, x_overlaps = calc_tile_coords(base_size[1], tile_size[1],
                                                tile_overlap[1])
        self._tile_size = tuple(tile_size)
        self._base_size = tuple(base_size)
        self._coords = [y_coords, x_coords]
        self._overlap = [y_overlaps, x_overlaps]
        self._num_tiles = len(y_coords) * len(x_coords)
        # Masks are channel-independent: build once with C=1 (host numpy);
        # padded/uploaded lazily per dtype in forward().
        self._masks_np = create_tile_masks(
            [self._num_tiles, 1, tile_size[0], tile_size[1]],
            self._coords, self._overlap)
        self._fn_cache = {}

    def num_tiles(self):
        return self._num_tiles

    def tiling_pattern(self):
        return [len(self._coords[0]), len(self._coords[1])]

    def get_tile_masks(self, channels=3):
        shape = [self._num_tiles, channels] + list(self._tile_size)
        return create_tile_masks(shape, self._coords, self._overlap)

    def forward(self, x):
        T, C, th, tw = x.shape
        assert (th, tw) == self._tile_size and T == self._num_tiles
        dt = jnp.dtype(x.dtype)
        key = (C, dt.name)
        entry = self._fn_cache.get(key)
        if entry is None:
            sub = _sublane_multiple(dt.itemsize)
            th_p, tw_p = _round_up(th, sub), _round_up(tw, 128)
            masks_p = np.zeros((T, 1, th_p, tw_p), dtype=np.float32)
            masks_p[:, :, :th, :tw] = self._masks_np
            masks_dev = jnp.asarray(masks_p)
            blend = make_blend_fn(self._coords[0], self._coords[1], (th, tw),
                                  (th_p, tw_p), T, C, dt)
            pad_needed = (th_p, tw_p) != (th, tw)

            def run(x_in, masks):
                if pad_needed:
                    x_in = jnp.pad(x_in, ((0, 0), (0, 0),
                                          (0, th_p - th), (0, tw_p - tw)))
                y = blend(x_in, masks)
                if pad_needed:
                    y = y[:, :, :th, :tw]
                return y

            entry = (jax.jit(run), masks_dev)
            self._fn_cache[key] = entry
        fn, masks_dev = entry
        return fn(x, masks_dev)

    def __call__(self, x):
        return self.forward(x)


# ----------------------------------------------------------------------------
# Pure-numpy reference of forward() for verification
# ----------------------------------------------------------------------------
def reference_forward(x_np, masks_np, coords, tile_hw, base_hw):
    th, tw = tile_hw
    H, W = base_hw
    C = x_np.shape[1]
    full = np.zeros((1, C, H, W), dtype=np.float32)
    t = 0
    for y in coords[0]:
        for x0 in coords[1]:
            full[:, :, y:y + th, x0:x0 + tw] += x_np[t] * masks_np[t]
            t += 1
    tiles = [full[:, :, y:y + th, x0:x0 + tw]
             for y in coords[0] for x0 in coords[1]]
    return np.concatenate(tiles, axis=0)


if __name__ == "__main__":
    tile_size = (8, 8)
    tile_overlap = (0.25, 0.25)
    base_size = (16, 16)
    channels = 3

    mod = TilingModuleJAX(tile_size=tile_size, tile_overlap=tile_overlap,
                          base_size=base_size)
    T = mod.num_tiles()  # 3x3 = 9 tiles

    key = jax.random.PRNGKey(0)
    x = jax.random.normal(key, (T, channels, tile_size[0], tile_size[1]),
                          dtype=jnp.float32)

    out = mod(x)
    out = jax.block_until_ready(out)

    masks_np = mod.get_tile_masks(channels)
    ref = reference_forward(np.asarray(x), masks_np, mod._coords, tile_size,
                            base_size)
    assert out.shape == ref.shape, (out.shape, ref.shape)
    assert np.allclose(np.asarray(out), ref, atol=1e-5, rtol=1e-5)

    # Run a second time to exercise the cached compiled path (no retrace).
    out2 = jax.block_until_ready(mod(x))
    assert np.allclose(np.asarray(out2), ref, atol=1e-5, rtol=1e-5)

    print("KERNEL_OK")
</pallas_src>

<mosaic_0001>
module attributes {stable_mosaic.version = 11 : i64} {
  func.func @kernel(%arg0: i32, %arg1: memref<9x1x8x128xf32, #tpu.memory_space<vmem>>, %arg2: memref<9x1x8x128xf32, #tpu.memory_space<vmem>>, %arg3: memref<9x1x8x128xf32, #tpu.memory_space<vmem>>) attributes {dimension_semantics = [#tpu.dimension_semantics<parallel>], iteration_bounds = array<i64: 3>, scalar_prefetch = 0 : i64, scratch_operands = 0 : i64, tpu.core_type = #tpu.core_type<tc>, window_params = [{transform_indices = @transform_0, window_bounds = array<i64: 9, 1, 8, 128>}, {pipeline_mode = #tpu.pipeline_mode<synchronous>, transform_indices = @transform_1, window_bounds = array<i64: 9, 1, 8, 128>}, {transform_indices = @transform_2, window_bounds = array<i64: 9, 1, 8, 128>}]} {
    %c0 = arith.constant 0 : index
    %c0_0 = arith.constant 0 : index
    %c0_1 = arith.constant 0 : index
    %c0_2 = arith.constant 0 : index
    %0 = vector.load %arg1[%c0, %c0_0, %c0_1, %c0_2] : memref<9x1x8x128xf32, #tpu.memory_space<vmem>>, vector<1x1x6x6xf32>
    %1 = vector.shape_cast %0 : vector<1x1x6x6xf32> to vector<1x6x6xf32>
    %c0_3 = arith.constant 0 : index
    %c0_4 = arith.constant 0 : index
    %c0_5 = arith.constant 0 : index
    %c0_6 = arith.constant 0 : index
    %2 = vector.load %arg2[%c0_3, %c0_4, %c0_5, %c0_6] : memref<9x1x8x128xf32, #tpu.memory_space<vmem>>, vector<1x1x6x6xf32>
    %3 = vector.shape_cast %2 : vector<1x1x6x6xf32> to vector<1x6x6xf32>
    %4 = arith.mulf %1, %3 : vector<1x6x6xf32>
    %c0_7 = arith.constant 0 : index
    %c0_8 = arith.constant 0 : index
    %c0_9 = arith.constant 0 : index
    %c0_10 = arith.constant 0 : index
    %5 = vector.load %arg3[%c0_7, %c0_8, %c0_9, %c0_10] : memref<9x1x8x128xf32, #tpu.memory_space<vmem>>, vector<1x1x6x6xf32>
    %6 = vector.shape_cast %5 : vector<1x1x6x6xf32> to vector<1x6x6xf32>
    %7 = vector.shape_cast %4 : vector<1x6x6xf32> to vector<1x1x6x6xf32>
    tpu.vector_store %arg3[%c0_7, %c0_8, %c0_9, %c0_10], %7 {strides = array<i32>} : memref<9x1x8x128xf32, #tpu.memory_space<vmem>>, vector<1x1x6x6xf32>,
    %c0_11 = arith.constant 0 : index
    %c0_12 = arith.constant 0 : index
    %c0_13 = arith.constant 0 : index
    %c6 = arith.constant 6 : index
    %8 = vector.load %arg1[%c0_11, %c0_12, %c0_13, %c6] : memref<9x1x8x128xf32, #tpu.memory_space<vmem>>, vector<1x1x6x122xf32>
    %9 = vector.shape_cast %8 : vector<1x1x6x122xf32> to vector<1x6x122xf32>
    %c0_14 = arith.constant 0 : index
    %c0_15 = arith.constant 0 : index
    %c0_16 = arith.constant 0 : index
    %c6_17 = arith.constant 6 : index
    %10 = vector.load %arg2[%c0_14, %c0_15, %c0_16, %c6_17] : memref<9x1x8x128xf32, #tpu.memory_space<vmem>>, vector<1x1x6x122xf32>
    %11 = vector.shape_cast %10 : vector<1x1x6x122xf32> to vector<1x6x122xf32>
    %12 = arith.mulf %9, %11 : vector<1x6x122xf32>
    %c1 = arith.constant 1 : index
    %c0_18 = arith.constant 0 : index
    %c0_19 = arith.constant 0 : index
    %c0_20 = arith.constant 0 : index
    %13 = vector.load %arg1[%c1, %c0_18, %c0_19, %c0_20] : memref<9x1x8x128xf32, #tpu.memory_space<vmem>>, vector<1x1x6x122xf32>
    %14 = vector.shape_cast %13 : vector<1x1x6x122xf32> to vector<1x6x122xf32>
    %c1_21 = arith.constant 1 : index
    %c0_22 = arith.constant 0 : index
    %c0_23 = arith.constant 0 : index
    %c0_24 = arith.constant 0 : index
    %15 = vector.load %arg2[%c1_21, %c0_22, %c0_23, %c0_24] : memref<9x1x8x128xf32, #tpu.memory_space<vmem>>, vector<1x1x6x122xf32>
    %16 = vector.shape_cast %15 : vector<1x1x6x122xf32> to vector<1x6x122xf32>
    %17 = arith.mulf %14, %16 : vector<1x6x122xf32>
    %18 = arith.addf %12, %17 : vector<1x6x122xf32>
    %c0_25 = arith.constant 0 : index
    %c0_26 = arith.constant 0 : index
    %c0_27 = arith.constant 0 : index
    %c6_28 = arith.constant 6 : index
    %19 = vector.load %arg3[%c0_25, %c0_26, %c0_27, %c6_28] : memref<9x1x8x128xf32, #tpu.memory_space<vmem>>, vector<1x1x6x122xf32>
    %20 = vector.shape_cast %19 : vector<1x1x6x122xf32> to vector<1x6x122xf32>
    %21 = vector.shape_cast %18 : vector<1x6x122xf32> to vector<1x1x6x122xf32>
    tpu.vector_store %arg3[%c0_25, %c0_26, %c0_27, %c6_28], %21 {strides = array<i32>} : memref<9x1x8x128xf32, #tpu.memory_space<vmem>>, vector<1x1x6x122xf32>,
    %c0_29 = arith.constant 0 : index
    %c0_30 = arith.constant 0 : index
    %c6_31 = arith.constant 6 : index
    %c0_32 = arith.constant 0 : index
    %22 = vector.load %arg1[%c0_29, %c0_30, %c6_31, %c0_32] : memref<9x1x8x128xf32, #tpu.memory_space<vmem>>, vector<1x1x2x6xf32>
    %23 = vector.shape_cast %22 : vector<1x1x2x6xf32> to vector<1x2x6xf32>
    %c0_33 = arith.constant 0 : index
    %c0_34 = arith.constant 0 : index
    %c6_35 = arith.constant 6 : index
    %c0_36 = arith.constant 0 : index
    %24 = vector.load %arg2[%c0_33, %c0_34, %c6_35, %c0_36] : memref<9x1x8x128xf32, #tpu.memory_space<vmem>>, vector<1x1x2x6xf32>
    %25 = vector.shape_cast %24 : vector<1x1x2x6xf32> to vector<1x2x6xf32>
    %26 = arith.mulf %23, %25 : vector<1x2x6xf32>
    %c3 = arith.constant 3 : index
    %c0_37 = arith.constant 0 : index
    %c0_38 = arith.constant 0 : index
    %c0_39 = arith.constant 0 : index
    %27 = vector.load %arg1[%c3, %c0_37, %c0_38, %c0_39] : memref<9x1x8x128xf32, #tpu.memory_space<vmem>>, vector<1x1x2x6xf32>
    %28 = vector.shape_cast %27 : vector<1x1x2x6xf32> to vector<1x2x6xf32>
    %c3_40 = arith.constant 3 : index
    %c0_41 = arith.constant 0 : index
    %c0_42 = arith.constant 0 : index
    %c0_43 = arith.constant 0 : index
    %29 = vector.load %arg2[%c3_40, %c0_41, %c0_42, %c0_43] : memref<9x1x8x128xf32, #tpu.memory_space<vmem>>, vector<1x1x2x6xf32>
    %30 = vector.shape_cast %29 : vector<1x1x2x6xf32> to vector<1x2x6xf32>
    %31 = arith.mulf %28, %30 : vector<1x2x6xf32>
    %32 = arith.addf %26, %31 : vector<1x2x6xf32>
    %c0_44 = arith.constant 0 : index
    %c0_45 = arith.constant 0 : index
    %c6_46 = arith.constant 6 : index
    %c0_47 = arith.constant 0 : index
    %33 = vector.load %arg3[%c0_44, %c0_45, %c6_46, %c0_47] : memref<9x1x8x128xf32, #tpu.memory_space<vmem>>, vector<1x1x2x6xf32>
    %34 = vector.shape_cast %33 : vector<1x1x2x6xf32> to vector<1x2x6xf32>
    %35 = vector.shape_cast %32 : vector<1x2x6xf32> to vector<1x1x2x6xf32>
    tpu.vector_store %arg3[%c0_44, %c0_45, %c6_46, %c0_47], %35 {strides = array<i32>} : memref<9x1x8x128xf32, #tpu.memory_space<vmem>>, vector<1x1x2x6xf32>,
    %c0_48 = arith.constant 0 : index
    %c0_49 = arith.constant 0 : index
    %c6_50 = arith.constant 6 : index
    %c6_51 = arith.constant 6 : index
    %36 = vector.load %arg1[%c0_48, %c0_49, %c6_50, %c6_51] : memref<9x1x8x128xf32, #tpu.memory_space<vmem>>, vector<1x1x2x122xf32>
    %37 = vector.shape_cast %36 : vector<1x1x2x122xf32> to vector<1x2x122xf32>
    %c0_52 = arith.constant 0 : index
    %c0_53 = arith.constant 0 : index
    %c6_54 = arith.constant 6 : index
    %c6_55 = arith.constant 6 : index
    %38 = vector.load %arg2[%c0_52, %c0_53, %c6_54, %c6_55] : memref<9x1x8x128xf32, #tpu.memory_space<vmem>>, vector<1x1x2x122xf32>
    %39 = vector.shape_cast %38 : vector<1x1x2x122xf32> to vector<1x2x122xf32>
    %40 = arith.mulf %37, %39 : vector<1x2x122xf32>
    %c1_56 = arith.constant 1 : index
    %c0_57 = arith.constant 0 : index
    %c6_58 = arith.constant 6 : index
    %c0_59 = arith.constant 0 : index
    %41 = vector.load %arg1[%c1_56, %c0_57, %c6_58, %c0_59] : memref<9x1x8x128xf32, #tpu.memory_space<vmem>>, vector<1x1x2x122xf32>
    %42 = vector.shape_cast %41 : vector<1x1x2x122xf32> to vector<1x2x122xf32>
    %c1_60 = arith.constant 1 : index
    %c0_61 = arith.constant 0 : index
    %c6_62 = arith.constant 6 : index
    %c0_63 = arith.constant 0 : index
    %43 = vector.load %arg2[%c1_60, %c0_61, %c6_62, %c0_63] : memref<9x1x8x128xf32, #tpu.memory_space<vmem>>, vector<1x1x2x122xf32>
    %44 = vector.shape_cast %43 : vector<1x1x2x122xf32> to vector<1x2x122xf32>
    %45 = arith.mulf %42, %44 : vector<1x2x122xf32>
    %46 = arith.addf %40, %45 : vector<1x2x122xf32>
    %c3_64 = arith.constant 3 : index
    %c0_65 = arith.constant 0 : index
    %c0_66 = arith.constant 0 : index
    %c6_67 = arith.constant 6 : index
    %47 = vector.load %arg1[%c3_64, %c0_65, %c0_66, %c6_67] : memref<9x1x8x128xf32, #tpu.memory_space<vmem>>, vector<1x1x2x122xf32>
    %48 = vector.shape_cast %47 : vector<1x1x2x122xf32> to vector<1x2x122xf32>
    %c3_68 = arith.constant 3 : index
    %c0_69 = arith.constant 0 : index
    %c0_70 = arith.constant 0 : index
    %c6_71 = arith.constant 6 : index
    %49 = vector.load %arg2[%c3_68, %c0_69, %c0_70, %c6_71] : memref<9x1x8x128xf32, #tpu.memory_space<vmem>>, vector<1x1x2x122xf32>
    %50 = vector.shape_cast %49 : vector<1x1x2x122xf32> to vector<1x2x122xf32>
    %51 = arith.mulf %48, %50 : vector<1x2x122xf32>
    %52 = arith.addf %46, %51 : vector<1x2x122xf32>
    %c4 = arith.constant 4 : index
    %c0_72 = arith.constant 0 : index
    %c0_73 = arith.constant 0 : index
    %c0_74 = arith.constant 0 : index
    %53 = vector.load %arg1[%c4, %c0_72, %c0_73, %c0_74] : memref<9x1x8x128xf32, #tpu.memory_space<vmem>>, vector<1x1x2x122xf32>
    %54 = vector.shape_cast %53 : vector<1x1x2x122xf32> to vector<1x2x122xf32>
    %c4_75 = arith.constant 4 : index
    %c0_76 = arith.constant 0 : index
    %c0_77 = arith.constant 0 : index
    %c0_78 = arith.constant 0 : index
    %55 = vector.load %arg2[%c4_75, %c0_76, %c0_77, %c0_78] : memref<9x1x8x128xf32, #tpu.memory_space<vmem>>, vector<1x1x2x122xf32>
    %56 = vector.shape_cast %55 : vector<1x1x2x122xf32> to vector<1x2x122xf32>
    %57 = arith.mulf %54, %56 : vector<1x2x122xf32>
    %58 = arith.addf %52, %57 : vector<1x2x122xf32>
    %c0_79 = arith.constant 0 : index
    %c0_80 = arith.constant 0 : index
    %c6_81 = arith.constant 6 : index
    %c6_82 = arith.constant 6 : index
    %59 = vector.load %arg3[%c0_79, %c0_80, %c6_81, %c6_82] : memref<9x1x8x128xf32, #tpu.memory_space<vmem>>, vector<1x1x2x122xf32>
    %60 = vector.shape_cast %59 : vector<1x1x2x122xf32> to vector<1x2x122xf32>
    %61 = vector.shape_cast %58 : vector<1x2x122xf32> to vector<1x1x2x122xf32>
    tpu.vector_store %arg3[%c0_79, %c0_80, %c6_81, %c6_82], %61 {strides = array<i32>} : memref<9x1x8x128xf32, #tpu.memory_space<vmem>>, vector<1x1x2x122xf32>,
    %c0_83 = arith.constant 0 : index
    %c0_84 = arith.constant 0 : index
    %c0_85 = arith.constant 0 : index
    %c6_86 = arith.constant 6 : index
    %62 = vector.load %arg1[%c0_83, %c0_84, %c0_85, %c6_86] : memref<9x1x8x128xf32, #tpu.memory_space<vmem>>, vector<1x1x6x2xf32>
    %63 = vector.shape_cast %62 : vector<1x1x6x2xf32> to vector<1x6x2xf32>
    %c0_87 = arith.constant 0 : index
    %c0_88 = arith.constant 0 : index
    %c0_89 = arith.constant 0 : index
    %c6_90 = arith.constant 6 : index
    %64 = vector.load %arg2[%c0_87, %c0_88, %c0_89, %c6_90] : memref<9x1x8x128xf32, #tpu.memory_space<vmem>>, vector<1x1x6x2xf32>
    %65 = vector.shape_cast %64 : vector<1x1x6x2xf32> to vector<1x6x2xf32>
    %66 = arith.mulf %63, %65 : vector<1x6x2xf32>
    %c1_91 = arith.constant 1 : index
    %c0_92 = arith.constant 0 : index
    %c0_93 = arith.constant 0 : index
    %c0_94 = arith.constant 0 : index
    %67 = vector.load %arg1[%c1_91, %c0_92, %c0_93, %c0_94] : memref<9x1x8x128xf32, #tpu.memory_space<vmem>>, vector<1x1x6x2xf32>
    %68 = vector.shape_cast %67 : vector<1x1x6x2xf32> to vector<1x6x2xf32>
    %c1_95 = arith.constant 1 : index
    %c0_96 = arith.constant 0 : index
    %c0_97 = arith.constant 0 : index
    %c0_98 = arith.constant 0 : index
    %69 = vector.load %arg2[%c1_95, %c0_96, %c0_97, %c0_98] : memref<9x1x8x128xf32, #tpu.memory_space<vmem>>, vector<1x1x6x2xf32>
    %70 = vector.shape_cast %69 : vector<1x1x6x2xf32> to vector<1x6x2xf32>
    %71 = arith.mulf %68, %70 : vector<1x6x2xf32>
    %72 = arith.addf %66, %71 : vector<1x6x2xf32>
    %c1_99 = arith.constant 1 : index
    %c0_100 = arith.constant 0 : index
    %c0_101 = arith.constant 0 : index
    %c0_102 = arith.constant 0 : index
    %73 = vector.load %arg3[%c1_99, %c0_100, %c0_101, %c0_102] : memref<9x1x8x128xf32, #tpu.memory_space<vmem>>, vector<1x1x6x2xf32>
    %74 = vector.shape_cast %73 : vector<1x1x6x2xf32> to vector<1x6x2xf32>
    %75 = vector.shape_cast %72 : vector<1x6x2xf32> to vector<1x1x6x2xf32>
    tpu.vector_store %arg3[%c1_99, %c0_100, %c0_101, %c0_102], %75 {strides = array<i32>} : memref<9x1x8x128xf32, #tpu.memory_space<vmem>>, vector<1x1x6x2xf32>,
    %c1_103 = arith.constant 1 : index
    %c0_104 = arith.constant 0 : index
    %c0_105 = arith.constant 0 : index
    %c2 = arith.constant 2 : index
    %76 = vector.load %arg1[%c1_103, %c0_104, %c0_105, %c2] : memref<9x1x8x128xf32, #tpu.memory_space<vmem>>, vector<1x1x6x126xf32>
    %77 = vector.shape_cast %76 : vector<1x1x6x126xf32> to vector<1x6x126xf32>
    %c1_106 = arith.constant 1 : index
    %c0_107 = arith.constant 0 : index
    %c0_108 = arith.constant 0 : index
    %c2_109 = arith.constant 2 : index
    %78 = vector.load %arg2[%c1_106, %c0_107, %c0_108, %c2_109] : memref<9x1x8x128xf32, #tpu.memory_space<vmem>>, vector<1x1x6x126xf32>
    %79 = vector.shape_cast %78 : vector<1x1x6x126xf32> to vector<1x6x126xf32>
    %80 = arith.mulf %77, %79 : vector<1x6x126xf32>
    %c2_110 = arith.constant 2 : index
    %c0_111 = arith.constant 0 : index
    %c0_112 = arith.constant 0 : index
    %c0_113 = arith.constant 0 : index
    %81 = vector.load %arg1[%c2_110, %c0_111, %c0_112, %c0_113] : memref<9x1x8x128xf32, #tpu.memory_space<vmem>>, vector<1x1x6x126xf32>
    %82 = vector.shape_cast %81 : vector<1x1x6x126xf32> to vector<1x6x126xf32>
    %c2_114 = arith.constant 2 : index
    %c0_115 = arith.constant 0 : index
    %c0_116 = arith.constant 0 : index
    %c0_117 = arith.constant 0 : index
    %83 = vector.load %arg2[%c2_114, %c0_115, %c0_116, %c0_117] : memref<9x1x8x128xf32, #tpu.memory_space<vmem>>, vector<1x1x6x126xf32>
    %84 = vector.shape_cast %83 : vector<1x1x6x126xf32> to vector<1x6x126xf32>
    %85 = arith.mulf %82, %84 : vector<1x6x126xf32>
    %86 = arith.addf %80, %85 : vector<1x6x126xf32>
    %c1_118 = arith.constant 1 : index
    %c0_119 = arith.constant 0 : index
    %c0_120 = arith.constant 0 : index
    %c2_121 = arith.constant 2 : index
    %87 = vector.load %arg3[%c1_118, %c0_119, %c0_120, %c2_121] : memref<9x1x8x128xf32, #tpu.memory_space<vmem>>, vector<1x1x6x126xf32>
    %88 = vector.shape_cast %87 : vector<1x1x6x126xf32> to vector<1x6x126xf32>
    %89 = vector.shape_cast %86 : vector<1x6x126xf32> to vector<1x1x6x126xf32>
    tpu.vector_store %arg3[%c1_118, %c0_119, %c0_120, %c2_121], %89 {strides = array<i32>} : memref<9x1x8x128xf32, #tpu.memory_space<vmem>>, vector<1x1x6x126xf32>,
    %c0_122 = arith.constant 0 : index
    %c0_123 = arith.constant 0 : index
    %c6_124 = arith.constant 6 : index
    %c6_125 = arith.constant 6 : index
    %90 = vector.load %arg1[%c0_122, %c0_123, %c6_124, %c6_125] : memref<9x1x8x128xf32, #tpu.memory_space<vmem>>, vector<1x1x2x2xf32>
    %91 = vector.shape_cast %90 : vector<1x1x2x2xf32> to vector<1x2x2xf32>
    %c0_126 = arith.constant 0 : index
    %c0_127 = arith.constant 0 : index
    %c6_128 = arith.constant 6 : index
    %c6_129 = arith.constant 6 : index
    %92 = vector.load %arg2[%c0_126, %c0_127, %c6_128, %c6_129] : memref<9x1x8x128xf32, #tpu.memory_space<vmem>>, vector<1x1x2x2xf32>
    %93 = vector.shape_cast %92 : vector<1x1x2x2xf32> to vector<1x2x2xf32>
    %94 = arith.mulf %91, %93 : vector<1x2x2xf32>
    %c1_130 = arith.constant 1 : index
    %c0_131 = arith.constant 0 : index
    %c6_132 = arith.constant 6 : index
    %c0_133 = arith.constant 0 : index
    %95 = vector.load %arg1[%c1_130, %c0_131, %c6_132, %c0_133] : memref<9x1x8x128xf32, #tpu.memory_space<vmem>>, vector<1x1x2x2xf32>
    %96 = vector.shape_cast %95 : vector<1x1x2x2xf32> to vector<1x2x2xf32>
    %c1_134 = arith.constant 1 : index
    %c0_135 = arith.constant 0 : index
    %c6_136 = arith.constant 6 : index
    %c0_137 = arith.constant 0 : index
    %97 = vector.load %arg2[%c1_134, %c0_135, %c6_136, %c0_137] : memref<9x1x8x128xf32, #tpu.memory_space<vmem>>, vector<1x1x2x2xf32>
    %98 = vector.shape_cast %97 : vector<1x1x2x2xf32> to vector<1x2x2xf32>
    %99 = arith.mulf %96, %98 : vector<1x2x2xf32>
    %100 = arith.addf %94, %99 : vector<1x2x2xf32>
    %c3_138 = arith.constant 3 : index
    %c0_139 = arith.constant 0 : index
    %c0_140 = arith.constant 0 : index
    %c6_141 = arith.constant 6 : index
    %101 = vector.load %arg1[%c3_138, %c0_139, %c0_140, %c6_141] : memref<9x1x8x128xf32, #tpu.memory_space<vmem>>, vector<1x1x2x2xf32>
    %102 = vector.shape_cast %101 : vector<1x1x2x2xf32> to vector<1x2x2xf32>
    %c3_142 = arith.constant 3 : index
    %c0_143 = arith.constant 0 : index
    %c0_144 = arith.constant 0 : index
    %c6_145 = arith.constant 6 : index
    %103 = vector.load %arg2[%c3_142, %c0_143, %c0_144, %c6_145] : memref<9x1x8x128xf32, #tpu.memory_space<vmem>>, vector<1x1x2x2xf32>
    %104 = vector.shape_cast %103 : vector<1x1x2x2xf32> to vector<1x2x2xf32>
    %105 = arith.mulf %102, %104 : vector<1x2x2xf32>
    %106 = arith.addf %100, %105 : vector<1x2x2xf32>
    %c4_146 = arith.constant 4 : index
    %c0_147 = arith.constant 0 : index
    %c0_148 = arith.constant 0 : index
    %c0_149 = arith.constant 0 : index
    %107 = vector.load %arg1[%c4_146, %c0_147, %c0_148, %c0_149] : memref<9x1x8x128xf32, #tpu.memory_space<vmem>>, vector<1x1x2x2xf32>
    %108 = vector.shape_cast %107 : vector<1x1x2x2xf32> to vector<1x2x2xf32>
    %c4_150 = arith.constant 4 : index
    %c0_151 = arith.constant 0 : index
    %c0_152 = arith.constant 0 : index
    %c0_153 = arith.constant 0 : index
    %109 = vector.load %arg2[%c4_150, %c0_151, %c0_152, %c0_153] : memref<9x1x8x128xf32, #tpu.memory_space<vmem>>, vector<1x1x2x2xf32>
    %110 = vector.shape_cast %109 : vector<1x1x2x2xf32> to vector<1x2x2xf32>
    %111 = arith.mulf %108, %110 : vector<1x2x2xf32>
    %112 = arith.addf %106, %111 : vector<1x2x2xf32>
    %c1_154 = arith.constant 1 : index
    %c0_155 = arith.constant 0 : index
    %c6_156 = arith.constant 6 : index
    %c0_157 = arith.constant 0 : index
    %113 = vector.load %arg3[%c1_154, %c0_155, %c6_156, %c0_157] : memref<9x1x8x128xf32, #tpu.memory_space<vmem>>, vector<1x1x2x2xf32>
    %114 = vector.shape_cast %113 : vector<1x1x2x2xf32> to vector<1x2x2xf32>
    %115 = vector.shape_cast %112 : vector<1x2x2xf32> to vector<1x1x2x2xf32>
    tpu.vector_store %arg3[%c1_154, %c0_155, %c6_156, %c0_157], %115 {strides = array<i32>} : memref<9x1x8x128xf32, #tpu.memory_space<vmem>>, vector<1x1x2x2xf32>,
    %c1_158 = arith.constant 1 : index
    %c0_159 = arith.constant 0 : index
    %c6_160 = arith.constant 6 : index
    %c2_161 = arith.constant 2 : index
    %116 = vector.load %arg1[%c1_158, %c0_159, %c6_160, %c2_161] : memref<9x1x8x128xf32, #tpu.memory_space<vmem>>, vector<1x1x2x126xf32>
    %117 = vector.shape_cast %116 : vector<1x1x2x126xf32> to vector<1x2x126xf32>
    %c1_162 = arith.constant 1 : index
    %c0_163 = arith.constant 0 : index
    %c6_164 = arith.constant 6 : index
    %c2_165 = arith.constant 2 : index
    %118 = vector.load %arg2[%c1_162, %c0_163, %c6_164, %c2_165] : memref<9x1x8x128xf32, #tpu.memory_space<vmem>>, vector<1x1x2x126xf32>
    %119 = vector.shape_cast %118 : vector<1x1x2x126xf32> to vector<1x2x126xf32>
    %120 = arith.mulf %117, %119 : vector<1x2x126xf32>
    %c2_166 = arith.constant 2 : index
    %c0_167 = arith.constant 0 : index
    %c6_168 = arith.constant 6 : index
    %c0_169 = arith.constant 0 : index
    %121 = vector.load %arg1[%c2_166, %c0_167, %c6_168, %c0_169] : memref<9x1x8x128xf32, #tpu.memory_space<vmem>>, vector<1x1x2x126xf32>
    %122 = vector.shape_cast %121 : vector<1x1x2x126xf32> to vector<1x2x126xf32>
    %c2_170 = arith.constant 2 : index
    %c0_171 = arith.constant 0 : index
    %c6_172 = arith.constant 6 : index
    %c0_173 = arith.constant 0 : index
    %123 = vector.load %arg2[%c2_170, %c0_171, %c6_172, %c0_173] : memref<9x1x8x128xf32, #tpu.memory_space<vmem>>, vector<1x1x2x126xf32>
    %124 = vector.shape_cast %123 : vector<1x1x2x126xf32> to vector<1x2x126xf32>
    %125 = arith.mulf %122, %124 : vector<1x2x126xf32>
    %126 = arith.addf %120, %125 : vector<1x2x126xf32>
    %c4_174 = arith.constant 4 : index
    %c0_175 = arith.constant 0 : index
    %c0_176 = arith.constant 0 : index
    %c2_177 = arith.constant 2 : index
    %127 = vector.load %arg1[%c4_174, %c0_175, %c0_176, %c2_177] : memref<9x1x8x128xf32, #tpu.memory_space<vmem>>, vector<1x1x2x126xf32>
    %128 = vector.shape_cast %127 : vector<1x1x2x126xf32> to vector<1x2x126xf32>
    %c4_178 = arith.constant 4 : index
    %c0_179 = arith.constant 0 : index
    %c0_180 = arith.constant 0 : index
    %c2_181 = arith.constant 2 : index
    %129 = vector.load %arg2[%c4_178, %c0_179, %c0_180, %c2_181] : memref<9x1x8x128xf32, #tpu.memory_space<vmem>>, vector<1x1x2x126xf32>
    %130 = vector.shape_cast %129 : vector<1x1x2x126xf32> to vector<1x2x126xf32>
    %131 = arith.mulf %128, %130 : vector<1x2x126xf32>
    %132 = arith.addf %126, %131 : vector<1x2x126xf32>
    %c5 = arith.constant 5 : index
    %c0_182 = arith.constant 0 : index
    %c0_183 = arith.constant 0 : index
    %c0_184 = arith.constant 0 : index
    %133 = vector.load %arg1[%c5, %c0_182, %c0_183, %c0_184] : memref<9x1x8x128xf32, #tpu.memory_space<vmem>>, vector<1x1x2x126xf32>
    %134 = vector.shape_cast %133 : vector<1x1x2x126xf32> to vector<1x2x126xf32>
    %c5_185 = arith.constant 5 : index
    %c0_186 = arith.constant 0 : index
    %c0_187 = arith.constant 0 : index
    %c0_188 = arith.constant 0 : index
    %135 = vector.load %arg2[%c5_185, %c0_186, %c0_187, %c0_188] : memref<9x1x8x128xf32, #tpu.memory_space<vmem>>, vector<1x1x2x126xf32>
    %136 = vector.shape_cast %135 : vector<1x1x2x126xf32> to vector<1x2x126xf32>
    %137 = arith.mulf %134, %136 : vector<1x2x126xf32>
    %138 = arith.addf %132, %137 : vector<1x2x126xf32>
    %c1_189 = arith.constant 1 : index
    %c0_190 = arith.constant 0 : index
    %c6_191 = arith.constant 6 : index
    %c2_192 = arith.constant 2 : index
    %139 = vector.load %arg3[%c1_189, %c0_190, %c6_191, %c2_192] : memref<9x1x8x128xf32, #tpu.memory_space<vmem>>, vector<1x1x2x126xf32>
    %140 = vector.shape_cast %139 : vector<1x1x2x126xf32> to vector<1x2x126xf32>
    %141 = vector.shape_cast %138 : vector<1x2x126xf32> to vector<1x1x2x126xf32>
    tpu.vector_store %arg3[%c1_189, %c0_190, %c6_191, %c2_192], %141 {strides = array<i32>} : memref<9x1x8x128xf32, #tpu.memory_space<vmem>>, vector<1x1x2x126xf32>,
    %c1_193 = arith.constant 1 : index
    %c0_194 = arith.constant 0 : index
    %c0_195 = arith.constant 0 : index
    %c2_196 = arith.constant 2 : index
    %142 = vector.load %arg1[%c1_193, %c0_194, %c0_195, %c2_196] : memref<9x1x8x128xf32, #tpu.memory_space<vmem>>, vector<1x1x6x6xf32>
    %143 = vector.shape_cast %142 : vector<1x1x6x6xf32> to vector<1x6x6xf32>
    %c1_197 = arith.constant 1 : index
    %c0_198 = arith.constant 0 : index
    %c0_199 = arith.constant 0 : index
    %c2_200 = arith.constant 2 : index
    %144 = vector.load %arg2[%c1_197, %c0_198, %c0_199, %c2_200] : memref<9x1x8x128xf32, #tpu.memory_space<vmem>>, vector<1x1x6x6xf32>
    %145 = vector.shape_cast %144 : vector<1x1x6x6xf32> to vector<1x6x6xf32>
    %146 = arith.mulf %143, %145 : vector<1x6x6xf32>
    %c2_201 = arith.constant 2 : index
    %c0_202 = arith.constant 0 : index
    %c0_203 = arith.constant 0 : index
    %c0_204 = arith.constant 0 : index
    %147 = vector.load %arg1[%c2_201, %c0_202, %c0_203, %c0_204] : memref<9x1x8x128xf32, #tpu.memory_space<vmem>>, vector<1x1x6x6xf32>
    %148 = vector.shape_cast %147 : vector<1x1x6x6xf32> to vector<1x6x6xf32>
    %c2_205 = arith.constant 2 : index
    %c0_206 = arith.constant 0 : index
    %c0_207 = arith.constant 0 : index
    %c0_208 = arith.constant 0 : index
    %149 = vector.load %arg2[%c2_205, %c0_206, %c0_207, %c0_208] : memref<9x1x8x128xf32, #tpu.memory_space<vmem>>, vector<1x1x6x6xf32>
    %150 = vector.shape_cast %149 : vector<1x1x6x6xf32> to vector<1x6x6xf32>
    %151 = arith.mulf %148, %150 : vector<1x6x6xf32>
    %152 = arith.addf %146, %151 : vector<1x6x6xf32>
    %c2_209 = arith.constant 2 : index
    %c0_210 = arith.constant 0 : index
    %c0_211 = arith.constant 0 : index
    %c0_212 = arith.constant 0 : index
    %153 = vector.load %arg3[%c2_209, %c0_210, %c0_211, %c0_212] : memref<9x1x8x128xf32, #tpu.memory_space<vmem>>, vector<1x1x6x6xf32>
    %154 = vector.shape_cast %153 : vector<1x1x6x6xf32> to vector<1x6x6xf32>
    %155 = vector.shape_cast %152 : vector<1x6x6xf32> to vector<1x1x6x6xf32>
    tpu.vector_store %arg3[%c2_209, %c0_210, %c0_211, %c0_212], %155 {strides = array<i32>} : memref<9x1x8x128xf32, #tpu.memory_space<vmem>>, vector<1x1x6x6xf32>,
    %c2_213 = arith.constant 2 : index
    %c0_214 = arith.constant 0 : index
    %c0_215 = arith.constant 0 : index
    %c6_216 = arith.constant 6 : index
    %156 = vector.load %arg1[%c2_213, %c0_214, %c0_215, %c6_216] : memref<9x1x8x128xf32, #tpu.memory_space<vmem>>, vector<1x1x6x122xf32>
    %157 = vector.shape_cast %156 : vector<1x1x6x122xf32> to vector<1x6x122xf32>
    %c2_217 = arith.constant 2 : index
    %c0_218 = arith.constant 0 : index
    %c0_219 = arith.constant 0 : index
    %c6_220 = arith.constant 6 : index
    %158 = vector.load %arg2[%c2_217, %c0_218, %c0_219, %c6_220] : memref<9x1x8x128xf32, #tpu.memory_space<vmem>>, vector<1x1x6x122xf32>
    %159 = vector.shape_cast %158 : vector<1x1x6x122xf32> to vector<1x6x122xf32>
    %160 = arith.mulf %157, %159 : vector<1x6x122xf32>
    %c2_221 = arith.constant 2 : index
    %c0_222 = arith.constant 0 : index
    %c0_223 = arith.constant 0 : index
    %c6_224 = arith.constant 6 : index
    %161 = vector.load %arg3[%c2_221, %c0_222, %c0_223, %c6_224] : memref<9x1x8x128xf32, #tpu.memory_space<vmem>>, vector<1x1x6x122xf32>
    %162 = vector.shape_cast %161 : vector<1x1x6x122xf32> to vector<1x6x122xf32>
    %163 = vector.shape_cast %160 : vector<1x6x122xf32> to vector<1x1x6x122xf32>
    tpu.vector_store %arg3[%c2_221, %c0_222, %c0_223, %c6_224], %163 {strides = array<i32>} : memref<9x1x8x128xf32, #tpu.memory_space<vmem>>, vector<1x1x6x122xf32>,
    %c1_225 = arith.constant 1 : index
    %c0_226 = arith.constant 0 : index
    %c6_227 = arith.constant 6 : index
    %c2_228 = arith.constant 2 : index
    %164 = vector.load %arg1[%c1_225, %c0_226, %c6_227, %c2_228] : memref<9x1x8x128xf32, #tpu.memory_space<vmem>>, vector<1x1x2x6xf32>
    %165 = vector.shape_cast %164 : vector<1x1x2x6xf32> to vector<1x2x6xf32>
    %c1_229 = arith.constant 1 : index
    %c0_230 = arith.constant 0 : index
    %c6_231 = arith.constant 6 : index
    %c2_232 = arith.constant 2 : index
    %166 = vector.load %arg2[%c1_229, %c0_230, %c6_231, %c2_232] : memref<9x1x8x128xf32, #tpu.memory_space<vmem>>, vector<1x1x2x6xf32>
    %167 = vector.shape_cast %166 : vector<1x1x2x6xf32> to vector<1x2x6xf32>
    %168 = arith.mulf %165, %167 : vector<1x2x6xf32>
    %c2_233 = arith.constant 2 : index
    %c0_234 = arith.constant 0 : index
    %c6_235 = arith.constant 6 : index
    %c0_236 = arith.constant 0 : index
    %169 = vector.load %arg1[%c2_233, %c0_234, %c6_235, %c0_236] : memref<9x1x8x128xf32, #tpu.memory_space<vmem>>, vector<1x1x2x6xf32>
    %170 = vector.shape_cast %169 : vector<1x1x2x6xf32> to vector<1x2x6xf32>
    %c2_237 = arith.constant 2 : index
    %c0_238 = arith.constant 0 : index
    %c6_239 = arith.constant 6 : index
    %c0_240 = arith.constant 0 : index
    %171 = vector.load %arg2[%c2_237, %c0_238, %c6_239, %c0_240] : memref<9x1x8x128xf32, #tpu.memory_space<vmem>>, vector<1x1x2x6xf32>
    %172 = vector.shape_cast %171 : vector<1x1x2x6xf32> to vector<1x2x6xf32>
    %173 = arith.mulf %170, %172 : vector<1x2x6xf32>
    %174 = arith.addf %168, %173 : vector<1x2x6xf32>
    %c4_241 = arith.constant 4 : index
    %c0_242 = arith.constant 0 : index
    %c0_243 = arith.constant 0 : index
    %c2_244 = arith.constant 2 : index
    %175 = vector.load %arg1[%c4_241, %c0_242, %c0_243, %c2_244] : memref<9x1x8x128xf32, #tpu.memory_space<vmem>>, vector<1x1x2x6xf32>
    %176 = vector.shape_cast %175 : vector<1x1x2x6xf32> to vector<1x2x6xf32>
    %c4_245 = arith.constant 4 : index
    %c0_246 = arith.constant 0 : index
    %c0_247 = arith.constant 0 : index
    %c2_248 = arith.constant 2 : index
    %177 = vector.load %arg2[%c4_245, %c0_246, %c0_247, %c2_248] : memref<9x1x8x128xf32, #tpu.memory_space<vmem>>, vector<1x1x2x6xf32>
    %178 = vector.shape_cast %177 : vector<1x1x2x6xf32> to vector<1x2x6xf32>
    %179 = arith.mulf %176, %178 : vector<1x2x6xf32>
    %180 = arith.addf %174, %179 : vector<1x2x6xf32>
    %c5_249 = arith.constant 5 : index
    %c0_250 = arith.constant 0 : index
    %c0_251 = arith.constant 0 : index
    %c0_252 = arith.constant 0 : index
    %181 = vector.load %arg1[%c5_249, %c0_250, %c0_251, %c0_252] : memref<9x1x8x128xf32, #tpu.memory_space<vmem>>, vector<1x1x2x6xf32>
    %182 = vector.shape_cast %181 : vector<1x1x2x6xf32> to vector<1x2x6xf32>
    %c5_253 = arith.constant 5 : index
    %c0_254 = arith.constant 0 : index
    %c0_255 = arith.constant 0 : index
    %c0_256 = arith.constant 0 : index
    %183 = vector.load %arg2[%c5_253, %c0_254, %c0_255, %c0_256] : memref<9x1x8x128xf32, #tpu.memory_space<vmem>>, vector<1x1x2x6xf32>
    %184 = vector.shape_cast %183 : vector<1x1x2x6xf32> to vector<1x2x6xf32>
    %185 = arith.mulf %182, %184 : vector<1x2x6xf32>
    %186 = arith.addf %180, %185 : vector<1x2x6xf32>
    %c2_257 = arith.constant 2 : index
    %c0_258 = arith.constant 0 : index
    %c6_259 = arith.constant 6 : index
    %c0_260 = arith.constant 0 : index
    %187 = vector.load %arg3[%c2_257, %c0_258, %c6_259, %c0_260] : memref<9x1x8x128xf32, #tpu.memory_space<vmem>>, vector<1x1x2x6xf32>
    %188 = vector.shape_cast %187 : vector<1x1x2x6xf32> to vector<1x2x6xf32>
    %189 = vector.shape_cast %186 : vector<1x2x6xf32> to vector<1x1x2x6xf32>
    tpu.vector_store %arg3[%c2_257, %c0_258, %c6_259, %c0_260], %189 {strides = array<i32>} : memref<9x1x8x128xf32, #tpu.memory_space<vmem>>, vector<1x1x2x6xf32>,
    %c2_261 = arith.constant 2 : index
    %c0_262 = arith.constant 0 : index
    %c6_263 = arith.constant 6 : index
    %c6_264 = arith.constant 6 : index
    %190 = vector.load %arg1[%c2_261, %c0_262, %c6_263, %c6_264] : memref<9x1x8x128xf32, #tpu.memory_space<vmem>>, vector<1x1x2x122xf32>
    %191 = vector.shape_cast %190 : vector<1x1x2x122xf32> to vector<1x2x122xf32>
    %c2_265 = arith.constant 2 : index
    %c0_266 = arith.constant 0 : index
    %c6_267 = arith.constant 6 : index
    %c6_268 = arith.constant 6 : index
    %192 = vector.load %arg2[%c2_265, %c0_266, %c6_267, %c6_268] : memref<9x1x8x128xf32, #tpu.memory_space<vmem>>, vector<1x1x2x122xf32>
    %193 = vector.shape_cast %192 : vector<1x1x2x122xf32> to vector<1x2x122xf32>
    %194 = arith.mulf %191, %193 : vector<1x2x122xf32>
    %c5_269 = arith.constant 5 : index
    %c0_270 = arith.constant 0 : index
    %c0_271 = arith.constant 0 : index
    %c6_272 = arith.constant 6 : index
    %195 = vector.load %arg1[%c5_269, %c0_270, %c0_271, %c6_272] : memref<9x1x8x128xf32, #tpu.memory_space<vmem>>, vector<1x1x2x122xf32>
    %196 = vector.shape_cast %195 : vector<1x1x2x122xf32> to vector<1x2x122xf32>
    %c5_273 = arith.constant 5 : index
    %c0_274 = arith.constant 0 : index
    %c0_275 = arith.constant 0 : index
    %c6_276 = arith.constant 6 : index
    %197 = vector.load %arg2[%c5_273, %c0_274, %c0_275, %c6_276] : memref<9x1x8x128xf32, #tpu.memory_space<vmem>>, vector<1x1x2x122xf32>
    %198 = vector.shape_cast %197 : vector<1x1x2x122xf32> to vector<1x2x122xf32>
    %199 = arith.mulf %196, %198 : vector<1x2x122xf32>
    %200 = arith.addf %194, %199 : vector<1x2x122xf32>
    %c2_277 = arith.constant 2 : index
    %c0_278 = arith.constant 0 : index
    %c6_279 = arith.constant 6 : index
    %c6_280 = arith.constant 6 : index
    %201 = vector.load %arg3[%c2_277, %c0_278, %c6_279, %c6_280] : memref<9x1x8x128xf32, #tpu.memory_space<vmem>>, vector<1x1x2x122xf32>
    %202 = vector.shape_cast %201 : vector<1x1x2x122xf32> to vector<1x2x122xf32>
    %203 = vector.shape_cast %200 : vector<1x2x122xf32> to vector<1x1x2x122xf32>
    tpu.vector_store %arg3[%c2_277, %c0_278, %c6_279, %c6_280], %203 {strides = array<i32>} : memref<9x1x8x128xf32, #tpu.memory_space<vmem>>, vector<1x1x2x122xf32>,
    %c0_281 = arith.constant 0 : index
    %c0_282 = arith.constant 0 : index
    %c6_283 = arith.constant 6 : index
    %c0_284 = arith.constant 0 : index
    %204 = vector.load %arg1[%c0_281, %c0_282, %c6_283, %c0_284] : memref<9x1x8x128xf32, #tpu.memory_space<vmem>>, vector<1x1x2x6xf32>
    %205 = vector.shape_cast %204 : vector<1x1x2x6xf32> to vector<1x2x6xf32>
    %c0_285 = arith.constant 0 : index
    %c0_286 = arith.constant 0 : index
    %c6_287 = arith.constant 6 : index
    %c0_288 = arith.constant 0 : index
    %206 = vector.load %arg2[%c0_285, %c0_286, %c6_287, %c0_288] : memref<9x1x8x128xf32, #tpu.memory_space<vmem>>, vector<1x1x2x6xf32>
    %207 = vector.shape_cast %206 : vector<1x1x2x6xf32> to vector<1x2x6xf32>
    %208 = arith.mulf %205, %207 : vector<1x2x6xf32>
    %c3_289 = arith.constant 3 : index
    %c0_290 = arith.constant 0 : index
    %c0_291 = arith.constant 0 : index
    %c0_292 = arith.constant 0 : index
    %209 = vector.load %arg1[%c3_289, %c0_290, %c0_291, %c0_292] : memref<9x1x8x128xf32, #tpu.memory_space<vmem>>, vector<1x1x2x6xf32>
    %210 = vector.shape_cast %209 : vector<1x1x2x6xf32> to vector<1x2x6xf32>
    %c3_293 = arith.constant 3 : index
    %c0_294 = arith.constant 0 : index
    %c0_295 = arith.constant 0 : index
    %c0_296 = arith.constant 0 : index
    %211 = vector.load %arg2[%c3_293, %c0_294, %c0_295, %c0_296] : memref<9x1x8x128xf32, #tpu.memory_space<vmem>>, vector<1x1x2x6xf32>
    %212 = vector.shape_cast %211 : vector<1x1x2x6xf32> to vector<1x2x6xf32>
    %213 = arith.mulf %210, %212 : vector<1x2x6xf32>
    %214 = arith.addf %208, %213 : vector<1x2x6xf32>
    %c3_297 = arith.constant 3 : index
    %c0_298 = arith.constant 0 : index
    %c0_299 = arith.constant 0 : index
    %c0_300 = arith.constant 0 : index
    %215 = vector.load %arg3[%c3_297, %c0_298, %c0_299, %c0_300] : memref<9x1x8x128xf32, #tpu.memory_space<vmem>>, vector<1x1x2x6xf32>
    %216 = vector.shape_cast %215 : vector<1x1x2x6xf32> to vector<1x2x6xf32>
    %217 = vector.shape_cast %214 : vector<1x2x6xf32> to vector<1x1x2x6xf32>
    tpu.vector_store %arg3[%c3_297, %c0_298, %c0_299, %c0_300], %217 {strides = array<i32>} : memref<9x1x8x128xf32, #tpu.memory_space<vmem>>, vector<1x1x2x6xf32>,
    %c0_301 = arith.constant 0 : index
    %c0_302 = arith.constant 0 : index
    %c6_303 = arith.constant 6 : index
    %c6_304 = arith.constant 6 : index
    %218 = vector.load %arg1[%c0_301, %c0_302, %c6_303, %c6_304] : memref<9x1x8x128xf32, #tpu.memory_space<vmem>>, vector<1x1x2x122xf32>
    %219 = vector.shape_cast %218 : vector<1x1x2x122xf32> to vector<1x2x122xf32>
    %c0_305 = arith.constant 0 : index
    %c0_306 = arith.constant 0 : index
    %c6_307 = arith.constant 6 : index
    %c6_308 = arith.constant 6 : index
    %220 = vector.load %arg2[%c0_305, %c0_306, %c6_307, %c6_308] : memref<9x1x8x128xf32, #tpu.memory_space<vmem>>, vector<1x1x2x122xf32>
    %221 = vector.shape_cast %220 : vector<1x1x2x122xf32> to vector<1x2x122xf32>
    %222 = arith.mulf %219, %221 : vector<1x2x122xf32>
    %c1_309 = arith.constant 1 : index
    %c0_310 = arith.constant 0 : index
    %c6_311 = arith.constant 6 : index
    %c0_312 = arith.constant 0 : index
    %223 = vector.load %arg1[%c1_309, %c0_310, %c6_311, %c0_312] : memref<9x1x8x128xf32, #tpu.memory_space<vmem>>, vector<1x1x2x122xf32>
    %224 = vector.shape_cast %223 : vector<1x1x2x122xf32> to vector<1x2x122xf32>
    %c1_313 = arith.constant 1 : index
    %c0_314 = arith.constant 0 : index
    %c6_315 = arith.constant 6 : index
    %c0_316 = arith.constant 0 : index
    %225 = vector.load %arg2[%c1_313, %c0_314, %c6_315, %c0_316] : memref<9x1x8x128xf32, #tpu.memory_space<vmem>>, vector<1x1x2x122xf32>
    %226 = vector.shape_cast %225 : vector<1x1x2x122xf32> to vector<1x2x122xf32>
    %227 = arith.mulf %224, %226 : vector<1x2x122xf32>
    %228 = arith.addf %222, %227 : vector<1x2x122xf32>
    %c3_317 = arith.constant 3 : index
    %c0_318 = arith.constant 0 : index
    %c0_319 = arith.constant 0 : index
    %c6_320 = arith.constant 6 : index
    %229 = vector.load %arg1[%c3_317, %c0_318, %c0_319, %c6_320] : memref<9x1x8x128xf32, #tpu.memory_space<vmem>>, vector<1x1x2x122xf32>
    %230 = vector.shape_cast %229 : vector<1x1x2x122xf32> to vector<1x2x122xf32>
    %c3_321 = arith.constant 3 : index
    %c0_322 = arith.constant 0 : index
    %c0_323 = arith.constant 0 : index
    %c6_324 = arith.constant 6 : index
    %231 = vector.load %arg2[%c3_321, %c0_322, %c0_323, %c6_324] : memref<9x1x8x128xf32, #tpu.memory_space<vmem>>, vector<1x1x2x122xf32>
    %232 = vector.shape_cast %231 : vector<1x1x2x122xf32> to vector<1x2x122xf32>
    %233 = arith.mulf %230, %232 : vector<1x2x122xf32>
    %234 = arith.addf %228, %233 : vector<1x2x122xf32>
    %c4_325 = arith.constant 4 : index
    %c0_326 = arith.constant 0 : index
    %c0_327 = arith.constant 0 : index
    %c0_328 = arith.constant 0 : index
    %235 = vector.load %arg1[%c4_325, %c0_326, %c0_327, %c0_328] : memref<9x1x8x128xf32, #tpu.memory_space<vmem>>, vector<1x1x2x122xf32>
    %236 = vector.shape_cast %235 : vector<1x1x2x122xf32> to vector<1x2x122xf32>
    %c4_329 = arith.constant 4 : index
    %c0_330 = arith.constant 0 : index
    %c0_331 = arith.constant 0 : index
    %c0_332 = arith.constant 0 : index
    %237 = vector.load %arg2[%c4_329, %c0_330, %c0_331, %c0_332] : memref<9x1x8x128xf32, #tpu.memory_space<vmem>>, vector<1x1x2x122xf32>
    %238 = vector.shape_cast %237 : vector<1x1x2x122xf32> to vector<1x2x122xf32>
    %239 = arith.mulf %236, %238 : vector<1x2x122xf32>
    %240 = arith.addf %234, %239 : vector<1x2x122xf32>
    %c3_333 = arith.constant 3 : index
    %c0_334 = arith.constant 0 : index
    %c0_335 = arith.constant 0 : index
    %c6_336 = arith.constant 6 : index
    %241 = vector.load %arg3[%c3_333, %c0_334, %c0_335, %c6_336] : memref<9x1x8x128xf32, #tpu.memory_space<vmem>>, vector<1x1x2x122xf32>
    %242 = vector.shape_cast %241 : vector<1x1x2x122xf32> to vector<1x2x122xf32>
    %243 = vector.shape_cast %240 : vector<1x2x122xf32> to vector<1x1x2x122xf32>
    tpu.vector_store %arg3[%c3_333, %c0_334, %c0_335, %c6_336], %243 {strides = array<i32>} : memref<9x1x8x128xf32, #tpu.memory_space<vmem>>, vector<1x1x2x122xf32>,
    %c3_337 = arith.constant 3 : index
    %c0_338 = arith.constant 0 : index
    %c2_339 = arith.constant 2 : index
    %c0_340 = arith.constant 0 : index
    %244 = vector.load %arg1[%c3_337, %c0_338, %c2_339, %c0_340] : memref<9x1x8x128xf32, #tpu.memory_space<vmem>>, vector<1x1x6x6xf32>
    %245 = vector.shape_cast %244 : vector<1x1x6x6xf32> to vector<1x6x6xf32>
    %c3_341 = arith.constant 3 : index
    %c0_342 = arith.constant 0 : index
    %c2_343 = arith.constant 2 : index
    %c0_344 = arith.constant 0 : index
    %246 = vector.load %arg2[%c3_341, %c0_342, %c2_343, %c0_344] : memref<9x1x8x128xf32, #tpu.memory_space<vmem>>, vector<1x1x6x6xf32>
    %247 = vector.shape_cast %246 : vector<1x1x6x6xf32> to vector<1x6x6xf32>
    %248 = arith.mulf %245, %247 : vector<1x6x6xf32>
    %c6_345 = arith.constant 6 : index
    %c0_346 = arith.constant 0 : index
    %c0_347 = arith.constant 0 : index
    %c0_348 = arith.constant 0 : index
    %249 = vector.load %arg1[%c6_345, %c0_346, %c0_347, %c0_348] : memref<9x1x8x128xf32, #tpu.memory_space<vmem>>, vector<1x1x6x6xf32>
    %250 = vector.shape_cast %249 : vector<1x1x6x6xf32> to vector<1x6x6xf32>
    %c6_349 = arith.constant 6 : index
    %c0_350 = arith.constant 0 : index
    %c0_351 = arith.constant 0 : index
    %c0_352 = arith.constant 0 : index
    %251 = vector.load %arg2[%c6_349, %c0_350, %c0_351, %c0_352] : memref<9x1x8x128xf32, #tpu.memory_space<vmem>>, vector<1x1x6x6xf32>
    %252 = vector.shape_cast %251 : vector<1x1x6x6xf32> to vector<1x6x6xf32>
    %253 = arith.mulf %250, %252 : vector<1x6x6xf32>
    %254 = arith.addf %248, %253 : vector<1x6x6xf32>
    %c3_353 = arith.constant 3 : index
    %c0_354 = arith.constant 0 : index
    %c2_355 = arith.constant 2 : index
    %c0_356 = arith.constant 0 : index
    %255 = vector.load %arg3[%c3_353, %c0_354, %c2_355, %c0_356] : memref<9x1x8x128xf32, #tpu.memory_space<vmem>>, vector<1x1x6x6xf32>
    %256 = vector.shape_cast %255 : vector<1x1x6x6xf32> to vector<1x6x6xf32>
    %257 = vector.shape_cast %254 : vector<1x6x6xf32> to vector<1x1x6x6xf32>
    tpu.vector_store %arg3[%c3_353, %c0_354, %c2_355, %c0_356], %257 {strides = array<i32>} : memref<9x1x8x128xf32, #tpu.memory_space<vmem>>, vector<1x1x6x6xf32>,
    %c3_357 = arith.constant 3 : index
    %c0_358 = arith.constant 0 : index
    %c2_359 = arith.constant 2 : index
    %c6_360 = arith.constant 6 : index
    %258 = vector.load %arg1[%c3_357, %c0_358, %c2_359, %c6_360] : memref<9x1x8x128xf32, #tpu.memory_space<vmem>>, vector<1x1x6x122xf32>
    %259 = vector.shape_cast %258 : vector<1x1x6x122xf32> to vector<1x6x122xf32>
    %c3_361 = arith.constant 3 : index
    %c0_362 = arith.constant 0 : index
    %c2_363 = arith.constant 2 : index
    %c6_364 = arith.constant 6 : index
    %260 = vector.load %arg2[%c3_361, %c0_362, %c2_363, %c6_364] : memref<9x1x8x128xf32, #tpu.memory_space<vmem>>, vector<1x1x6x122xf32>
    %261 = vector.shape_cast %260 : vector<1x1x6x122xf32> to vector<1x6x122xf32>
    %262 = arith.mulf %259, %261 : vector<1x6x122xf32>
    %c4_365 = arith.constant 4 : index
    %c0_366 = arith.constant 0 : index
    %c2_367 = arith.constant 2 : index
    %c0_368 = arith.constant 0 : index
    %263 = vector.load %arg1[%c4_365, %c0_366, %c2_367, %c0_368] : memref<9x1x8x128xf32, #tpu.memory_space<vmem>>, vector<1x1x6x122xf32>
    %264 = vector.shape_cast %263 : vector<1x1x6x122xf32> to vector<1x6x122xf32>
    %c4_369 = arith.constant 4 : index
    %c0_370 = arith.constant 0 : index
    %c2_371 = arith.constant 2 : index
    %c0_372 = arith.constant 0 : index
    %265 = vector.load %arg2[%c4_369, %c0_370, %c2_371, %c0_372] : memref<9x1x8x128xf32, #tpu.memory_space<vmem>>, vector<1x1x6x122xf32>
    %266 = vector.shape_cast %265 : vector<1x1x6x122xf32> to vector<1x6x122xf32>
    %267 = arith.mulf %264, %266 : vector<1x6x122xf32>
    %268 = arith.addf %262, %267 : vector<1x6x122xf32>
    %c6_373 = arith.constant 6 : index
    %c0_374 = arith.constant 0 : index
    %c0_375 = arith.constant 0 : index
    %c6_376 = arith.constant 6 : index
    %269 = vector.load %arg1[%c6_373, %c0_374, %c0_375, %c6_376] : memref<9x1x8x128xf32, #tpu.memory_space<vmem>>, vector<1x1x6x122xf32>
    %270 = vector.shape_cast %269 : vector<1x1x6x122xf32> to vector<1x6x122xf32>
    %c6_377 = arith.constant 6 : index
    %c0_378 = arith.constant 0 : index
    %c0_379 = arith.constant 0 : index
    %c6_380 = arith.constant 6 : index
    %271 = vector.load %arg2[%c6_377, %c0_378, %c0_379, %c6_380] : memref<9x1x8x128xf32, #tpu.memory_space<vmem>>, vector<1x1x6x122xf32>
    %272 = vector.shape_cast %271 : vector<1x1x6x122xf32> to vector<1x6x122xf32>
    %273 = arith.mulf %270, %272 : vector<1x6x122xf32>
    %274 = arith.addf %268, %273 : vector<1x6x122xf32>
    %c7 = arith.constant 7 : index
    %c0_381 = arith.constant 0 : index
    %c0_382 = arith.constant 0 : index
    %c0_383 = arith.constant 0 : index
    %275 = vector.load %arg1[%c7, %c0_381, %c0_382, %c0_383] : memref<9x1x8x128xf32, #tpu.memory_space<vmem>>, vector<1x1x6x122xf32>
    %276 = vector.shape_cast %275 : vector<1x1x6x122xf32> to vector<1x6x122xf32>
    %c7_384 = arith.constant 7 : index
    %c0_385 = arith.constant 0 : index
    %c0_386 = arith.constant 0 : index
    %c0_387 = arith.constant 0 : index
    %277 = vector.load %arg2[%c7_384, %c0_385, %c0_386, %c0_387] : memref<9x1x8x128xf32, #tpu.memory_space<vmem>>, vector<1x1x6x122xf32>
    %278 = vector.shape_cast %277 : vector<1x1x6x122xf32> to vector<1x6x122xf32>
    %279 = arith.mulf %276, %278 : vector<1x6x122xf32>
    %280 = arith.addf %274, %279 : vector<1x6x122xf32>
    %c3_388 = arith.constant 3 : index
    %c0_389 = arith.constant 0 : index
    %c2_390 = arith.constant 2 : index
    %c6_391 = arith.constant 6 : index
    %281 = vector.load %arg3[%c3_388, %c0_389, %c2_390, %c6_391] : memref<9x1x8x128xf32, #tpu.memory_space<vmem>>, vector<1x1x6x122xf32>
    %282 = vector.shape_cast %281 : vector<1x1x6x122xf32> to vector<1x6x122xf32>
    %283 = vector.shape_cast %280 : vector<1x6x122xf32> to vector<1x1x6x122xf32>
    tpu.vector_store %arg3[%c3_388, %c0_389, %c2_390, %c6_391], %283 {strides = array<i32>} : memref<9x1x8x128xf32, #tpu.memory_space<vmem>>, vector<1x1x6x122xf32>,
    %c0_392 = arith.constant 0 : index
    %c0_393 = arith.constant 0 : index
    %c6_394 = arith.constant 6 : index
    %c6_395 = arith.constant 6 : index
    %284 = vector.load %arg1[%c0_392, %c0_393, %c6_394, %c6_395] : memref<9x1x8x128xf32, #tpu.memory_space<vmem>>, vector<1x1x2x2xf32>
    %285 = vector.shape_cast %284 : vector<1x1x2x2xf32> to vector<1x2x2xf32>
    %c0_396 = arith.constant 0 : index
    %c0_397 = arith.constant 0 : index
    %c6_398 = arith.constant 6 : index
    %c6_399 = arith.constant 6 : index
    %286 = vector.load %arg2[%c0_396, %c0_397, %c6_398, %c6_399] : memref<9x1x8x128xf32, #tpu.memory_space<vmem>>, vector<1x1x2x2xf32>
    %287 = vector.shape_cast %286 : vector<1x1x2x2xf32> to vector<1x2x2xf32>
    %288 = arith.mulf %285, %287 : vector<1x2x2xf32>
    %c1_400 = arith.constant 1 : index
    %c0_401 = arith.constant 0 : index
    %c6_402 = arith.constant 6 : index
    %c0_403 = arith.constant 0 : index
    %289 = vector.load %arg1[%c1_400, %c0_401, %c6_402, %c0_403] : memref<9x1x8x128xf32, #tpu.memory_space<vmem>>, vector<1x1x2x2xf32>
    %290 = vector.shape_cast %289 : vector<1x1x2x2xf32> to vector<1x2x2xf32>
    %c1_404 = arith.constant 1 : index
    %c0_405 = arith.constant 0 : index
    %c6_406 = arith.constant 6 : index
    %c0_407 = arith.constant 0 : index
    %291 = vector.load %arg2[%c1_404, %c0_405, %c6_406, %c0_407] : memref<9x1x8x128xf32, #tpu.memory_space<vmem>>, vector<1x1x2x2xf32>
    %292 = vector.shape_cast %291 : vector<1x1x2x2xf32> to vector<1x2x2xf32>
    %293 = arith.mulf %290, %292 : vector<1x2x2xf32>
    %294 = arith.addf %288, %293 : vector<1x2x2xf32>
    %c3_408 = arith.constant 3 : index
    %c0_409 = arith.constant 0 : index
    %c0_410 = arith.constant 0 : index
    %c6_411 = arith.constant 6 : index
    %295 = vector.load %arg1[%c3_408, %c0_409, %c0_410, %c6_411] : memref<9x1x8x128xf32, #tpu.memory_space<vmem>>, vector<1x1x2x2xf32>
    %296 = vector.shape_cast %295 : vector<1x1x2x2xf32> to vector<1x2x2xf32>
    %c3_412 = arith.constant 3 : index
    %c0_413 = arith.constant 0 : index
    %c0_414 = arith.constant 0 : index
    %c6_415 = arith.constant 6 : index
    %297 = vector.load %arg2[%c3_412, %c0_413, %c0_414, %c6_415] : memref<9x1x8x128xf32, #tpu.memory_space<vmem>>, vector<1x1x2x2xf32>
    %298 = vector.shape_cast %297 : vector<1x1x2x2xf32> to vector<1x2x2xf32>
    %299 = arith.mulf %296, %298 : vector<1x2x2xf32>
    %300 = arith.addf %294, %299 : vector<1x2x2xf32>
    %c4_416 = arith.constant 4 : index
    %c0_417 = arith.constant 0 : index
    %c0_418 = arith.constant 0 : index
    %c0_419 = arith.constant 0 : index
    %301 = vector.load %arg1[%c4_416, %c0_417, %c0_418, %c0_419] : memref<9x1x8x128xf32, #tpu.memory_space<vmem>>, vector<1x1x2x2xf32>
    %302 = vector.shape_cast %301 : vector<1x1x2x2xf32> to vector<1x2x2xf32>
    %c4_420 = arith.constant 4 : index
    %c0_421 = arith.constant 0 : index
    %c0_422 = arith.constant 0 : index
    %c0_423 = arith.constant 0 : index
    %303 = vector.load %arg2[%c4_420, %c0_421, %c0_422, %c0_423] : memref<9x1x8x128xf32, #tpu.memory_space<vmem>>, vector<1x1x2x2xf32>
    %304 = vector.shape_cast %303 : vector<1x1x2x2xf32> to vector<1x2x2xf32>
    %305 = arith.mulf %302, %304 : vector<1x2x2xf32>
    %306 = arith.addf %300, %305 : vector<1x2x2xf32>
    %c4_424 = arith.constant 4 : index
    %c0_425 = arith.constant 0 : index
    %c0_426 = arith.constant 0 : index
    %c0_427 = arith.constant 0 : index
    %307 = vector.load %arg3[%c4_424, %c0_425, %c0_426, %c0_427] : memref<9x1x8x128xf32, #tpu.memory_space<vmem>>, vector<1x1x2x2xf32>
    %308 = vector.shape_cast %307 : vector<1x1x2x2xf32> to vector<1x2x2xf32>
    %309 = vector.shape_cast %306 : vector<1x2x2xf32> to vector<1x1x2x2xf32>
    tpu.vector_store %arg3[%c4_424, %c0_425, %c0_426, %c0_427], %309 {strides = array<i32>} : memref<9x1x8x128xf32, #tpu.memory_space<vmem>>, vector<1x1x2x2xf32>,
    %c1_428 = arith.constant 1 : index
    %c0_429 = arith.constant 0 : index
    %c6_430 = arith.constant 6 : index
    %c2_431 = arith.constant 2 : index
    %310 = vector.load %arg1[%c1_428, %c0_429, %c6_430, %c2_431] : memref<9x1x8x128xf32, #tpu.memory_space<vmem>>, vector<1x1x2x126xf32>
    %311 = vector.shape_cast %310 : vector<1x1x2x126xf32> to vector<1x2x126xf32>
    %c1_432 = arith.constant 1 : index
    %c0_433 = arith.constant 0 : index
    %c6_434 = arith.constant 6 : index
    %c2_435 = arith.constant 2 : index
    %312 = vector.load %arg2[%c1_432, %c0_433, %c6_434, %c2_435] : memref<9x1x8x128xf32, #tpu.memory_space<vmem>>, vector<1x1x2x126xf32>
    %313 = vector.shape_cast %312 : vector<1x1x2x126xf32> to vector<1x2x126xf32>
    %314 = arith.mulf %311, %313 : vector<1x2x126xf32>
    %c2_436 = arith.constant 2 : index
    %c0_437 = arith.constant 0 : index
    %c6_438 = arith.constant 6 : index
    %c0_439 = arith.constant 0 : index
    %315 = vector.load %arg1[%c2_436, %c0_437, %c6_438, %c0_439] : memref<9x1x8x128xf32, #tpu.memory_space<vmem>>, vector<1x1x2x126xf32>
    %316 = vector.shape_cast %315 : vector<1x1x2x126xf32> to vector<1x2x126xf32>
    %c2_440 = arith.constant 2 : index
    %c0_441 = arith.constant 0 : index
    %c6_442 = arith.constant 6 : index
    %c0_443 = arith.constant 0 : index
    %317 = vector.load %arg2[%c2_440, %c0_441, %c6_442, %c0_443] : memref<9x1x8x128xf32, #tpu.memory_space<vmem>>, vector<1x1x2x126xf32>
    %318 = vector.shape_cast %317 : vector<1x1x2x126xf32> to vector<1x2x126xf32>
    %319 = arith.mulf %316, %318 : vector<1x2x126xf32>
    %320 = arith.addf %314, %319 : vector<1x2x126xf32>
    %c4_444 = arith.constant 4 : index
    %c0_445 = arith.constant 0 : index
    %c0_446 = arith.constant 0 : index
    %c2_447 = arith.constant 2 : index
    %321 = vector.load %arg1[%c4_444, %c0_445, %c0_446, %c2_447] : memref<9x1x8x128xf32, #tpu.memory_space<vmem>>, vector<1x1x2x126xf32>
    %322 = vector.shape_cast %321 : vector<1x1x2x126xf32> to vector<1x2x126xf32>
    %c4_448 = arith.constant 4 : index
    %c0_449 = arith.constant 0 : index
    %c0_450 = arith.constant 0 : index
    %c2_451 = arith.constant 2 : index
    %323 = vector.load %arg2[%c4_448, %c0_449, %c0_450, %c2_451] : memref<9x1x8x128xf32, #tpu.memory_space<vmem>>, vector<1x1x2x126xf32>
    %324 = vector.shape_cast %323 : vector<1x1x2x126xf32> to vector<1x2x126xf32>
    %325 = arith.mulf %322, %324 : vector<1x2x126xf32>
    %326 = arith.addf %320, %325 : vector<1x2x126xf32>
    %c5_452 = arith.constant 5 : index
    %c0_453 = arith.constant 0 : index
    %c0_454 = arith.constant 0 : index
    %c0_455 = arith.constant 0 : index
    %327 = vector.load %arg1[%c5_452, %c0_453, %c0_454, %c0_455] : memref<9x1x8x128xf32, #tpu.memory_space<vmem>>, vector<1x1x2x126xf32>
    %328 = vector.shape_cast %327 : vector<1x1x2x126xf32> to vector<1x2x126xf32>
    %c5_456 = arith.constant 5 : index
    %c0_457 = arith.constant 0 : index
    %c0_458 = arith.constant 0 : index
    %c0_459 = arith.constant 0 : index
    %329 = vector.load %arg2[%c5_456, %c0_457, %c0_458, %c0_459] : memref<9x1x8x128xf32, #tpu.memory_space<vmem>>, vector<1x1x2x126xf32>
    %330 = vector.shape_cast %329 : vector<1x1x2x126xf32> to vector<1x2x126xf32>
    %331 = arith.mulf %328, %330 : vector<1x2x126xf32>
    %332 = arith.addf %326, %331 : vector<1x2x126xf32>
    %c4_460 = arith.constant 4 : index
    %c0_461 = arith.constant 0 : index
    %c0_462 = arith.constant 0 : index
    %c2_463 = arith.constant 2 : index
    %333 = vector.load %arg3[%c4_460, %c0_461, %c0_462, %c2_463] : memref<9x1x8x128xf32, #tpu.memory_space<vmem>>, vector<1x1x2x126xf32>
    %334 = vector.shape_cast %333 : vector<1x1x2x126xf32> to vector<1x2x126xf32>
    %335 = vector.shape_cast %332 : vector<1x2x126xf32> to vector<1x1x2x126xf32>
    tpu.vector_store %arg3[%c4_460, %c0_461, %c0_462, %c2_463], %335 {strides = array<i32>} : memref<9x1x8x128xf32, #tpu.memory_space<vmem>>, vector<1x1x2x126xf32>,
    %c3_464 = arith.constant 3 : index
    %c0_465 = arith.constant 0 : index
    %c2_466 = arith.constant 2 : index
    %c6_467 = arith.constant 6 : index
    %336 = vector.load %arg1[%c3_464, %c0_465, %c2_466, %c6_467] : memref<9x1x8x128xf32, #tpu.memory_space<vmem>>, vector<1x1x6x2xf32>
    %337 = vector.shape_cast %336 : vector<1x1x6x2xf32> to vector<1x6x2xf32>
    %c3_468 = arith.constant 3 : index
    %c0_469 = arith.constant 0 : index
    %c2_470 = arith.constant 2 : index
    %c6_471 = arith.constant 6 : index
    %338 = vector.load %arg2[%c3_468, %c0_469, %c2_470, %c6_471] : memref<9x1x8x128xf32, #tpu.memory_space<vmem>>, vector<1x1x6x2xf32>
    %339 = vector.shape_cast %338 : vector<1x1x6x2xf32> to vector<1x6x2xf32>
    %340 = arith.mulf %337, %339 : vector<1x6x2xf32>
    %c4_472 = arith.constant 4 : index
    %c0_473 = arith.constant 0 : index
    %c2_474 = arith.constant 2 : index
    %c0_475 = arith.constant 0 : index
    %341 = vector.load %arg1[%c4_472, %c0_473, %c2_474, %c0_475] : memref<9x1x8x128xf32, #tpu.memory_space<vmem>>, vector<1x1x6x2xf32>
    %342 = vector.shape_cast %341 : vector<1x1x6x2xf32> to vector<1x6x2xf32>
    %c4_476 = arith.constant 4 : index
    %c0_477 = arith.constant 0 : index
    %c2_478 = arith.constant 2 : index
    %c0_479 = arith.constant 0 : index
    %343 = vector.load %arg2[%c4_476, %c0_477, %c2_478, %c0_479] : memref<9x1x8x128xf32, #tpu.memory_space<vmem>>, vector<1x1x6x2xf32>
    %344 = vector.shape_cast %343 : vector<1x1x6x2xf32> to vector<1x6x2xf32>
    %345 = arith.mulf %342, %344 : vector<1x6x2xf32>
    %346 = arith.addf %340, %345 : vector<1x6x2xf32>
    %c6_480 = arith.constant 6 : index
    %c0_481 = arith.constant 0 : index
    %c0_482 = arith.constant 0 : index
    %c6_483 = arith.constant 6 : index
    %347 = vector.load %arg1[%c6_480, %c0_481, %c0_482, %c6_483] : memref<9x1x8x128xf32, #tpu.memory_space<vmem>>, vector<1x1x6x2xf32>
    %348 = vector.shape_cast %347 : vector<1x1x6x2xf32> to vector<1x6x2xf32>
    %c6_484 = arith.constant 6 : index
    %c0_485 = arith.constant 0 : index
    %c0_486 = arith.constant 0 : index
    %c6_487 = arith.constant 6 : index
    %349 = vector.load %arg2[%c6_484, %c0_485, %c0_486, %c6_487] : memref<9x1x8x128xf32, #tpu.memory_space<vmem>>, vector<1x1x6x2xf32>
    %350 = vector.shape_cast %349 : vector<1x1x6x2xf32> to vector<1x6x2xf32>
    %351 = arith.mulf %348, %350 : vector<1x6x2xf32>
    %352 = arith.addf %346, %351 : vector<1x6x2xf32>
    %c7_488 = arith.constant 7 : index
    %c0_489 = arith.constant 0 : index
    %c0_490 = arith.constant 0 : index
    %c0_491 = arith.constant 0 : index
    %353 = vector.load %arg1[%c7_488, %c0_489, %c0_490, %c0_491] : memref<9x1x8x128xf32, #tpu.memory_space<vmem>>, vector<1x1x6x2xf32>
    %354 = vector.shape_cast %353 : vector<1x1x6x2xf32> to vector<1x6x2xf32>
    %c7_492 = arith.constant 7 : index
    %c0_493 = arith.constant 0 : index
    %c0_494 = arith.constant 0 : index
    %c0_495 = arith.constant 0 : index
    %355 = vector.load %arg2[%c7_492, %c0_493, %c0_494, %c0_495] : memref<9x1x8x128xf32, #tpu.memory_space<vmem>>, vector<1x1x6x2xf32>
    %356 = vector.shape_cast %355 : vector<1x1x6x2xf32> to vector<1x6x2xf32>
    %357 = arith.mulf %354, %356 : vector<1x6x2xf32>
    %358 = arith.addf %352, %357 : vector<1x6x2xf32>
    %c4_496 = arith.constant 4 : index
    %c0_497 = arith.constant 0 : index
    %c2_498 = arith.constant 2 : index
    %c0_499 = arith.constant 0 : index
    %359 = vector.load %arg3[%c4_496, %c0_497, %c2_498, %c0_499] : memref<9x1x8x128xf32, #tpu.memory_space<vmem>>, vector<1x1x6x2xf32>
    %360 = vector.shape_cast %359 : vector<1x1x6x2xf32> to vector<1x6x2xf32>
    %361 = vector.shape_cast %358 : vector<1x6x2xf32> to vector<1x1x6x2xf32>
    tpu.vector_store %arg3[%c4_496, %c0_497, %c2_498, %c0_499], %361 {strides = array<i32>} : memref<9x1x8x128xf32, #tpu.memory_space<vmem>>, vector<1x1x6x2xf32>,
    %c4_500 = arith.constant 4 : index
    %c0_501 = arith.constant 0 : index
    %c2_502 = arith.constant 2 : index
    %c2_503 = arith.constant 2 : index
    %362 = vector.load %arg1[%c4_500, %c0_501, %c2_502, %c2_503] : memref<9x1x8x128xf32, #tpu.memory_space<vmem>>, vector<1x1x6x126xf32>
    %363 = vector.shape_cast %362 : vector<1x1x6x126xf32> to vector<1x6x126xf32>
    %c4_504 = arith.constant 4 : index
    %c0_505 = arith.constant 0 : index
    %c2_506 = arith.constant 2 : index
    %c2_507 = arith.constant 2 : index
    %364 = vector.load %arg2[%c4_504, %c0_505, %c2_506, %c2_507] : memref<9x1x8x128xf32, #tpu.memory_space<vmem>>, vector<1x1x6x126xf32>
    %365 = vector.shape_cast %364 : vector<1x1x6x126xf32> to vector<1x6x126xf32>
    %366 = arith.mulf %363, %365 : vector<1x6x126xf32>
    %c5_508 = arith.constant 5 : index
    %c0_509 = arith.constant 0 : index
    %c2_510 = arith.constant 2 : index
    %c0_511 = arith.constant 0 : index
    %367 = vector.load %arg1[%c5_508, %c0_509, %c2_510, %c0_511] : memref<9x1x8x128xf32, #tpu.memory_space<vmem>>, vector<1x1x6x126xf32>
    %368 = vector.shape_cast %367 : vector<1x1x6x126xf32> to vector<1x6x126xf32>
    %c5_512 = arith.constant 5 : index
    %c0_513 = arith.constant 0 : index
    %c2_514 = arith.constant 2 : index
    %c0_515 = arith.constant 0 : index
    %369 = vector.load %arg2[%c5_512, %c0_513, %c2_514, %c0_515] : memref<9x1x8x128xf32, #tpu.memory_space<vmem>>, vector<1x1x6x126xf32>
    %370 = vector.shape_cast %369 : vector<1x1x6x126xf32> to vector<1x6x126xf32>
    %371 = arith.mulf %368, %370 : vector<1x6x126xf32>
    %372 = arith.addf %366, %371 : vector<1x6x126xf32>
    %c7_516 = arith.constant 7 : index
    %c0_517 = arith.constant 0 : index
    %c0_518 = arith.constant 0 : index
    %c2_519 = arith.constant 2 : index
    %373 = vector.load %arg1[%c7_516, %c0_517, %c0_518, %c2_519] : memref<9x1x8x128xf32, #tpu.memory_space<vmem>>, vector<1x1x6x126xf32>
    %374 = vector.shape_cast %373 : vector<1x1x6x126xf32> to vector<1x6x126xf32>
    %c7_520 = arith.constant 7 : index
    %c0_521 = arith.constant 0 : index
    %c0_522 = arith.constant 0 : index
    %c2_523 = arith.constant 2 : index
    %375 = vector.load %arg2[%c7_520, %c0_521, %c0_522, %c2_523] : memref<9x1x8x128xf32, #tpu.memory_space<vmem>>, vector<1x1x6x126xf32>
    %376 = vector.shape_cast %375 : vector<1x1x6x126xf32> to vector<1x6x126xf32>
    %377 = arith.mulf %374, %376 : vector<1x6x126xf32>
    %378 = arith.addf %372, %377 : vector<1x6x126xf32>
    %c8 = arith.constant 8 : index
    %c0_524 = arith.constant 0 : index
    %c0_525 = arith.constant 0 : index
    %c0_526 = arith.constant 0 : index
    %379 = vector.load %arg1[%c8, %c0_524, %c0_525, %c0_526] : memref<9x1x8x128xf32, #tpu.memory_space<vmem>>, vector<1x1x6x126xf32>
    %380 = vector.shape_cast %379 : vector<1x1x6x126xf32> to vector<1x6x126xf32>
    %c8_527 = arith.constant 8 : index
    %c0_528 = arith.constant 0 : index
    %c0_529 = arith.constant 0 : index
    %c0_530 = arith.constant 0 : index
    %381 = vector.load %arg2[%c8_527, %c0_528, %c0_529, %c0_530] : memref<9x1x8x128xf32, #tpu.memory_space<vmem>>, vector<1x1x6x126xf32>
    %382 = vector.shape_cast %381 : vector<1x1x6x126xf32> to vector<1x6x126xf32>
    %383 = arith.mulf %380, %382 : vector<1x6x126xf32>
    %384 = arith.addf %378, %383 : vector<1x6x126xf32>
    %c4_531 = arith.constant 4 : index
    %c0_532 = arith.constant 0 : index
    %c2_533 = arith.constant 2 : index
    %c2_534 = arith.constant 2 : index
    %385 = vector.load %arg3[%c4_531, %c0_532, %c2_533, %c2_534] : memref<9x1x8x128xf32, #tpu.memory_space<vmem>>, vector<1x1x6x126xf32>
    %386 = vector.shape_cast %385 : vector<1x1x6x126xf32> to vector<1x6x126xf32>
    %387 = vector.shape_cast %384 : vector<1x6x126xf32> to vector<1x1x6x126xf32>
    tpu.vector_store %arg3[%c4_531, %c0_532, %c2_533, %c2_534], %387 {strides = array<i32>} : memref<9x1x8x128xf32, #tpu.memory_space<vmem>>, vector<1x1x6x126xf32>,
    %c1_535 = arith.constant 1 : index
    %c0_536 = arith.constant 0 : index
    %c6_537 = arith.constant 6 : index
    %c2_538 = arith.constant 2 : index
    %388 = vector.load %arg1[%c1_535, %c0_536, %c6_537, %c2_538] : memref<9x1x8x128xf32, #tpu.memory_space<vmem>>, vector<1x1x2x6xf32>
    %389 = vector.shape_cast %388 : vector<1x1x2x6xf32> to vector<1x2x6xf32>
    %c1_539 = arith.constant 1 : index
    %c0_540 = arith.constant 0 : index
    %c6_541 = arith.constant 6 : index
    %c2_542 = arith.constant 2 : index
    %390 = vector.load %arg2[%c1_539, %c0_540, %c6_541, %c2_542] : memref<9x1x8x128xf32, #tpu.memory_space<vmem>>, vector<1x1x2x6xf32>
    %391 = vector.shape_cast %390 : vector<1x1x2x6xf32> to vector<1x2x6xf32>
    %392 = arith.mulf %389, %391 : vector<1x2x6xf32>
    %c2_543 = arith.constant 2 : index
    %c0_544 = arith.constant 0 : index
    %c6_545 = arith.constant 6 : index
    %c0_546 = arith.constant 0 : index
    %393 = vector.load %arg1[%c2_543, %c0_544, %c6_545, %c0_546] : memref<9x1x8x128xf32, #tpu.memory_space<vmem>>, vector<1x1x2x6xf32>
    %394 = vector.shape_cast %393 : vector<1x1x2x6xf32> to vector<1x2x6xf32>
    %c2_547 = arith.constant 2 : index
    %c0_548 = arith.constant 0 : index
    %c6_549 = arith.constant 6 : index
    %c0_550 = arith.constant 0 : index
    %395 = vector.load %arg2[%c2_547, %c0_548, %c6_549, %c0_550] : memref<9x1x8x128xf32, #tpu.memory_space<vmem>>, vector<1x1x2x6xf32>
    %396 = vector.shape_cast %395 : vector<1x1x2x6xf32> to vector<1x2x6xf32>
    %397 = arith.mulf %394, %396 : vector<1x2x6xf32>
    %398 = arith.addf %392, %397 : vector<1x2x6xf32>
    %c4_551 = arith.constant 4 : index
    %c0_552 = arith.constant 0 : index
    %c0_553 = arith.constant 0 : index
    %c2_554 = arith.constant 2 : index
    %399 = vector.load %arg1[%c4_551, %c0_552, %c0_553, %c2_554] : memref<9x1x8x128xf32, #tpu.memory_space<vmem>>, vector<1x1x2x6xf32>
    %400 = vector.shape_cast %399 : vector<1x1x2x6xf32> to vector<1x2x6xf32>
    %c4_555 = arith.constant 4 : index
    %c0_556 = arith.constant 0 : index
    %c0_557 = arith.constant 0 : index
    %c2_558 = arith.constant 2 : index
    %401 = vector.load %arg2[%c4_555, %c0_556, %c0_557, %c2_558] : memref<9x1x8x128xf32, #tpu.memory_space<vmem>>, vector<1x1x2x6xf32>
    %402 = vector.shape_cast %401 : vector<1x1x2x6xf32> to vector<1x2x6xf32>
    %403 = arith.mulf %400, %402 : vector<1x2x6xf32>
    %404 = arith.addf %398, %403 : vector<1x2x6xf32>
    %c5_559 = arith.constant 5 : index
    %c0_560 = arith.constant 0 : index
    %c0_561 = arith.constant 0 : index
    %c0_562 = arith.constant 0 : index
    %405 = vector.load %arg1[%c5_559, %c0_560, %c0_561, %c0_562] : memref<9x1x8x128xf32, #tpu.memory_space<vmem>>, vector<1x1x2x6xf32>
    %406 = vector.shape_cast %405 : vector<1x1x2x6xf32> to vector<1x2x6xf32>
    %c5_563 = arith.constant 5 : index
    %c0_564 = arith.constant 0 : index
    %c0_565 = arith.constant 0 : index
    %c0_566 = arith.constant 0 : index
    %407 = vector.load %arg2[%c5_563, %c0_564, %c0_565, %c0_566] : memref<9x1x8x128xf32, #tpu.memory_space<vmem>>, vector<1x1x2x6xf32>
    %408 = vector.shape_cast %407 : vector<1x1x2x6xf32> to vector<1x2x6xf32>
    %409 = arith.mulf %406, %408 : vector<1x2x6xf32>
    %410 = arith.addf %404, %409 : vector<1x2x6xf32>
    %c5_567 = arith.constant 5 : index
    %c0_568 = arith.constant 0 : index
    %c0_569 = arith.constant 0 : index
    %c0_570 = arith.constant 0 : index
    %411 = vector.load %arg3[%c5_567, %c0_568, %c0_569, %c0_570] : memref<9x1x8x128xf32, #tpu.memory_space<vmem>>, vector<1x1x2x6xf32>
    %412 = vector.shape_cast %411 : vector<1x1x2x6xf32> to vector<1x2x6xf32>
    %413 = vector.shape_cast %410 : vector<1x2x6xf32> to vector<1x1x2x6xf32>
    tpu.vector_store %arg3[%c5_567, %c0_568, %c0_569, %c0_570], %413 {strides = array<i32>} : memref<9x1x8x128xf32, #tpu.memory_space<vmem>>, vector<1x1x2x6xf32>,
    %c2_571 = arith.constant 2 : index
    %c0_572 = arith.constant 0 : index
    %c6_573 = arith.constant 6 : index
    %c6_574 = arith.constant 6 : index
    %414 = vector.load %arg1[%c2_571, %c0_572, %c6_573, %c6_574] : memref<9x1x8x128xf32, #tpu.memory_space<vmem>>, vector<1x1x2x122xf32>
    %415 = vector.shape_cast %414 : vector<1x1x2x122xf32> to vector<1x2x122xf32>
    %c2_575 = arith.constant 2 : index
    %c0_576 = arith.constant 0 : index
    %c6_577 = arith.constant 6 : index
    %c6_578 = arith.constant 6 : index
    %416 = vector.load %arg2[%c2_575, %c0_576, %c6_577, %c6_578] : memref<9x1x8x128xf32, #tpu.memory_space<vmem>>, vector<1x1x2x122xf32>
    %417 = vector.shape_cast %416 : vector<1x1x2x122xf32> to vector<1x2x122xf32>
    %418 = arith.mulf %415, %417 : vector<1x2x122xf32>
    %c5_579 = arith.constant 5 : index
    %c0_580 = arith.constant 0 : index
    %c0_581 = arith.constant 0 : index
    %c6_582 = arith.constant 6 : index
    %419 = vector.load %arg1[%c5_579, %c0_580, %c0_581, %c6_582] : memref<9x1x8x128xf32, #tpu.memory_space<vmem>>, vector<1x1x2x122xf32>
    %420 = vector.shape_cast %419 : vector<1x1x2x122xf32> to vector<1x2x122xf32>
    %c5_583 = arith.constant 5 : index
    %c0_584 = arith.constant 0 : index
    %c0_585 = arith.constant 0 : index
    %c6_586 = arith.constant 6 : index
    %421 = vector.load %arg2[%c5_583, %c0_584, %c0_585, %c6_586] : memref<9x1x8x128xf32, #tpu.memory_space<vmem>>, vector<1x1x2x122xf32>
    %422 = vector.shape_cast %421 : vector<1x1x2x122xf32> to vector<1x2x122xf32>
    %423 = arith.mulf %420, %422 : vector<1x2x122xf32>
    %424 = arith.addf %418, %423 : vector<1x2x122xf32>
    %c5_587 = arith.constant 5 : index
    %c0_588 = arith.constant 0 : index
    %c0_589 = arith.constant 0 : index
    %c6_590 = arith.constant 6 : index
    %425 = vector.load %arg3[%c5_587, %c0_588, %c0_589, %c6_590] : memref<9x1x8x128xf32, #tpu.memory_space<vmem>>, vector<1x1x2x122xf32>
    %426 = vector.shape_cast %425 : vector<1x1x2x122xf32> to vector<1x2x122xf32>
    %427 = vector.shape_cast %424 : vector<1x2x122xf32> to vector<1x1x2x122xf32>
    tpu.vector_store %arg3[%c5_587, %c0_588, %c0_589, %c6_590], %427 {strides = array<i32>} : memref<9x1x8x128xf32, #tpu.memory_space<vmem>>, vector<1x1x2x122xf32>,
    %c4_591 = arith.constant 4 : index
    %c0_592 = arith.constant 0 : index
    %c2_593 = arith.constant 2 : index
    %c2_594 = arith.constant 2 : index
    %428 = vector.load %arg1[%c4_591, %c0_592, %c2_593, %c2_594] : memref<9x1x8x128xf32, #tpu.memory_space<vmem>>, vector<1x1x6x6xf32>
    %429 = vector.shape_cast %428 : vector<1x1x6x6xf32> to vector<1x6x6xf32>
    %c4_595 = arith.constant 4 : index
    %c0_596 = arith.constant 0 : index
    %c2_597 = arith.constant 2 : index
    %c2_598 = arith.constant 2 : index
    %430 = vector.load %arg2[%c4_595, %c0_596, %c2_597, %c2_598] : memref<9x1x8x128xf32, #tpu.memory_space<vmem>>, vector<1x1x6x6xf32>
    %431 = vector.shape_cast %430 : vector<1x1x6x6xf32> to vector<1x6x6xf32>
    %432 = arith.mulf %429, %431 : vector<1x6x6xf32>
    %c5_599 = arith.constant 5 : index
    %c0_600 = arith.constant 0 : index
    %c2_601 = arith.constant 2 : index
    %c0_602 = arith.constant 0 : index
    %433 = vector.load %arg1[%c5_599, %c0_600, %c2_601, %c0_602] : memref<9x1x8x128xf32, #tpu.memory_space<vmem>>, vector<1x1x6x6xf32>
    %434 = vector.shape_cast %433 : vector<1x1x6x6xf32> to vector<1x6x6xf32>
    %c5_603 = arith.constant 5 : index
    %c0_604 = arith.constant 0 : index
    %c2_605 = arith.constant 2 : index
    %c0_606 = arith.constant 0 : index
    %435 = vector.load %arg2[%c5_603, %c0_604, %c2_605, %c0_606] : memref<9x1x8x128xf32, #tpu.memory_space<vmem>>, vector<1x1x6x6xf32>
    %436 = vector.shape_cast %435 : vector<1x1x6x6xf32> to vector<1x6x6xf32>
    %437 = arith.mulf %434, %436 : vector<1x6x6xf32>
    %438 = arith.addf %432, %437 : vector<1x6x6xf32>
    %c7_607 = arith.constant 7 : index
    %c0_608 = arith.constant 0 : index
    %c0_609 = arith.constant 0 : index
    %c2_610 = arith.constant 2 : index
    %439 = vector.load %arg1[%c7_607, %c0_608, %c0_609, %c2_610] : memref<9x1x8x128xf32, #tpu.memory_space<vmem>>, vector<1x1x6x6xf32>
    %440 = vector.shape_cast %439 : vector<1x1x6x6xf32> to vector<1x6x6xf32>
    %c7_611 = arith.constant 7 : index
    %c0_612 = arith.constant 0 : index
    %c0_613 = arith.constant 0 : index
    %c2_614 = arith.constant 2 : index
    %441 = vector.load %arg2[%c7_611, %c0_612, %c0_613, %c2_614] : memref<9x1x8x128xf32, #tpu.memory_space<vmem>>, vector<1x1x6x6xf32>
    %442 = vector.shape_cast %441 : vector<1x1x6x6xf32> to vector<1x6x6xf32>
    %443 = arith.mulf %440, %442 : vector<1x6x6xf32>
    %444 = arith.addf %438, %443 : vector<1x6x6xf32>
    %c8_615 = arith.constant 8 : index
    %c0_616 = arith.constant 0 : index
    %c0_617 = arith.constant 0 : index
    %c0_618 = arith.constant 0 : index
    %445 = vector.load %arg1[%c8_615, %c0_616, %c0_617, %c0_618] : memref<9x1x8x128xf32, #tpu.memory_space<vmem>>, vector<1x1x6x6xf32>
    %446 = vector.shape_cast %445 : vector<1x1x6x6xf32> to vector<1x6x6xf32>
    %c8_619 = arith.constant 8 : index
    %c0_620 = arith.constant 0 : index
    %c0_621 = arith.constant 0 : index
    %c0_622 = arith.constant 0 : index
    %447 = vector.load %arg2[%c8_619, %c0_620, %c0_621, %c0_622] : memref<9x1x8x128xf32, #tpu.memory_space<vmem>>, vector<1x1x6x6xf32>
    %448 = vector.shape_cast %447 : vector<1x1x6x6xf32> to vector<1x6x6xf32>
    %449 = arith.mulf %446, %448 : vector<1x6x6xf32>
    %450 = arith.addf %444, %449 : vector<1x6x6xf32>
    %c5_623 = arith.constant 5 : index
    %c0_624 = arith.constant 0 : index
    %c2_625 = arith.constant 2 : index
    %c0_626 = arith.constant 0 : index
    %451 = vector.load %arg3[%c5_623, %c0_624, %c2_625, %c0_626] : memref<9x1x8x128xf32, #tpu.memory_space<vmem>>, vector<1x1x6x6xf32>
    %452 = vector.shape_cast %451 : vector<1x1x6x6xf32> to vector<1x6x6xf32>
    %453 = vector.shape_cast %450 : vector<1x6x6xf32> to vector<1x1x6x6xf32>
    tpu.vector_store %arg3[%c5_623, %c0_624, %c2_625, %c0_626], %453 {strides = array<i32>} : memref<9x1x8x128xf32, #tpu.memory_space<vmem>>, vector<1x1x6x6xf32>,
    %c5_627 = arith.constant 5 : index
    %c0_628 = arith.constant 0 : index
    %c2_629 = arith.constant 2 : index
    %c6_630 = arith.constant 6 : index
    %454 = vector.load %arg1[%c5_627, %c0_628, %c2_629, %c6_630] : memref<9x1x8x128xf32, #tpu.memory_space<vmem>>, vector<1x1x6x122xf32>
    %455 = vector.shape_cast %454 : vector<1x1x6x122xf32> to vector<1x6x122xf32>
    %c5_631 = arith.constant 5 : index
    %c0_632 = arith.constant 0 : index
    %c2_633 = arith.constant 2 : index
    %c6_634 = arith.constant 6 : index
    %456 = vector.load %arg2[%c5_631, %c0_632, %c2_633, %c6_634] : memref<9x1x8x128xf32, #tpu.memory_space<vmem>>, vector<1x1x6x122xf32>
    %457 = vector.shape_cast %456 : vector<1x1x6x122xf32> to vector<1x6x122xf32>
    %458 = arith.mulf %455, %457 : vector<1x6x122xf32>
    %c8_635 = arith.constant 8 : index
    %c0_636 = arith.constant 0 : index
    %c0_637 = arith.constant 0 : index
    %c6_638 = arith.constant 6 : index
    %459 = vector.load %arg1[%c8_635, %c0_636, %c0_637, %c6_638] : memref<9x1x8x128xf32, #tpu.memory_space<vmem>>, vector<1x1x6x122xf32>
    %460 = vector.shape_cast %459 : vector<1x1x6x122xf32> to vector<1x6x122xf32>
    %c8_639 = arith.constant 8 : index
    %c0_640 = arith.constant 0 : index
    %c0_641 = arith.constant 0 : index
    %c6_642 = arith.constant 6 : index
    %461 = vector.load %arg2[%c8_639, %c0_640, %c0_641, %c6_642] : memref<9x1x8x128xf32, #tpu.memory_space<vmem>>, vector<1x1x6x122xf32>
    %462 = vector.shape_cast %461 : vector<1x1x6x122xf32> to vector<1x6x122xf32>
    %463 = arith.mulf %460, %462 : vector<1x6x122xf32>
    %464 = arith.addf %458, %463 : vector<1x6x122xf32>
    %c5_643 = arith.constant 5 : index
    %c0_644 = arith.constant 0 : index
    %c2_645 = arith.constant 2 : index
    %c6_646 = arith.constant 6 : index
    %465 = vector.load %arg3[%c5_643, %c0_644, %c2_645, %c6_646] : memref<9x1x8x128xf32, #tpu.memory_space<vmem>>, vector<1x1x6x122xf32>
    %466 = vector.shape_cast %465 : vector<1x1x6x122xf32> to vector<1x6x122xf32>
    %467 = vector.shape_cast %464 : vector<1x6x122xf32> to vector<1x1x6x122xf32>
    tpu.vector_store %arg3[%c5_643, %c0_644, %c2_645, %c6_646], %467 {strides = array<i32>} : memref<9x1x8x128xf32, #tpu.memory_space<vmem>>, vector<1x1x6x122xf32>,
    %c3_647 = arith.constant 3 : index
    %c0_648 = arith.constant 0 : index
    %c2_649 = arith.constant 2 : index
    %c0_650 = arith.constant 0 : index
    %468 = vector.load %arg1[%c3_647, %c0_648, %c2_649, %c0_650] : memref<9x1x8x128xf32, #tpu.memory_space<vmem>>, vector<1x1x6x6xf32>
    %469 = vector.shape_cast %468 : vector<1x1x6x6xf32> to vector<1x6x6xf32>
    %c3_651 = arith.constant 3 : index
    %c0_652 = arith.constant 0 : index
    %c2_653 = arith.constant 2 : index
    %c0_654 = arith.constant 0 : index
    %470 = vector.load %arg2[%c3_651, %c0_652, %c2_653, %c0_654] : memref<9x1x8x128xf32, #tpu.memory_space<vmem>>, vector<1x1x6x6xf32>
    %471 = vector.shape_cast %470 : vector<1x1x6x6xf32> to vector<1x6x6xf32>
    %472 = arith.mulf %469, %471 : vector<1x6x6xf32>
    %c6_655 = arith.constant 6 : index
    %c0_656 = arith.constant 0 : index
    %c0_657 = arith.constant 0 : index
    %c0_658 = arith.constant 0 : index
    %473 = vector.load %arg1[%c6_655, %c0_656, %c0_657, %c0_658] : memref<9x1x8x128xf32, #tpu.memory_space<vmem>>, vector<1x1x6x6xf32>
    %474 = vector.shape_cast %473 : vector<1x1x6x6xf32> to vector<1x6x6xf32>
    %c6_659 = arith.constant 6 : index
    %c0_660 = arith.constant 0 : index
    %c0_661 = arith.constant 0 : index
    %c0_662 = arith.constant 0 : index
    %475 = vector.load %arg2[%c6_659, %c0_660, %c0_661, %c0_662] : memref<9x1x8x128xf32, #tpu.memory_space<vmem>>, vector<1x1x6x6xf32>
    %476 = vector.shape_cast %475 : vector<1x1x6x6xf32> to vector<1x6x6xf32>
    %477 = arith.mulf %474, %476 : vector<1x6x6xf32>
    %478 = arith.addf %472, %477 : vector<1x6x6xf32>
    %c6_663 = arith.constant 6 : index
    %c0_664 = arith.constant 0 : index
    %c0_665 = arith.constant 0 : index
    %c0_666 = arith.constant 0 : index
    %479 = vector.load %arg3[%c6_663, %c0_664, %c0_665, %c0_666] : memref<9x1x8x128xf32, #tpu.memory_space<vmem>>, vector<1x1x6x6xf32>
    %480 = vector.shape_cast %479 : vector<1x1x6x6xf32> to vector<1x6x6xf32>
    %481 = vector.shape_cast %478 : vector<1x6x6xf32> to vector<1x1x6x6xf32>
    tpu.vector_store %arg3[%c6_663, %c0_664, %c0_665, %c0_666], %481 {strides = array<i32>} : memref<9x1x8x128xf32, #tpu.memory_space<vmem>>, vector<1x1x6x6xf32>,
    %c3_667 = arith.constant 3 : index
    %c0_668 = arith.constant 0 : index
    %c2_669 = arith.constant 2 : index
    %c6_670 = arith.constant 6 : index
    %482 = vector.load %arg1[%c3_667, %c0_668, %c2_669, %c6_670] : memref<9x1x8x128xf32, #tpu.memory_space<vmem>>, vector<1x1x6x122xf32>
    %483 = vector.shape_cast %482 : vector<1x1x6x122xf32> to vector<1x6x122xf32>
    %c3_671 = arith.constant 3 : index
    %c0_672 = arith.constant 0 : index
    %c2_673 = arith.constant 2 : index
    %c6_674 = arith.constant 6 : index
    %484 = vector.load %arg2[%c3_671, %c0_672, %c2_673, %c6_674] : memref<9x1x8x128xf32, #tpu.memory_space<vmem>>, vector<1x1x6x122xf32>
    %485 = vector.shape_cast %484 : vector<1x1x6x122xf32> to vector<1x6x122xf32>
    %486 = arith.mulf %483, %485 : vector<1x6x122xf32>
    %c4_675 = arith.constant 4 : index
    %c0_676 = arith.constant 0 : index
    %c2_677 = arith.constant 2 : index
    %c0_678 = arith.constant 0 : index
    %487 = vector.load %arg1[%c4_675, %c0_676, %c2_677, %c0_678] : memref<9x1x8x128xf32, #tpu.memory_space<vmem>>, vector<1x1x6x122xf32>
    %488 = vector.shape_cast %487 : vector<1x1x6x122xf32> to vector<1x6x122xf32>
    %c4_679 = arith.constant 4 : index
    %c0_680 = arith.constant 0 : index
    %c2_681 = arith.constant 2 : index
    %c0_682 = arith.constant 0 : index
    %489 = vector.load %arg2[%c4_679, %c0_680, %c2_681, %c0_682] : memref<9x1x8x128xf32, #tpu.memory_space<vmem>>, vector<1x1x6x122xf32>
    %490 = vector.shape_cast %489 : vector<1x1x6x122xf32> to vector<1x6x122xf32>
    %491 = arith.mulf %488, %490 : vector<1x6x122xf32>
    %492 = arith.addf %486, %491 : vector<1x6x122xf32>
    %c6_683 = arith.constant 6 : index
    %c0_684 = arith.constant 0 : index
    %c0_685 = arith.constant 0 : index
    %c6_686 = arith.constant 6 : index
    %493 = vector.load %arg1[%c6_683, %c0_684, %c0_685, %c6_686] : memref<9x1x8x128xf32, #tpu.memory_space<vmem>>, vector<1x1x6x122xf32>
    %494 = vector.shape_cast %493 : vector<1x1x6x122xf32> to vector<1x6x122xf32>
    %c6_687 = arith.constant 6 : index
    %c0_688 = arith.constant 0 : index
    %c0_689 = arith.constant 0 : index
    %c6_690 = arith.constant 6 : index
    %495 = vector.load %arg2[%c6_687, %c0_688, %c0_689, %c6_690] : memref<9x1x8x128xf32, #tpu.memory_space<vmem>>, vector<1x1x6x122xf32>
    %496 = vector.shape_cast %495 : vector<1x1x6x122xf32> to vector<1x6x122xf32>
    %497 = arith.mulf %494, %496 : vector<1x6x122xf32>
    %498 = arith.addf %492, %497 : vector<1x6x122xf32>
    %c7_691 = arith.constant 7 : index
    %c0_692 = arith.constant 0 : index
    %c0_693 = arith.constant 0 : index
    %c0_694 = arith.constant 0 : index
    %499 = vector.load %arg1[%c7_691, %c0_692, %c0_693, %c0_694] : memref<9x1x8x128xf32, #tpu.memory_space<vmem>>, vector<1x1x6x122xf32>
    %500 = vector.shape_cast %499 : vector<1x1x6x122xf32> to vector<1x6x122xf32>
    %c7_695 = arith.constant 7 : index
    %c0_696 = arith.constant 0 : index
    %c0_697 = arith.constant 0 : index
    %c0_698 = arith.constant 0 : index
    %501 = vector.load %arg2[%c7_695, %c0_696, %c0_697, %c0_698] : memref<9x1x8x128xf32, #tpu.memory_space<vmem>>, vector<1x1x6x122xf32>
    %502 = vector.shape_cast %501 : vector<1x1x6x122xf32> to vector<1x6x122xf32>
    %503 = arith.mulf %500, %502 : vector<1x6x122xf32>
    %504 = arith.addf %498, %503 : vector<1x6x122xf32>
    %c6_699 = arith.constant 6 : index
    %c0_700 = arith.constant 0 : index
    %c0_701 = arith.constant 0 : index
    %c6_702 = arith.constant 6 : index
    %505 = vector.load %arg3[%c6_699, %c0_700, %c0_701, %c6_702] : memref<9x1x8x128xf32, #tpu.memory_space<vmem>>, vector<1x1x6x122xf32>
    %506 = vector.shape_cast %505 : vector<1x1x6x122xf32> to vector<1x6x122xf32>
    %507 = vector.shape_cast %504 : vector<1x6x122xf32> to vector<1x1x6x122xf32>
    tpu.vector_store %arg3[%c6_699, %c0_700, %c0_701, %c6_702], %507 {strides = array<i32>} : memref<9x1x8x128xf32, #tpu.memory_space<vmem>>, vector<1x1x6x122xf32>,
    %c6_703 = arith.constant 6 : index
    %c0_704 = arith.constant 0 : index
    %c6_705 = arith.constant 6 : index
    %c0_706 = arith.constant 0 : index
    %508 = vector.load %arg1[%c6_703, %c0_704, %c6_705, %c0_706] : memref<9x1x8x128xf32, #tpu.memory_space<vmem>>, vector<1x1x2x6xf32>
    %509 = vector.shape_cast %508 : vector<1x1x2x6xf32> to vector<1x2x6xf32>
    %c6_707 = arith.constant 6 : index
    %c0_708 = arith.constant 0 : index
    %c6_709 = arith.constant 6 : index
    %c0_710 = arith.constant 0 : index
    %510 = vector.load %arg2[%c6_707, %c0_708, %c6_709, %c0_710] : memref<9x1x8x128xf32, #tpu.memory_space<vmem>>, vector<1x1x2x6xf32>
    %511 = vector.shape_cast %510 : vector<1x1x2x6xf32> to vector<1x2x6xf32>
    %512 = arith.mulf %509, %511 : vector<1x2x6xf32>
    %c6_711 = arith.constant 6 : index
    %c0_712 = arith.constant 0 : index
    %c6_713 = arith.constant 6 : index
    %c0_714 = arith.constant 0 : index
    %513 = vector.load %arg3[%c6_711, %c0_712, %c6_713, %c0_714] : memref<9x1x8x128xf32, #tpu.memory_space<vmem>>, vector<1x1x2x6xf32>
    %514 = vector.shape_cast %513 : vector<1x1x2x6xf32> to vector<1x2x6xf32>
    %515 = vector.shape_cast %512 : vector<1x2x6xf32> to vector<1x1x2x6xf32>
    tpu.vector_store %arg3[%c6_711, %c0_712, %c6_713, %c0_714], %515 {strides = array<i32>} : memref<9x1x8x128xf32, #tpu.memory_space<vmem>>, vector<1x1x2x6xf32>,
    %c6_715 = arith.constant 6 : index
    %c0_716 = arith.constant 0 : index
    %c6_717 = arith.constant 6 : index
    %c6_718 = arith.constant 6 : index
    %516 = vector.load %arg1[%c6_715, %c0_716, %c6_717, %c6_718] : memref<9x1x8x128xf32, #tpu.memory_space<vmem>>, vector<1x1x2x122xf32>
    %517 = vector.shape_cast %516 : vector<1x1x2x122xf32> to vector<1x2x122xf32>
    %c6_719 = arith.constant 6 : index
    %c0_720 = arith.constant 0 : index
    %c6_721 = arith.constant 6 : index
    %c6_722 = arith.constant 6 : index
    %518 = vector.load %arg2[%c6_719, %c0_720, %c6_721, %c6_722] : memref<9x1x8x128xf32, #tpu.memory_space<vmem>>, vector<1x1x2x122xf32>
    %519 = vector.shape_cast %518 : vector<1x1x2x122xf32> to vector<1x2x122xf32>
    %520 = arith.mulf %517, %519 : vector<1x2x122xf32>
    %c7_723 = arith.constant 7 : index
    %c0_724 = arith.constant 0 : index
    %c6_725 = arith.constant 6 : index
    %c0_726 = arith.constant 0 : index
    %521 = vector.load %arg1[%c7_723, %c0_724, %c6_725, %c0_726] : memref<9x1x8x128xf32, #tpu.memory_space<vmem>>, vector<1x1x2x122xf32>
    %522 = vector.shape_cast %521 : vector<1x1x2x122xf32> to vector<1x2x122xf32>
    %c7_727 = arith.constant 7 : index
    %c0_728 = arith.constant 0 : index
    %c6_729 = arith.constant 6 : index
    %c0_730 = arith.constant 0 : index
    %523 = vector.load %arg2[%c7_727, %c0_728, %c6_729, %c0_730] : memref<9x1x8x128xf32, #tpu.memory_space<vmem>>, vector<1x1x2x122xf32>
    %524 = vector.shape_cast %523 : vector<1x1x2x122xf32> to vector<1x2x122xf32>
    %525 = arith.mulf %522, %524 : vector<1x2x122xf32>
    %526 = arith.addf %520, %525 : vector<1x2x122xf32>
    %c6_731 = arith.constant 6 : index
    %c0_732 = arith.constant 0 : index
    %c6_733 = arith.constant 6 : index
    %c6_734 = arith.constant 6 : index
    %527 = vector.load %arg3[%c6_731, %c0_732, %c6_733, %c6_734] : memref<9x1x8x128xf32, #tpu.memory_space<vmem>>, vector<1x1x2x122xf32>
    %528 = vector.shape_cast %527 : vector<1x1x2x122xf32> to vector<1x2x122xf32>
    %529 = vector.shape_cast %526 : vector<1x2x122xf32> to vector<1x1x2x122xf32>
    tpu.vector_store %arg3[%c6_731, %c0_732, %c6_733, %c6_734], %529 {strides = array<i32>} : memref<9x1x8x128xf32, #tpu.memory_space<vmem>>, vector<1x1x2x122xf32>,
    %c3_735 = arith.constant 3 : index
    %c0_736 = arith.constant 0 : index
    %c2_737 = arith.constant 2 : index
    %c6_738 = arith.constant 6 : index
    %530 = vector.load %arg1[%c3_735, %c0_736, %c2_737, %c6_738] : memref<9x1x8x128xf32, #tpu.memory_space<vmem>>, vector<1x1x6x2xf32>
    %531 = vector.shape_cast %530 : vector<1x1x6x2xf32> to vector<1x6x2xf32>
    %c3_739 = arith.constant 3 : index
    %c0_740 = arith.constant 0 : index
    %c2_741 = arith.constant 2 : index
    %c6_742 = arith.constant 6 : index
    %532 = vector.load %arg2[%c3_739, %c0_740, %c2_741, %c6_742] : memref<9x1x8x128xf32, #tpu.memory_space<vmem>>, vector<1x1x6x2xf32>
    %533 = vector.shape_cast %532 : vector<1x1x6x2xf32> to vector<1x6x2xf32>
    %534 = arith.mulf %531, %533 : vector<1x6x2xf32>
    %c4_743 = arith.constant 4 : index
    %c0_744 = arith.constant 0 : index
    %c2_745 = arith.constant 2 : index
    %c0_746 = arith.constant 0 : index
    %535 = vector.load %arg1[%c4_743, %c0_744, %c2_745, %c0_746] : memref<9x1x8x128xf32, #tpu.memory_space<vmem>>, vector<1x1x6x2xf32>
    %536 = vector.shape_cast %535 : vector<1x1x6x2xf32> to vector<1x6x2xf32>
    %c4_747 = arith.constant 4 : index
    %c0_748 = arith.constant 0 : index
    %c2_749 = arith.constant 2 : index
    %c0_750 = arith.constant 0 : index
    %537 = vector.load %arg2[%c4_747, %c0_748, %c2_749, %c0_750] : memref<9x1x8x128xf32, #tpu.memory_space<vmem>>, vector<1x1x6x2xf32>
    %538 = vector.shape_cast %537 : vector<1x1x6x2xf32> to vector<1x6x2xf32>
    %539 = arith.mulf %536, %538 : vector<1x6x2xf32>
    %540 = arith.addf %534, %539 : vector<1x6x2xf32>
    %c6_751 = arith.constant 6 : index
    %c0_752 = arith.constant 0 : index
    %c0_753 = arith.constant 0 : index
    %c6_754 = arith.constant 6 : index
    %541 = vector.load %arg1[%c6_751, %c0_752, %c0_753, %c6_754] : memref<9x1x8x128xf32, #tpu.memory_space<vmem>>, vector<1x1x6x2xf32>
    %542 = vector.shape_cast %541 : vector<1x1x6x2xf32> to vector<1x6x2xf32>
    %c6_755 = arith.constant 6 : index
    %c0_756 = arith.constant 0 : index
    %c0_757 = arith.constant 0 : index
    %c6_758 = arith.constant 6 : index
    %543 = vector.load %arg2[%c6_755, %c0_756, %c0_757, %c6_758] : memref<9x1x8x128xf32, #tpu.memory_space<vmem>>, vector<1x1x6x2xf32>
    %544 = vector.shape_cast %543 : vector<1x1x6x2xf32> to vector<1x6x2xf32>
    %545 = arith.mulf %542, %544 : vector<1x6x2xf32>
    %546 = arith.addf %540, %545 : vector<1x6x2xf32>
    %c7_759 = arith.constant 7 : index
    %c0_760 = arith.constant 0 : index
    %c0_761 = arith.constant 0 : index
    %c0_762 = arith.constant 0 : index
    %547 = vector.load %arg1[%c7_759, %c0_760, %c0_761, %c0_762] : memref<9x1x8x128xf32, #tpu.memory_space<vmem>>, vector<1x1x6x2xf32>
    %548 = vector.shape_cast %547 : vector<1x1x6x2xf32> to vector<1x6x2xf32>
    %c7_763 = arith.constant 7 : index
    %c0_764 = arith.constant 0 : index
    %c0_765 = arith.constant 0 : index
    %c0_766 = arith.constant 0 : index
    %549 = vector.load %arg2[%c7_763, %c0_764, %c0_765, %c0_766] : memref<9x1x8x128xf32, #tpu.memory_space<vmem>>, vector<1x1x6x2xf32>
    %550 = vector.shape_cast %549 : vector<1x1x6x2xf32> to vector<1x6x2xf32>
    %551 = arith.mulf %548, %550 : vector<1x6x2xf32>
    %552 = arith.addf %546, %551 : vector<1x6x2xf32>
    %c7_767 = arith.constant 7 : index
    %c0_768 = arith.constant 0 : index
    %c0_769 = arith.constant 0 : index
    %c0_770 = arith.constant 0 : index
    %553 = vector.load %arg3[%c7_767, %c0_768, %c0_769, %c0_770] : memref<9x1x8x128xf32, #tpu.memory_space<vmem>>, vector<1x1x6x2xf32>
    %554 = vector.shape_cast %553 : vector<1x1x6x2xf32> to vector<1x6x2xf32>
    %555 = vector.shape_cast %552 : vector<1x6x2xf32> to vector<1x1x6x2xf32>
    tpu.vector_store %arg3[%c7_767, %c0_768, %c0_769, %c0_770], %555 {strides = array<i32>} : memref<9x1x8x128xf32, #tpu.memory_space<vmem>>, vector<1x1x6x2xf32>,
    %c4_771 = arith.constant 4 : index
    %c0_772 = arith.constant 0 : index
    %c2_773 = arith.constant 2 : index
    %c2_774 = arith.constant 2 : index
    %556 = vector.load %arg1[%c4_771, %c0_772, %c2_773, %c2_774] : memref<9x1x8x128xf32, #tpu.memory_space<vmem>>, vector<1x1x6x126xf32>
    %557 = vector.shape_cast %556 : vector<1x1x6x126xf32> to vector<1x6x126xf32>
    %c4_775 = arith.constant 4 : index
    %c0_776 = arith.constant 0 : index
    %c2_777 = arith.constant 2 : index
    %c2_778 = arith.constant 2 : index
    %558 = vector.load %arg2[%c4_775, %c0_776, %c2_777, %c2_778] : memref<9x1x8x128xf32, #tpu.memory_space<vmem>>, vector<1x1x6x126xf32>
    %559 = vector.shape_cast %558 : vector<1x1x6x126xf32> to vector<1x6x126xf32>
    %560 = arith.mulf %557, %559 : vector<1x6x126xf32>
    %c5_779 = arith.constant 5 : index
    %c0_780 = arith.constant 0 : index
    %c2_781 = arith.constant 2 : index
    %c0_782 = arith.constant 0 : index
    %561 = vector.load %arg1[%c5_779, %c0_780, %c2_781, %c0_782] : memref<9x1x8x128xf32, #tpu.memory_space<vmem>>, vector<1x1x6x126xf32>
    %562 = vector.shape_cast %561 : vector<1x1x6x126xf32> to vector<1x6x126xf32>
    %c5_783 = arith.constant 5 : index
    %c0_784 = arith.constant 0 : index
    %c2_785 = arith.constant 2 : index
    %c0_786 = arith.constant 0 : index
    %563 = vector.load %arg2[%c5_783, %c0_784, %c2_785, %c0_786] : memref<9x1x8x128xf32, #tpu.memory_space<vmem>>, vector<1x1x6x126xf32>
    %564 = vector.shape_cast %563 : vector<1x1x6x126xf32> to vector<1x6x126xf32>
    %565 = arith.mulf %562, %564 : vector<1x6x126xf32>
    %566 = arith.addf %560, %565 : vector<1x6x126xf32>
    %c7_787 = arith.constant 7 : index
    %c0_788 = arith.constant 0 : index
    %c0_789 = arith.constant 0 : index
    %c2_790 = arith.constant 2 : index
    %567 = vector.load %arg1[%c7_787, %c0_788, %c0_789, %c2_790] : memref<9x1x8x128xf32, #tpu.memory_space<vmem>>, vector<1x1x6x126xf32>
    %568 = vector.shape_cast %567 : vector<1x1x6x126xf32> to vector<1x6x126xf32>
    %c7_791 = arith.constant 7 : index
    %c0_792 = arith.constant 0 : index
    %c0_793 = arith.constant 0 : index
    %c2_794 = arith.constant 2 : index
    %569 = vector.load %arg2[%c7_791, %c0_792, %c0_793, %c2_794] : memref<9x1x8x128xf32, #tpu.memory_space<vmem>>, vector<1x1x6x126xf32>
    %570 = vector.shape_cast %569 : vector<1x1x6x126xf32> to vector<1x6x126xf32>
    %571 = arith.mulf %568, %570 : vector<1x6x126xf32>
    %572 = arith.addf %566, %571 : vector<1x6x126xf32>
    %c8_795 = arith.constant 8 : index
    %c0_796 = arith.constant 0 : index
    %c0_797 = arith.constant 0 : index
    %c0_798 = arith.constant 0 : index
    %573 = vector.load %arg1[%c8_795, %c0_796, %c0_797, %c0_798] : memref<9x1x8x128xf32, #tpu.memory_space<vmem>>, vector<1x1x6x126xf32>
    %574 = vector.shape_cast %573 : vector<1x1x6x126xf32> to vector<1x6x126xf32>
    %c8_799 = arith.constant 8 : index
    %c0_800 = arith.constant 0 : index
    %c0_801 = arith.constant 0 : index
    %c0_802 = arith.constant 0 : index
    %575 = vector.load %arg2[%c8_799, %c0_800, %c0_801, %c0_802] : memref<9x1x8x128xf32, #tpu.memory_space<vmem>>, vector<1x1x6x126xf32>
    %576 = vector.shape_cast %575 : vector<1x1x6x126xf32> to vector<1x6x126xf32>
    %577 = arith.mulf %574, %576 : vector<1x6x126xf32>
    %578 = arith.addf %572, %577 : vector<1x6x126xf32>
    %c7_803 = arith.constant 7 : index
    %c0_804 = arith.constant 0 : index
    %c0_805 = arith.constant 0 : index
    %c2_806 = arith.constant 2 : index
    %579 = vector.load %arg3[%c7_803, %c0_804, %c0_805, %c2_806] : memref<9x1x8x128xf32, #tpu.memory_space<vmem>>, vector<1x1x6x126xf32>
    %580 = vector.shape_cast %579 : vector<1x1x6x126xf32> to vector<1x6x126xf32>
    %581 = vector.shape_cast %578 : vector<1x6x126xf32> to vector<1x1x6x126xf32>
    tpu.vector_store %arg3[%c7_803, %c0_804, %c0_805, %c2_806], %581 {strides = array<i32>} : memref<9x1x8x128xf32, #tpu.memory_space<vmem>>, vector<1x1x6x126xf32>,
    %c6_807 = arith.constant 6 : index
    %c0_808 = arith.constant 0 : index
    %c6_809 = arith.constant 6 : index
    %c6_810 = arith.constant 6 : index
    %582 = vector.load %arg1[%c6_807, %c0_808, %c6_809, %c6_810] : memref<9x1x8x128xf32, #tpu.memory_space<vmem>>, vector<1x1x2x2xf32>
    %583 = vector.shape_cast %582 : vector<1x1x2x2xf32> to vector<1x2x2xf32>
    %c6_811 = arith.constant 6 : index
    %c0_812 = arith.constant 0 : index
    %c6_813 = arith.constant 6 : index
    %c6_814 = arith.constant 6 : index
    %584 = vector.load %arg2[%c6_811, %c0_812, %c6_813, %c6_814] : memref<9x1x8x128xf32, #tpu.memory_space<vmem>>, vector<1x1x2x2xf32>
    %585 = vector.shape_cast %584 : vector<1x1x2x2xf32> to vector<1x2x2xf32>
    %586 = arith.mulf %583, %585 : vector<1x2x2xf32>
    %c7_815 = arith.constant 7 : index
    %c0_816 = arith.constant 0 : index
    %c6_817 = arith.constant 6 : index
    %c0_818 = arith.constant 0 : index
    %587 = vector.load %arg1[%c7_815, %c0_816, %c6_817, %c0_818] : memref<9x1x8x128xf32, #tpu.memory_space<vmem>>, vector<1x1x2x2xf32>
    %588 = vector.shape_cast %587 : vector<1x1x2x2xf32> to vector<1x2x2xf32>
    %c7_819 = arith.constant 7 : index
    %c0_820 = arith.constant 0 : index
    %c6_821 = arith.constant 6 : index
    %c0_822 = arith.constant 0 : index
    %589 = vector.load %arg2[%c7_819, %c0_820, %c6_821, %c0_822] : memref<9x1x8x128xf32, #tpu.memory_space<vmem>>, vector<1x1x2x2xf32>
    %590 = vector.shape_cast %589 : vector<1x1x2x2xf32> to vector<1x2x2xf32>
    %591 = arith.mulf %588, %590 : vector<1x2x2xf32>
    %592 = arith.addf %586, %591 : vector<1x2x2xf32>
    %c7_823 = arith.constant 7 : index
    %c0_824 = arith.constant 0 : index
    %c6_825 = arith.constant 6 : index
    %c0_826 = arith.constant 0 : index
    %593 = vector.load %arg3[%c7_823, %c0_824, %c6_825, %c0_826] : memref<9x1x8x128xf32, #tpu.memory_space<vmem>>, vector<1x1x2x2xf32>
    %594 = vector.shape_cast %593 : vector<1x1x2x2xf32> to vector<1x2x2xf32>
    %595 = vector.shape_cast %592 : vector<1x2x2xf32> to vector<1x1x2x2xf32>
    tpu.vector_store %arg3[%c7_823, %c0_824, %c6_825, %c0_826], %595 {strides = array<i32>} : memref<9x1x8x128xf32, #tpu.memory_space<vmem>>, vector<1x1x2x2xf32>,
    %c7_827 = arith.constant 7 : index
    %c0_828 = arith.constant 0 : index
    %c6_829 = arith.constant 6 : index
    %c2_830 = arith.constant 2 : index
    %596 = vector.load %arg1[%c7_827, %c0_828, %c6_829, %c2_830] : memref<9x1x8x128xf32, #tpu.memory_space<vmem>>, vector<1x1x2x126xf32>
    %597 = vector.shape_cast %596 : vector<1x1x2x126xf32> to vector<1x2x126xf32>
    %c7_831 = arith.constant 7 : index
    %c0_832 = arith.constant 0 : index
    %c6_833 = arith.constant 6 : index
    %c2_834 = arith.constant 2 : index
    %598 = vector.load %arg2[%c7_831, %c0_832, %c6_833, %c2_834] : memref<9x1x8x128xf32, #tpu.memory_space<vmem>>, vector<1x1x2x126xf32>
    %599 = vector.shape_cast %598 : vector<1x1x2x126xf32> to vector<1x2x126xf32>
    %600 = arith.mulf %597, %599 : vector<1x2x126xf32>
    %c8_835 = arith.constant 8 : index
    %c0_836 = arith.constant 0 : index
    %c6_837 = arith.constant 6 : index
    %c0_838 = arith.constant 0 : index
    %601 = vector.load %arg1[%c8_835, %c0_836, %c6_837, %c0_838] : memref<9x1x8x128xf32, #tpu.memory_space<vmem>>, vector<1x1x2x126xf32>
    %602 = vector.shape_cast %601 : vector<1x1x2x126xf32> to vector<1x2x126xf32>
    %c8_839 = arith.constant 8 : index
    %c0_840 = arith.constant 0 : index
    %c6_841 = arith.constant 6 : index
    %c0_842 = arith.constant 0 : index
    %603 = vector.load %arg2[%c8_839, %c0_840, %c6_841, %c0_842] : memref<9x1x8x128xf32, #tpu.memory_space<vmem>>, vector<1x1x2x126xf32>
    %604 = vector.shape_cast %603 : vector<1x1x2x126xf32> to vector<1x2x126xf32>
    %605 = arith.mulf %602, %604 : vector<1x2x126xf32>
    %606 = arith.addf %600, %605 : vector<1x2x126xf32>
    %c7_843 = arith.constant 7 : index
    %c0_844 = arith.constant 0 : index
    %c6_845 = arith.constant 6 : index
    %c2_846 = arith.constant 2 : index
    %607 = vector.load %arg3[%c7_843, %c0_844, %c6_845, %c2_846] : memref<9x1x8x128xf32, #tpu.memory_space<vmem>>, vector<1x1x2x126xf32>
    %608 = vector.shape_cast %607 : vector<1x1x2x126xf32> to vector<1x2x126xf32>
    %609 = vector.shape_cast %606 : vector<1x2x126xf32> to vector<1x1x2x126xf32>
    tpu.vector_store %arg3[%c7_843, %c0_844, %c6_845, %c2_846], %609 {strides = array<i32>} : memref<9x1x8x128xf32, #tpu.memory_space<vmem>>, vector<1x1x2x126xf32>,
    %c4_847 = arith.constant 4 : index
    %c0_848 = arith.constant 0 : index
    %c2_849 = arith.constant 2 : index
    %c2_850 = arith.constant 2 : index
    %610 = vector.load %arg1[%c4_847, %c0_848, %c2_849, %c2_850] : memref<9x1x8x128xf32, #tpu.memory_space<vmem>>, vector<1x1x6x6xf32>
    %611 = vector.shape_cast %610 : vector<1x1x6x6xf32> to vector<1x6x6xf32>
    %c4_851 = arith.constant 4 : index
    %c0_852 = arith.constant 0 : index
    %c2_853 = arith.constant 2 : index
    %c2_854 = arith.constant 2 : index
    %612 = vector.load %arg2[%c4_851, %c0_852, %c2_853, %c2_854] : memref<9x1x8x128xf32, #tpu.memory_space<vmem>>, vector<1x1x6x6xf32>
    %613 = vector.shape_cast %612 : vector<1x1x6x6xf32> to vector<1x6x6xf32>
    %614 = arith.mulf %611, %613 : vector<1x6x6xf32>
    %c5_855 = arith.constant 5 : index
    %c0_856 = arith.constant 0 : index
    %c2_857 = arith.constant 2 : index
    %c0_858 = arith.constant 0 : index
    %615 = vector.load %arg1[%c5_855, %c0_856, %c2_857, %c0_858] : memref<9x1x8x128xf32, #tpu.memory_space<vmem>>, vector<1x1x6x6xf32>
    %616 = vector.shape_cast %615 : vector<1x1x6x6xf32> to vector<1x6x6xf32>
    %c5_859 = arith.constant 5 : index
    %c0_860 = arith.constant 0 : index
    %c2_861 = arith.constant 2 : index
    %c0_862 = arith.constant 0 : index
    %617 = vector.load %arg2[%c5_859, %c0_860, %c2_861, %c0_862] : memref<9x1x8x128xf32, #tpu.memory_space<vmem>>, vector<1x1x6x6xf32>
    %618 = vector.shape_cast %617 : vector<1x1x6x6xf32> to vector<1x6x6xf32>
    %619 = arith.mulf %616, %618 : vector<1x6x6xf32>
    %620 = arith.addf %614, %619 : vector<1x6x6xf32>
    %c7_863 = arith.constant 7 : index
    %c0_864 = arith.constant 0 : index
    %c0_865 = arith.constant 0 : index
    %c2_866 = arith.constant 2 : index
    %621 = vector.load %arg1[%c7_863, %c0_864, %c0_865, %c2_866] : memref<9x1x8x128xf32, #tpu.memory_space<vmem>>, vector<1x1x6x6xf32>
    %622 = vector.shape_cast %621 : vector<1x1x6x6xf32> to vector<1x6x6xf32>
    %c7_867 = arith.constant 7 : index
    %c0_868 = arith.constant 0 : index
    %c0_869 = arith.constant 0 : index
    %c2_870 = arith.constant 2 : index
    %623 = vector.load %arg2[%c7_867, %c0_868, %c0_869, %c2_870] : memref<9x1x8x128xf32, #tpu.memory_space<vmem>>, vector<1x1x6x6xf32>
    %624 = vector.shape_cast %623 : vector<1x1x6x6xf32> to vector<1x6x6xf32>
    %625 = arith.mulf %622, %624 : vector<1x6x6xf32>
    %626 = arith.addf %620, %625 : vector<1x6x6xf32>
    %c8_871 = arith.constant 8 : index
    %c0_872 = arith.constant 0 : index
    %c0_873 = arith.constant 0 : index
    %c0_874 = arith.constant 0 : index
    %627 = vector.load %arg1[%c8_871, %c0_872, %c0_873, %c0_874] : memref<9x1x8x128xf32, #tpu.memory_space<vmem>>, vector<1x1x6x6xf32>
    %628 = vector.shape_cast %627 : vector<1x1x6x6xf32> to vector<1x6x6xf32>
    %c8_875 = arith.constant 8 : index
    %c0_876 = arith.constant 0 : index
    %c0_877 = arith.constant 0 : index
    %c0_878 = arith.constant 0 : index
    %629 = vector.load %arg2[%c8_875, %c0_876, %c0_877, %c0_878] : memref<9x1x8x128xf32, #tpu.memory_space<vmem>>, vector<1x1x6x6xf32>
    %630 = vector.shape_cast %629 : vector<1x1x6x6xf32> to vector<1x6x6xf32>
    %631 = arith.mulf %628, %630 : vector<1x6x6xf32>
    %632 = arith.addf %626, %631 : vector<1x6x6xf32>
    %c8_879 = arith.constant 8 : index
    %c0_880 = arith.constant 0 : index
    %c0_881 = arith.constant 0 : index
    %c0_882 = arith.constant 0 : index
    %633 = vector.load %arg3[%c8_879, %c0_880, %c0_881, %c0_882] : memref<9x1x8x128xf32, #tpu.memory_space<vmem>>, vector<1x1x6x6xf32>
    %634 = vector.shape_cast %633 : vector<1x1x6x6xf32> to vector<1x6x6xf32>
    %635 = vector.shape_cast %632 : vector<1x6x6xf32> to vector<1x1x6x6xf32>
    tpu.vector_store %arg3[%c8_879, %c0_880, %c0_881, %c0_882], %635 {strides = array<i32>} : memref<9x1x8x128xf32, #tpu.memory_space<vmem>>, vector<1x1x6x6xf32>,
    %c5_883 = arith.constant 5 : index
    %c0_884 = arith.constant 0 : index
    %c2_885 = arith.constant 2 : index
    %c6_886 = arith.constant 6 : index
    %636 = vector.load %arg1[%c5_883, %c0_884, %c2_885, %c6_886] : memref<9x1x8x128xf32, #tpu.memory_space<vmem>>, vector<1x1x6x122xf32>
    %637 = vector.shape_cast %636 : vector<1x1x6x122xf32> to vector<1x6x122xf32>
    %c5_887 = arith.constant 5 : index
    %c0_888 = arith.constant 0 : index
    %c2_889 = arith.constant 2 : index
    %c6_890 = arith.constant 6 : index
    %638 = vector.load %arg2[%c5_887, %c0_888, %c2_889, %c6_890] : memref<9x1x8x128xf32, #tpu.memory_space<vmem>>, vector<1x1x6x122xf32>
    %639 = vector.shape_cast %638 : vector<1x1x6x122xf32> to vector<1x6x122xf32>
    %640 = arith.mulf %637, %639 : vector<1x6x122xf32>
    %c8_891 = arith.constant 8 : index
    %c0_892 = arith.constant 0 : index
    %c0_893 = arith.constant 0 : index
    %c6_894 = arith.constant 6 : index
    %641 = vector.load %arg1[%c8_891, %c0_892, %c0_893, %c6_894] : memref<9x1x8x128xf32, #tpu.memory_space<vmem>>, vector<1x1x6x122xf32>
    %642 = vector.shape_cast %641 : vector<1x1x6x122xf32> to vector<1x6x122xf32>
    %c8_895 = arith.constant 8 : index
    %c0_896 = arith.constant 0 : index
    %c0_897 = arith.constant 0 : index
    %c6_898 = arith.constant 6 : index
    %643 = vector.load %arg2[%c8_895, %c0_896, %c0_897, %c6_898] : memref<9x1x8x128xf32, #tpu.memory_space<vmem>>, vector<1x1x6x122xf32>
    %644 = vector.shape_cast %643 : vector<1x1x6x122xf32> to vector<1x6x122xf32>
    %645 = arith.mulf %642, %644 : vector<1x6x122xf32>
    %646 = arith.addf %640, %645 : vector<1x6x122xf32>
    %c8_899 = arith.constant 8 : index
    %c0_900 = arith.constant 0 : index
    %c0_901 = arith.constant 0 : index
    %c6_902 = arith.constant 6 : index
    %647 = vector.load %arg3[%c8_899, %c0_900, %c0_901, %c6_902] : memref<9x1x8x128xf32, #tpu.memory_space<vmem>>, vector<1x1x6x122xf32>
    %648 = vector.shape_cast %647 : vector<1x1x6x122xf32> to vector<1x6x122xf32>
    %649 = vector.shape_cast %646 : vector<1x6x122xf32> to vector<1x1x6x122xf32>
    tpu.vector_store %arg3[%c8_899, %c0_900, %c0_901, %c6_902], %649 {strides = array<i32>} : memref<9x1x8x128xf32, #tpu.memory_space<vmem>>, vector<1x1x6x122xf32>,
    %c7_903 = arith.constant 7 : index
    %c0_904 = arith.constant 0 : index
    %c6_905 = arith.constant 6 : index
    %c2_906 = arith.constant 2 : index
    %650 = vector.load %arg1[%c7_903, %c0_904, %c6_905, %c2_906] : memref<9x1x8x128xf32, #tpu.memory_space<vmem>>, vector<1x1x2x6xf32>
    %651 = vector.shape_cast %650 : vector<1x1x2x6xf32> to vector<1x2x6xf32>
    %c7_907 = arith.constant 7 : index
    %c0_908 = arith.constant 0 : index
    %c6_909 = arith.constant 6 : index
    %c2_910 = arith.constant 2 : index
    %652 = vector.load %arg2[%c7_907, %c0_908, %c6_909, %c2_910] : memref<9x1x8x128xf32, #tpu.memory_space<vmem>>, vector<1x1x2x6xf32>
    %653 = vector.shape_cast %652 : vector<1x1x2x6xf32> to vector<1x2x6xf32>
    %654 = arith.mulf %651, %653 : vector<1x2x6xf32>
    %c8_911 = arith.constant 8 : index
    %c0_912 = arith.constant 0 : index
    %c6_913 = arith.constant 6 : index
    %c0_914 = arith.constant 0 : index
    %655 = vector.load %arg1[%c8_911, %c0_912, %c6_913, %c0_914] : memref<9x1x8x128xf32, #tpu.memory_space<vmem>>, vector<1x1x2x6xf32>
    %656 = vector.shape_cast %655 : vector<1x1x2x6xf32> to vector<1x2x6xf32>
    %c8_915 = arith.constant 8 : index
    %c0_916 = arith.constant 0 : index
    %c6_917 = arith.constant 6 : index
    %c0_918 = arith.constant 0 : index
    %657 = vector.load %arg2[%c8_915, %c0_916, %c6_917, %c0_918] : memref<9x1x8x128xf32, #tpu.memory_space<vmem>>, vector<1x1x2x6xf32>
    %658 = vector.shape_cast %657 : vector<1x1x2x6xf32> to vector<1x2x6xf32>
    %659 = arith.mulf %656, %658 : vector<1x2x6xf32>
    %660 = arith.addf %654, %659 : vector<1x2x6xf32>
    %c8_919 = arith.constant 8 : index
    %c0_920 = arith.constant 0 : index
    %c6_921 = arith.constant 6 : index
    %c0_922 = arith.constant 0 : index
    %661 = vector.load %arg3[%c8_919, %c0_920, %c6_921, %c0_922] : memref<9x1x8x128xf32, #tpu.memory_space<vmem>>, vector<1x1x2x6xf32>
    %662 = vector.shape_cast %661 : vector<1x1x2x6xf32> to vector<1x2x6xf32>
    %663 = vector.shape_cast %660 : vector<1x2x6xf32> to vector<1x1x2x6xf32>
    tpu.vector_store %arg3[%c8_919, %c0_920, %c6_921, %c0_922], %663 {strides = array<i32>} : memref<9x1x8x128xf32, #tpu.memory_space<vmem>>, vector<1x1x2x6xf32>,
    %c8_923 = arith.constant 8 : index
    %c0_924 = arith.constant 0 : index
    %c6_925 = arith.constant 6 : index
    %c6_926 = arith.constant 6 : index
    %664 = vector.load %arg1[%c8_923, %c0_924, %c6_925, %c6_926] : memref<9x1x8x128xf32, #tpu.memory_space<vmem>>, vector<1x1x2x122xf32>
    %665 = vector.shape_cast %664 : vector<1x1x2x122xf32> to vector<1x2x122xf32>
    %c8_927 = arith.constant 8 : index
    %c0_928 = arith.constant 0 : index
    %c6_929 = arith.constant 6 : index
    %c6_930 = arith.constant 6 : index
    %666 = vector.load %arg2[%c8_927, %c0_928, %c6_929, %c6_930] : memref<9x1x8x128xf32, #tpu.memory_space<vmem>>, vector<1x1x2x122xf32>
    %667 = vector.shape_cast %666 : vector<1x1x2x122xf32> to vector<1x2x122xf32>
    %668 = arith.mulf %665, %667 : vector<1x2x122xf32>
    %c8_931 = arith.constant 8 : index
    %c0_932 = arith.constant 0 : index
    %c6_933 = arith.constant 6 : index
    %c6_934 = arith.constant 6 : index
    %669 = vector.load %arg3[%c8_931, %c0_932, %c6_933, %c6_934] : memref<9x1x8x128xf32, #tpu.memory_space<vmem>>, vector<1x1x2x122xf32>
    %670 = vector.shape_cast %669 : vector<1x1x2x122xf32> to vector<1x2x122xf32>
    %671 = vector.shape_cast %668 : vector<1x2x122xf32> to vector<1x1x2x122xf32>
    tpu.vector_store %arg3[%c8_931, %c0_932, %c6_933, %c6_934], %671 {strides = array<i32>} : memref<9x1x8x128xf32, #tpu.memory_space<vmem>>, vector<1x1x2x122xf32>,
    return
  }
  func.func @transform_0(%arg0: i32) -> (i32, i32, i32, i32) {
    %c0_i32 = arith.constant 0 : i32
    %c0_i32_0 = arith.constant 0 : i32
    %c0_i32_1 = arith.constant 0 : i32
    %c0_i32_2 = arith.constant 0 : i32
    return %c0_i32, %arg0, %c0_i32_0, %c0_i32_1 : i32, i32, i32, i32
  }
  func.func @transform_1(%arg0: i32) -> (i32, i32, i32, i32) {
    %c0_i32 = arith.constant 0 : i32
    %c0_i32_0 = arith.constant 0 : i32
    %c0_i32_1 = arith.constant 0 : i32
    %c0_i32_2 = arith.constant 0 : i32
    %c0_i32_3 = arith.constant 0 : i32
    return %c0_i32, %c0_i32_0, %c0_i32_1, %c0_i32_2 : i32, i32, i32, i32
  }
  func.func @transform_2(%arg0: i32) -> (i32, i32, i32, i32) {
    %c0_i32 = arith.constant 0 : i32
    %c0_i32_0 = arith.constant 0 : i32
    %c0_i32_1 = arith.constant 0 : i32
    %c0_i32_2 = arith.constant 0 : i32
    return %c0_i32, %arg0, %c0_i32_0, %c0_i32_1 : i32, i32, i32, i32
  }
}

</mosaic_0001>

<bundles_post_ra>
// kernel: run.1
= control target key start
LH: loop header
LB: loop body
LE: loop exit
PB: predicated region body
PF: predicated region fallthrough
CT: control target
= control target key end

     0   :  { %s1269_s9 = smov 0   ;;  %s1271_s10 = smov 0   ;;  %s1906_s0 = inlined_call_operand.vmem [shape: f32[9,3,8,128], index: 0, kind: input, shape index: {}]   ;;  %s1907_s1 = inlined_call_operand.vmem [shape: f32[9,1,8,128], index: 1, kind: input, shape index: {}]   ;;  %s1908_s2 = inlined_call_operand.vmem [shape: f32[9,3,8,128], index: 2, kind: output, shape index: {}]  }
   0x1   :  { %s1273_s11 = smov 0  }
   0x2 LB: > { %s973_s12 = sadd.s32 4294967295, %s1248_s11   ;;  %s1286_s13 = sadd.s32 1, %s1248_s11   ;;  %s1248_s11 = sphi %s1273_s11, %s1912_s11   ;;  %s1244_s10 = sphi %s1271_s10, %s1911_s10   ;;  %s1240_s9 = sphi %s1269_s9, %s1910_s9  }
   0x3   : > { %s16_s14 = ssub.s32 %s1248_s11, %s1286_s13  ;;  %s19_s15 = sadd.s32 1, %s1244_s10 }
   0x4   : > { %p17_p0 = scmp.eq.s32.totalorder %s16_s14, 0  ;;  %p26_p1 = scmp.ne.s32.totalorder %s1244_s10, %s1240_s9 }
   0x5   : > { %p27_p2 = scmp.eq.s32.totalorder %s1248_s11, 0  ;;  %p77_p3 = scmp.eq.s32.totalorder %s973_s12, 2 }
   0x6   : > { %s1297_s16 = scalar_select %p17_p0, %s1244_s10, %s19_s15  }
   0x7   : > { %p28_p4 = por %p27_p2, %p26_p1  ;;  %p1299_p5 = por %p77_p3, %p26_p1 }
   0x8   : > { %p976_p6 = scmp.ge.s32.totalorder %s1248_s11, 3 }
   0xa   : > { %102 = sbr.rel (%p976_p6) target bundleno = 26 (0x1a), region = 20 }
  0x11   : > { %105 = sbr.rel (!%p28_p4) target bundleno = 26 (0x1a), region = 24  ;;  %s107_s18 = sand.u32 (%p28_p4), 1, %s1244_s10  }
  0x12   : > { %s977_s19 = sshll.u32 (%p28_p4), %s1248_s11, 3  ;;  %s1196_s20 = smul.u32 (%p28_p4), 72, %s107_s18 }
  0x13   : > { %s111_s23 = scalar_lea.vmem (%p28_p4), %s1906_s0, %s977_s19 }
  0x14   : > { %v155_v0 = vld [vmem:[%s111_s23] sm:$0xff] (%p28_p4)  ;;  %v157_v1 = vld [vmem:[%s111_s23 + $0x18] sm:$0xff] (%p28_p4)  ;;  %v159_v2 = vld [vmem:[%s111_s23 + $0x30] sm:$0xff] (%p28_p4)  ;;  %s109_s24 = scalar_lea.vmem (%p28_p4), [#allocation2], %s1196_s20 }
  0x15   : > { %v161_v3 = vld [vmem:[%s111_s23 + $0x48] sm:$0xff] (%p28_p4)  ;;  %v163_v4 = vld [vmem:[%s111_s23 + $0x60] sm:$0xff] (%p28_p4)  ;;  %v165_v5 = vld [vmem:[%s111_s23 + $0x78] sm:$0xff] (%p28_p4)  ;;  %156 = vst [vmem:[%s109_s24] sm:$0xff] (%p28_p4), %v155_v0 }
  0x16   : > { %158 = vst [vmem:[%s109_s24 + $0x8] sm:$0xff] (%p28_p4), %v157_v1  ;;  %160 = vst [vmem:[%s109_s24 + $0x10] sm:$0xff] (%p28_p4), %v159_v2  ;;  %v167_v6 = vld [vmem:[%s111_s23 + $0x90] sm:$0xff] (%p28_p4)  ;;  %v169_v7 = vld [vmem:[%s111_s23 + $0xa8] sm:$0xff] (%p28_p4) }
  0x17   : > { %162 = vst [vmem:[%s109_s24 + $0x18] sm:$0xff] (%p28_p4), %v161_v3  ;;  %164 = vst [vmem:[%s109_s24 + $0x20] sm:$0xff] (%p28_p4), %v163_v4  ;;  %v171_v8 = vld [vmem:[%s111_s23 + $0xc0] sm:$0xff] (%p28_p4) }
  0x18   : > { %166 = vst [vmem:[%s109_s24 + $0x28] sm:$0xff] %v165_v5  ;;  %168 = vst [vmem:[%s109_s24 + $0x30] sm:$0xff] %v167_v6 }
  0x19   : > { %170 = vst [vmem:[%s109_s24 + $0x38] sm:$0xff] %v169_v7  ;;  %172 = vst [vmem:[%s109_s24 + $0x40] sm:$0xff] %v171_v8 }
  0x1a PF: > { %p978_p7 = scmp.ge.s32.totalorder %s1248_s11, 1  ;;  %p177_p8 = scmp.lt.s32.totalorder %s1248_s11, 4 }
  0x1c   : > { %p178_p9 = pnand %p978_p7, %p177_p8 }
  0x1d   : > { %s184_s25 = sand.u32 (!%p178_p9), 1, %s1240_s9   ;;  %v1060_v9 = vld [vmem:[%s1907_s1 + $0xe] sm:$0x3] (!%p178_p9)  ;;  %v1078_v11 = vld [vmem:[%s1907_s1 + $0x22] sm:$0x3f] (!%p178_p9)  ;;  %s1250_s8 = smov (!%p178_p9), 6  }
  0x1e   : > { %181 = sbr.rel (%p178_p9) target bundleno = 331 (0x14b), region = 62  ;;  %v998_v10 = vld [vmem:[%s1907_s1 + $0xe] sm:$0x3] (!%p178_p9)  ;;  %v1024_v12 = vld [vmem:[%s1907_s1 + $0x16] sm:$0x3] (!%p178_p9)  ;;  %s1251_s19 = smov (!%p178_p9), 2  }
  0x1f   : > { %s1312_s26 = smul.u32 (!%p178_p9), 72, %s184_s25  ;;  %v1110_v21 = vld [vmem:[%s1907_s1 + $0x2a] sm:$0x3f] (!%p178_p9)  ;;  %v1096_v24 = vld [vmem:[%s1907_s1 + $0x16] sm:$0x3] (!%p178_p9)  ;;  %vm207_vm0 = vcmask (!%p178_p9), 46080  }
  0x20   : > { %v1174_v27 = vld [vmem:[%s1907_s1 + $0x2a] sm:$0x3f] (!%p178_p9)  ;;  %v1146_v30 = vld [vmem:[%s1907_s1 + $0x22] sm:$0x3f] (!%p178_p9)  ;;  %v1002_v33 = vld [vmem:[%s1907_s1 + $0x20] sm:$0x3] (!%p178_p9) }
  0x21   : > { %s1327_s7 = scalar_lea.vmem (!%p178_p9), [#allocation2], %s1312_s26  ;;  %v990_v36 = vld [vmem:[%s1907_s1 + $0x8] sm:$0x3f] (!%p178_p9)  ;;  %v1016_v42 = vld [vmem:[%s1907_s1 + $0x10] sm:$0x3f] (!%p178_p9)  ;;  %s1475_s20 = scalar_lea.vmem (!%p178_p9), [#allocation3], %s1312_s26 }
  0x22   : > { %v1059_v13 = vld [vmem:[%s1327_s7 + $0xe] sm:$0x3] (!%p178_p9)  ;;  %v1077_v15 = vld [vmem:[%s1327_s7 + $0x22] sm:$0x3f] (!%p178_p9)  ;;  %v1023_v18 = vld [vmem:[%s1327_s7 + $0x16] sm:$0x3] (!%p178_p9) }
  0x23   : > { %v997_v14 = vld [vmem:[%s1327_s7 + $0xe] sm:$0x3] (!%p178_p9)  ;;  %v482_v16 = vmul.f32 (!%p178_p9), %v1060_v9, %v1059_v13  ;;  %v535_v19 = vmul.f32 (!%p178_p9), %v1078_v11, %v1077_v15  ;;  %v377_v20 = vmul.f32 (!%p178_p9), %v1024_v12, %v1023_v18  ;;  %v1095_v23 = vld [vmem:[%s1327_s7 + $0x16] sm:$0x3] (!%p178_p9)  ;;  %v1145_v29 = vld [vmem:[%s1327_s7 + $0x22] sm:$0x3f] (!%p178_p9) }
  0x24   : > { %v300_v17 = vmul.f32 (!%p178_p9), %v998_v10, %v997_v14  ;;  %v1109_v22 = vld [vmem:[%s1327_s7 + $0x2a] sm:$0x3f] (!%p178_p9)  ;;  %v589_v26 = vmul.f32 (!%p178_p9), %v1096_v24, %v1095_v23  ;;  %v711_v32 = vmul.f32 (!%p178_p9), %v1146_v30, %v1145_v29  ;;  %v1001_v34 = vld [vmem:[%s1327_s7 + $0x20] sm:$0x3] (!%p178_p9)  ;;  %v1027_v39 = vld [vmem:[%s1327_s7 + $0x28] sm:$0x3] (!%p178_p9) }
  0x25   : > { %484 = vrot.lane.b32.xlu1 %v482_v16, %s1250_s8  ;;  %v626_v25 = vmul.f32 %v1110_v21, %v1109_v22  ;;  %v1173_v28 = vld [vmem:[%s1327_s7 + $0x2a] sm:$0x3f]  ;;  %v312_v37 = vmul.f32 %v1002_v33, %v1001_v34  ;;  %v1028_v40 = vld [vmem:[%s1907_s1 + $0x28] sm:$0x3]  ;;  %v1015_v41 = vld [vmem:[%s1327_s7 + $0x10] sm:$0x3f] }
  0x26   : > { %302 = vrot.lane.b32.xlu0 %v300_v17, %s1250_s8  ;;  %v792_v31 = vmul.f32 %v1174_v27, %v1173_v28  ;;  %v989_v35 = vld [vmem:[%s1327_s7 + $0x8] sm:$0x3f]  ;;  %v389_v43 = vmul.f32 %v1028_v40, %v1027_v39  ;;  %v356_v44 = vmul.f32 %v1016_v42, %v1015_v41  ;;  %v1081_v45 = vld [vmem:[%s1327_s7 + $0x38] sm:$0x3f]  ;;  %v1063_v47 = vld [vmem:[%s1327_s7 + $0x20] sm:$0x3] }
  0x27   : > { %v267_v38 = vmul.f32 %v990_v36, %v989_v35  ;;  %v1082_v46 = vld [vmem:[%s1907_s1 + $0x38] sm:$0x3f]  ;;  %v1064_v48 = vld [vmem:[%s1907_s1 + $0x20] sm:$0x3]  ;;  %v1099_v53 = vld [vmem:[%s1327_s7 + $0x28] sm:$0x3] }
  0x28   : > { %v547_v49 = vmul.f32 %v1082_v46, %v1081_v45  ;;  %v494_v50 = vmul.f32 %v1064_v48, %v1063_v47  ;;  %v1113_v51 = vld [vmem:[%s1327_s7 + $0x40] sm:$0x3f]  ;;  %v1163_v57 = vld [vmem:[%s1327_s7 + $0x3e] sm:$0x3]  ;;  %v1149_v59 = vld [vmem:[%s1327_s7 + $0x38] sm:$0x3f] }
  0x29   : > { %537 = vrot.lane.b32.xlu1 %v535_v19, %s1250_s8  ;;  %v1114_v52 = vld [vmem:[%s1907_s1 + $0x40] sm:$0x3f]  ;;  %v1100_v54 = vld [vmem:[%s1907_s1 + $0x28] sm:$0x3]  ;;  %v1164_v58 = vld [vmem:[%s1907_s1 + $0x3e] sm:$0x3] }
  0x2a   : > { %379 = vrot.lane.b32.xlu0 %v377_v20, %s1251_s19  ;;  %v638_v55 = vmul.f32 %v1114_v52, %v1113_v51  ;;  %v601_v56 = vmul.f32 %v1100_v54, %v1099_v53  ;;  %v1150_v60 = vld [vmem:[%s1907_s1 + $0x38] sm:$0x3f]  ;;  %v764_v61 = vmul.f32 %v1164_v58, %v1163_v57  ;;  %v1177_v63 = vld [vmem:[%s1327_s7 + $0x40] sm:$0x3f]  ;;  %v1187_v1 = vld [vmem:[%s1327_s7 + $0x46] sm:$0x3] }
  0x2b   : > { %v723_v62 = vmul.f32 %v1150_v60, %v1149_v59  ;;  %v1178_v0 = vld [vmem:[%s1907_s1 + $0x40] sm:$0x3f]  ;;  %v1188_v2 = vld [vmem:[%s1907_s1 + $0x46] sm:$0x3]  ;;  %v983_v5 = vld [vmem:[%s1327_s7 + $0xe] sm:$0x3] }
  0x2c   : > { %v804_v3 = vmul.f32 %v1178_v0, %v1177_v63  ;;  %v829_v4 = vmul.f32 %v1188_v2, %v1187_v1  ;;  %v984_v6 = vld [vmem:[%s1907_s1 + $0xe] sm:$0x3]  ;;  %v1006_v7 = vld [vmem:[%s1327_s7 + $0x16] sm:$0x3]  ;;  %v1053_v14 = vld [vmem:[%s1907_s1 + $0x22] sm:$0x3f] }
  0x2d   : > { %628 = vrot.lane.b32.xlu1 %v626_v25, %s1251_s19  ;;  %v1007_v8 = vld [vmem:[%s1907_s1 + $0x16] sm:$0x3]  ;;  %v240_v9 = vmul.f32 %v984_v6, %v983_v5  ;;  %v1039_v12 = vld [vmem:[%s1907_s1 + $0xe] sm:$0x3]  ;;  %v1129_v24 = vld [vmem:[%s1907_s1 + $0x22] sm:$0x3f] }
  0x2e   : > { %591 = vrot.lane.b32.xlu0 %v589_v26, %s1251_s19  ;;  %v329_v10 = vmul.f32 %v1007_v8, %v1006_v7  ;;  %v1038_v11 = vld [vmem:[%s1327_s7 + $0xe] sm:$0x3]  ;;  %v1052_v13 = vld [vmem:[%s1327_s7 + $0x22] sm:$0x3f]  ;;  %v1068_v17 = vld [vmem:[%s1327_s7 + $0x16] sm:$0x3] }
  0x2f   : > { %v422_v15 = vmul.f32 %v1039_v12, %v1038_v11  ;;  %v456_v16 = vmul.f32 %v1053_v14, %v1052_v13  ;;  %v1069_v18 = vld [vmem:[%s1907_s1 + $0x16] sm:$0x3]  ;;  %v1087_v20 = vld [vmem:[%s1907_s1 + $0x2a] sm:$0x3f]  ;;  %v205_v27 = vld [vmem:[%s1907_s1] sm:$0x3f] }
  0x30   : > { %v1086_v19 = vld [vmem:[%s1327_s7 + $0x2a] sm:$0x3f]  ;;  %v511_v21 = vmul.f32 %v1069_v18, %v1068_v17  ;;  %v1128_v23 = vld [vmem:[%s1327_s7 + $0x22] sm:$0x3f]  ;;  %v987_v30 = vld [vmem:[%s1327_s7 + $0x20] sm:$0x3] }
  0x31   : > { %794 = vrot.lane.b32.xlu1 %v792_v31, %s1251_s19  ;;  %v563_v22 = vmul.f32 %v1087_v20, %v1086_v19  ;;  %v1154_v25 = vld [vmem:[%s1327_s7 + $0x2a] sm:$0x3f]  ;;  %v204_v31 = vld [vmem:[%s1327_s7] sm:$0x3f]  ;;  %v225_v36 = vld [vmem:[%s1907_s1 + $0x6] sm:$0x3] }
  0x32   : > { %713 = vrot.lane.b32.xlu0 %v711_v32, %s1250_s8  ;;  %v1155_v26 = vld [vmem:[%s1907_s1 + $0x2a] sm:$0x3f]  ;;  %v671_v32 = vmul.f32 %v1129_v24, %v1128_v23  ;;  %v988_v34 = vld [vmem:[%s1907_s1 + $0x20] sm:$0x3]  ;;  %v206_v35 = vmul.f32 %v205_v27, %v204_v31  ;;  %v994_v41 = vld [vmem:[%s1327_s7 + $0x10] sm:$0x3f] }
  0x33   : > { %v979_v28 = vld [vmem:[%s1327_s7 + $0x8] sm:$0x3f]  ;;  %v740_v33 = vmul.f32 %v1155_v26, %v1154_v25  ;;  %v981_v40 = vld [vmem:[%s1327_s7 + $0x18] sm:$0x3]  ;;  %v254_v46 = vmul.f32 %v988_v34, %v987_v30  ;;  %vm233_vm1 = vcmask 41984   ;;  %s1252_s3 = smov 122  }
  0x34   : > { %v980_v29 = vld [vmem:[%s1907_s1 + $0x8] sm:$0x3f]  ;;  %208 = vst.msk [vmem:[%s1475_s20] sm:$0x3f] %vm207_vm0, %v206_v35  ;;  %v995_v42 = vld [vmem:[%s1907_s1 + $0x10] sm:$0x3f] }
  0x35   : > { %314 = vrot.lane.b32.xlu1 %v312_v37, %s1250_s8  ;;  %v982_v37 = vld [vmem:[%s1907_s1 + $0x18] sm:$0x3]  ;;  %v216_v45 = vmul.f32 %v980_v29, %v979_v28  ;;  %v408_v47 = vld [vmem:[%s1327_s7 + $0x6] sm:$0x3]  ;;  %v287_v57 = vmul.f32 %v995_v42, %v994_v41  ;;  %v1048_v60 = vld [vmem:[%s1907_s1 + $0x30] sm:$0x3f] }
  0x36   : > { %269 = vrot.lane.b32.xlu0 %v267_v38, %s1250_s8  ;;  %v224_v38 = vld [vmem:[%s1327_s7 + $0x6] sm:$0x3]  ;;  %v1035_v52 = vld [vmem:[%s1327_s7 + $0x18] sm:$0x3]  ;;  %v1047_v59 = vld [vmem:[%s1327_s7 + $0x30] sm:$0x3f] }
  0x37   : > { %v226_v39 = vmul.f32 %v225_v36, %v224_v38  ;;  %v409_v48 = vld [vmem:[%s1907_s1 + $0x6] sm:$0x3]  ;;  %v1036_v53 = vld [vmem:[%s1907_s1 + $0x18] sm:$0x3]  ;;  %v448_v0 = vmul.f32 %v1048_v60, %v1047_v59  ;;  %v1043_v1 = vld [vmem:[%s1907_s1 + $0x20] sm:$0x3] }
  0x38   : > { %v410_v51 = vmul.f32 %v409_v48, %v408_v47  ;;  %v413_v54 = vmul.f32 %v1036_v53, %v1035_v52  ;;  %v1056_v2 = vld [vmem:[%s1327_s7 + $0x38] sm:$0x3f]  ;;  %v1123_v7 = vld [vmem:[%s1327_s7 + $0x30] sm:$0x3f]  ;;  %v1072_v12 = vld [vmem:[%s1327_s7 + $0x28] sm:$0x3] }
  0x39   : > { %391 = vrot.lane.b32.xlu1 %v389_v43, %s1251_s19  ;;  %v1010_v43 = vld [vmem:[%s1327_s7 + $0x28] sm:$0x3]  ;;  %v1121_v5 = vld [vmem:[%s1327_s7 + $0x1a] sm:$0x3f]  ;;  %v1158_v25 = vld [vmem:[%s1327_s7 + $0x40] sm:$0x3f] }
  0x3a   : > { %358 = vrot.lane.b32.xlu0 %v356_v44, %s1251_s19  ;;  %v231_v44 = vmul.f32 %v982_v37, %v981_v40  ;;  %v414_v63 = vadd.f32 %v413_v54, %v410_v51  ;;  %v1122_v6 = vld [vmem:[%s1907_s1 + $0x1a] sm:$0x3f]  ;;  %v1073_v14 = vld [vmem:[%s1907_s1 + $0x28] sm:$0x3]  ;;  %v1159_v27 = vld [vmem:[%s1907_s1 + $0x40] sm:$0x3f] }
  0x3b   : > { %v659_v8 = vmul.f32 %v1122_v6, %v1121_v5  ;;  %v523_v18 = vmul.f32 %v1073_v14, %v1072_v12  ;;  %v1132_v20 = vld [vmem:[%s1327_s7 + $0x38] sm:$0x3f]  ;;  %v1141_v23 = vld [vmem:[%s1907_s1 + $0x3e] sm:$0x3]  ;;  %v1168_v28 = vld [vmem:[%s1327_s7 + $0x46] sm:$0x3]  ;;  %v752_v30 = vmul.f32 %v1159_v27, %v1158_v25 }
  0x3c   : > { %1037 = vst.msk [vmem:[%s1475_s20 + $0x18] sm:$0x3] %vm233_vm1, %v414_v63  ;;  %v1169_v29 = vld [vmem:[%s1907_s1 + $0x46] sm:$0x3]  ;;  %v263_v38 = vld [vmem:[%s1907_s1] sm:$0x3f] }
  0x3d   : > { %549 = vrot.lane.b32.xlu1 %v547_v49, %s1250_s8  ;;  %v1011_v49 = vld [vmem:[%s1907_s1 + $0x28] sm:$0x3]  ;;  %v780_v31 = vmul.f32 %v1169_v29, %v1168_v28  ;;  %v1135_v40 = vld [vmem:[%s1327_s7 + $0x36] sm:$0x3]  ;;  %v478_v42 = vld [vmem:[%s1907_s1 + $0x6] sm:$0x3] }
  0x3e   : > { %496 = vrot.lane.b32.xlu0 %v494_v50, %s1250_s8  ;;  %v232_v50 = vadd.f32 %v231_v44, %v226_v39  ;;  %v262_v39 = vld [vmem:[%s1327_s7] sm:$0x3f]  ;;  %v1136_v41 = vld [vmem:[%s1907_s1 + $0x36] sm:$0x3]  ;;  %v295_v5 = vld [vmem:[%s1327_s7 + $0x6] sm:$0x3] }
  0x3f   : > { %v1093_v47 = vld [vmem:[%s1327_s7 + $0xe] sm:$0x3]  ;;  %v264_v48 = vmul.f32 %v263_v38, %v262_v39  ;;  %v1014_v51 = vld [vmem:[%s1907_s1 + $0x8] sm:$0x3f]  ;;  %v1098_v63 = vld [vmem:[%s1907_s1 + $0x20] sm:$0x3] }
  0x40   : > { %234 = vst.msk [vmem:[%s1475_s20 + $0x6] sm:$0x3] %vm233_vm1, %v232_v50  ;;  %v1013_v50 = vld [vmem:[%s1327_s7 + $0x8] sm:$0x3f]  ;;  %v1021_v14 = vld [vmem:[%s1327_s7 + $0xe] sm:$0x3] }
  0x41   : > { %640 = vrot.lane.b32.xlu1 %v638_v55, %s1251_s19  ;;  %v1045_v55 = vld [vmem:[%s1327_s7 + $0x1a] sm:$0x3f]  ;;  %v353_v60 = vmul.f32 %v1014_v51, %v1013_v50  ;;  %v1162_v27 = vld [vmem:[%s1907_s1 + $0x36] sm:$0x3]  ;;  %vm260_vm2 = vcmask 1041456   ;;  %vm222_vm3 = vcmask 1045552  }
  0x42   : > { %603 = vrot.lane.b32.xlu0 %v601_v56, %s1251_s19  ;;  %v1046_v56 = vld [vmem:[%s1907_s1 + $0x1a] sm:$0x3f]  ;;  %vm278_vm4 = vcmask 13312   ;;  %vm293_vm5 = vcmask 1045520   ;;  %vm322_vm6 = vcmask 9216   ;;  %vm349_vm7 = vcmask 1041424  }
  0x43   : > { %v443_v58 = vmul.f32 %v1046_v56, %v1045_v55  ;;  %v1061_v55 = vld [vmem:[%s1327_s7 + $0x18] sm:$0x3] }
  0x44   : > { %v1062_v56 = vld [vmem:[%s1907_s1 + $0x18] sm:$0x3] }
  0x45   : > { %766 = vrot.lane.b32.xlu1 %v764_v61, %s1250_s8  ;;  %v343_v61 = vmul.f32 %v1011_v49, %v1010_v43  ;;  %v477_v43 = vld [vmem:[%s1327_s7 + $0x6] sm:$0x3]  ;;  %v1176_v38 = vld [vmem:[%s1907_s1 + $0x38] sm:$0x3f] }
  0x46   : > { %725 = vrot.lane.b32.xlu0 %v723_v62, %s1250_s8  ;;  %v1042_v62 = vld [vmem:[%s1327_s7 + $0x20] sm:$0x3]  ;;  %v1094_v49 = vld [vmem:[%s1907_s1 + $0xe] sm:$0x3]  ;;  %v479_v52 = vmul.f32 %v478_v42, %v477_v43 }
  0x49   : > { %831 = vrot.lane.b32.xlu1 %v829_v4, %s1251_s19  ;;  %v449_v4 = vadd.f32 %v448_v0, %v443_v58  ;;  %v1143_v58 = vld [vmem:[%s1327_s7 + $0x1a] sm:$0x3f] }
  0x4a   : > { %806 = vrot.lane.b32.xlu0 %v804_v3, %s1251_s19  ;;  %v1057_v3 = vld [vmem:[%s1907_s1 + $0x38] sm:$0x3f] }
  0x4b   : > { %v470_v11 = vmul.f32 %v1057_v3, %v1056_v2  ;;  %1049 = vst.msk [vmem:[%s1475_s20 + $0x1a] sm:$0x3f] %vm207_vm0, %v449_v4  ;;  %v296_v4 = vld [vmem:[%s1907_s1 + $0x6] sm:$0x3] }
  0x4d   : > { %331 = vrot.lane.b32.xlu1 %v329_v10, %s1251_s19  ;;  %v434_v10 = vmul.f32 %v1043_v1, %v1042_v62  ;;  %v1097_v62 = vld [vmem:[%s1327_s7 + $0x20] sm:$0x3]  ;;  %v490_v1 = vmul.f32 %v1062_v56, %v1061_v55 }
  0x4e   : > { %242 = vrot.lane.b32.xlu0 %v240_v9, %s1250_s8  ;;  %v1124_v9 = vld [vmem:[%s1907_s1 + $0x30] sm:$0x3f] }
  0x4f   : > { %v662_v13 = vmul.f32 %v1124_v9, %v1123_v7  ;;  %v597_v9 = vmul.f32 %v1098_v63, %v1097_v62 }
  0x51   : > { %458 = vrot.lane.b32.xlu1 %v456_v16, %s1250_s8  ;;  %v1091_v16 = vld [vmem:[%s1907_s1 + $0x40] sm:$0x3f]  ;;  %v663_v17 = vadd.f32 %v662_v13, %v659_v8  ;;  %v297_v13 = vmul.f32 %v296_v4, %v295_v5 }
  0x52   : > { %424 = vrot.lane.b32.xlu0 %v422_v15, %s1250_s8  ;;  %v1090_v15 = vld [vmem:[%s1327_s7 + $0x40] sm:$0x3f] }
  0x53   : > { %v577_v19 = vmul.f32 %v1091_v16, %v1090_v15  ;;  %1125 = vst.msk [vmem:[%s1475_s20 + $0x30] sm:$0x3f] %vm207_vm0, %v663_v17  ;;  %v1171_v15 = vld [vmem:[%s1327_s7 + $0x22] sm:$0x3f] }
  0x54   : > { %v1172_v16 = vld [vmem:[%s1907_s1 + $0x22] sm:$0x3f] }
  0x55   : > { %565 = vrot.lane.b32.xlu1 %v563_v22, %s1251_s19  ;;  %v1140_v22 = vld [vmem:[%s1327_s7 + $0x3e] sm:$0x3]  ;;  %v789_v28 = vmul.f32 %v1172_v16, %v1171_v15 }
  0x56   : > { %513 = vrot.lane.b32.xlu0 %v511_v21, %s1251_s19  ;;  %v1133_v21 = vld [vmem:[%s1907_s1 + $0x38] sm:$0x3f]  ;;  %v699_v26 = vmul.f32 %v1141_v23, %v1140_v22  ;;  %v1186_v15 = vld [vmem:[%s1907_s1 + $0x3e] sm:$0x3] }
  0x57   : > { %v683_v24 = vmul.f32 %v1133_v21, %v1132_v20  ;;  %v1000_v21 = vld [vmem:[%s1907_s1 + $0x18] sm:$0x3] }
  0x58   : > { %v999_v22 = vld [vmem:[%s1327_s7 + $0x18] sm:$0x3] }
  0x59   : > { %742 = vrot.lane.b32.xlu1 %v740_v33, %s1251_s19 }
  0x5a   : > { %673 = vrot.lane.b32.xlu0 %v671_v32, %s1250_s8 }
  0x5d   : > { %256 = vrot.lane.b32.xlu1 %v254_v46, %s1250_s8  ;;  %v692_v46 = vmul.f32 %v1136_v41, %v1135_v40  ;;  %v1025_v40 = vld [vmem:[%s1327_s7 + $0x20] sm:$0x3] }
  0x5e   : > { %218 = vrot.lane.b32.xlu0 %v216_v45, %s1250_s8  ;;  %v1026_v41 = vld [vmem:[%s1907_s1 + $0x20] sm:$0x3] }
  0x5f   : > { %1137 = vst.msk [vmem:[%s1475_s20 + $0x36] sm:$0x3] %vm233_vm1, %v692_v46 }
  0x61   : > { %345 = vrot.lane.b32.xlu1 %v343_v61, %s1251_s19  ;;  %v1144_v61 = vld [vmem:[%s1907_s1 + $0x1a] sm:$0x3f] }
  0x62   : > { %289 = vrot.lane.b32.xlu0 %v287_v57, %s1251_s19  ;;  %v586_v57 = vmul.f32 %v1094_v49, %v1093_v47  ;;  %v708_v7 = vmul.f32 %v1144_v61, %v1143_v58  ;;  %v385_v49 = vmul.f32 %v1026_v41, %v1025_v40  ;;  %v1107_v58 = vld [vmem:[%s1327_s7 + $0x22] sm:$0x3f]  ;;  %v1051_v40 = vld [vmem:[%s1907_s1 + $0x1a] sm:$0x3f] }
  0x63   : > { %v210_v41 = vld [vmem:[%s1907_s1] sm:$0x3f] }
  0x65   : > { %472 = vrot.lane.b32.xlu1 %v470_v11, %s1250_s8  ;;  %v1148_v11 = vld [vmem:[%s1907_s1 + $0x30] sm:$0x3f] }
  0x66   : > { %436 = vrot.lane.b32.xlu0 %v434_v10, %s1250_s8  ;;  %v1147_v10 = vld [vmem:[%s1327_s7 + $0x30] sm:$0x3f] }
  0x67   : > { %v719_v25 = vmul.f32 %v1148_v11, %v1147_v10  ;;  %v235_v10 = vld [vmem:[%s1327_s7 + $0x6] sm:$0x3] }
  0x69   : > { %579 = vrot.lane.b32.xlu1 %v577_v19, %s1251_s19  ;;  %v1022_v19 = vld [vmem:[%s1907_s1 + $0xe] sm:$0x3] }
  0x6a   : > { %525 = vrot.lane.b32.xlu0 %v523_v18, %s1251_s19  ;;  %v374_v29 = vmul.f32 %v1022_v19, %v1021_v14  ;;  %v1185_v14 = vld [vmem:[%s1327_s7 + $0x3e] sm:$0x3] }
  0x6d   : > { %701 = vrot.lane.b32.xlu1 %v699_v26, %s1250_s8  ;;  %v1161_v26 = vld [vmem:[%s1327_s7 + $0x36] sm:$0x3] }
  0x6e   : > { %685 = vrot.lane.b32.xlu0 %v683_v24, %s1250_s8  ;;  %s1253_s8 = smov 126   ;;  %v761_v43 = vmul.f32 %v1162_v27, %v1161_v26  ;;  %v418_v26 = vld [vmem:[%s1907_s1 + $0x6] sm:$0x3] }
  0x71   : > { %782 = vrot.lane.b32.xlu1 %v780_v31, %s1251_s19 }
  0x72   : > { %754 = vrot.lane.b32.xlu0 %v752_v30, %s1251_s19  ;;  %v308_v30 = vmul.f32 %v1000_v21, %v999_v22  ;;  %v986_v21 = vld [vmem:[%s1907_s1 + $0x18] sm:$0x3] }
  0x73   : > { %v985_v22 = vld [vmem:[%s1327_s7 + $0x18] sm:$0x3] }
  0x97   : > { %v485_v32 = vpop.permute.xlu1 %484 }
  0x98   : > { %v1566_v33 = vpop.permute.xlu0 %302  ;;  %v487_v0 = vadd.f32 %v485_v32, %v479_v52 }
  0x99   : > { %v305_v39 = vadd.f32 %v1566_v33, %v297_v13  ;;  %v1076_v33 = vld [vmem:[%s1907_s1 + $0x1a] sm:$0x3f] }
  0x9a   : > { %v491_v12 = vadd.f32 %v490_v1, %v487_v0 }
  0x9b   : > { %v1568_v34 = vpop.permute.xlu1 %537 }
  0x9c   : > { %v1570_v35 = vpop.permute.xlu0 %379 }
  0x9d   : > { %v382_v52 = vadd.f32 %v1570_v35, %v374_v29  ;;  %v1080_v35 = vld [vmem:[%s1907_s1 + $0x30] sm:$0x3f] }
  0x9f   : > { %v1572_v36 = vpop.permute.xlu1 %628  ;;  %v386_v0 = vadd.f32 %v385_v49, %v382_v52 }
  0xa0   : > { %v592_v37 = vpop.permute.xlu0 %591 }
  0xa1   : > { %v594_v6 = vadd.f32 %v592_v37, %v586_v57  ;;  %v1175_v37 = vld [vmem:[%s1327_s7 + $0x38] sm:$0x3f] }
  0xa2   : > { %v800_v47 = vmul.f32 %v1176_v38, %v1175_v37  ;;  %v248_v37 = vmul.f32 %v986_v21, %v985_v22  ;;  %v1008_v38 = vld [vmem:[%s1327_s7 + $0x20] sm:$0x3] }
  0xa3   : > { %v1586_v44 = vpop.permute.xlu1 %794  ;;  %v598_v24 = vadd.f32 %v597_v9, %v594_v6  ;;  %v1111_v6 = vld [vmem:[%s1327_s7 + $0x38] sm:$0x3f] }
  0xa4   : > { %v714_v45 = vpop.permute.xlu0 %713  ;;  %v797_v46 = vadd.f32 %v1586_v44, %v789_v28 }
  0xa5   : > { %v716_v20 = vadd.f32 %v714_v45, %v708_v7  ;;  %v1112_v7 = vld [vmem:[%s1907_s1 + $0x38] sm:$0x3f] }
  0xa6   : > { %v801_v44 = vadd.f32 %v800_v47, %v797_v46  ;;  %v634_v13 = vmul.f32 %v1112_v7, %v1111_v6  ;;  %v1084_v47 = vld [vmem:[%s1327_s7 + $0x22] sm:$0x3f] }
  0xa7   : > { %v1598_v53 = vpop.permute.xlu1 %314  ;;  %v720_v45 = vadd.f32 %v719_v25, %v716_v20  ;;  %v1004_v20 = vld [vmem:[%s1327_s7 + $0xe] sm:$0x3] }
  0xa8   : > { %v270_v54 = vpop.permute.xlu0 %269 }
  0xa9   : > { %v272_v59 = vadd.f32 %v270_v54, %v264_v48  ;;  %v1075_v48 = vld [vmem:[%s1327_s7 + $0x1a] sm:$0x3f]  ;;  %v309_v54 = vadd.f32 %v308_v30, %v305_v39  ;;  %v1009_v39 = vld [vmem:[%s1907_s1 + $0x20] sm:$0x3] }
  0xaa   : > { %v532_v57 = vmul.f32 %v1076_v33, %v1075_v48  ;;  %v1085_v48 = vld [vmem:[%s1907_s1 + $0x22] sm:$0x3f] }
  0xab   : > { %274 = vrot.lane.b32.xlu0 %v272_v59, %s1252_s3  ;;  %v1613_v2 = vpop.permute.xlu1 %391  ;;  %v1108_v59 = vld [vmem:[%s1907_s1 + $0x22] sm:$0x3f]  ;;  %v317_v63 = vadd.f32 %v1598_v53, %v309_v54 }
  0xac   : > { %v359_v3 = vpop.permute.xlu0 %358  ;;  %v623_v4 = vmul.f32 %v1108_v59, %v1107_v58  ;;  %v394_v53 = vadd.f32 %v1613_v2, %v386_v0  ;;  %v1054_v58 = vld [vmem:[%s1327_s7 + $0x30] sm:$0x3f] }
  0xad   : > { %v361_v8 = vadd.f32 %v359_v3, %v353_v60  ;;  %v1079_v60 = vld [vmem:[%s1327_s7 + $0x30] sm:$0x3f]  ;;  %v540_v3 = vadd.f32 %v1568_v34, %v532_v57  ;;  %v236_v34 = vld [vmem:[%s1907_s1 + $0x6] sm:$0x3] }
  0xae   : > { %v543_v5 = vmul.f32 %v1080_v35, %v1079_v60  ;;  %v631_v11 = vadd.f32 %v1572_v36, %v623_v4  ;;  %v237_v19 = vmul.f32 %v236_v34, %v235_v10  ;;  %v1005_v36 = vld [vmem:[%s1907_s1 + $0xe] sm:$0x3]  ;;  %v1041_v57 = vld [vmem:[%s1907_s1 + $0x18] sm:$0x3]  ;;  %v560_v60 = vmul.f32 %v1085_v48, %v1084_v47  ;;  %v1126_v35 = vld [vmem:[%s1327_s7 + $0x1a] sm:$0x3f] }
  0xaf   : > { %363 = vrot.lane.b32.xlu0 %v361_v8, %s1253_s8  ;;  %v1629_v17 = vpop.permute.xlu1 %549  ;;  %v326_v25 = vmul.f32 %v1005_v36, %v1004_v20  ;;  %v1070_v4 = vld [vmem:[%s1327_s7 + $0x20] sm:$0x3]  ;;  %v1089_v34 = vld [vmem:[%s1907_s1 + $0x38] sm:$0x3f]  ;;  %v1131_v36 = vld [vmem:[%s1907_s1 + $0x30] sm:$0x3f] }
  0xb0   : > { %v497_v18 = vpop.permute.xlu0 %496  ;;  %v1130_v20 = vld [vmem:[%s1327_s7 + $0x30] sm:$0x3f] }
  0xb1   : > { %v499_v23 = vadd.f32 %v497_v18, %v491_v12  ;;  %v544_v12 = vadd.f32 %v543_v5, %v540_v3 }
  0xb3   : > { %501 = vrot.lane.b32.xlu0 %v499_v23, %s1252_s3  ;;  %v1643_v31 = vpop.permute.xlu1 %640  ;;  %v552_v18 = vadd.f32 %v1629_v17, %v544_v12  ;;  %v635_v23 = vadd.f32 %v634_v13, %v631_v11  ;;  %v417_v17 = vld [vmem:[%s1327_s7 + $0x6] sm:$0x3] }
  0xb4   : > { %v604_v32 = vpop.permute.xlu0 %603  ;;  %v419_v52 = vmul.f32 %v418_v26, %v417_v17 }
  0xb5   : > { %v606_v42 = vadd.f32 %v604_v32, %v598_v24  ;;  %v826_v24 = vmul.f32 %v1186_v15, %v1185_v14  ;;  %v643_v29 = vadd.f32 %v1643_v31, %v635_v23  ;;  %v1050_v32 = vld [vmem:[%s1327_s7 + $0x1a] sm:$0x3f] }
  0xb6   : > { %v453_v54 = vmul.f32 %v1051_v40, %v1050_v32 }
  0xb7   : > { %608 = vrot.lane.b32.xlu0 %v606_v42, %s1253_s8  ;;  %v767_v50 = vpop.permute.xlu1 %766  ;;  %v209_v42 = vld [vmem:[%s1327_s7] sm:$0x3f] }
  0xb8   : > { %v726_v51 = vpop.permute.xlu0 %725  ;;  %v769_v55 = vadd.f32 %v767_v50, %v761_v43  ;;  %v1066_v43 = vld [vmem:[%s1327_s7 + $0xe] sm:$0x3]  ;;  %v337_v50 = vmul.f32 %v1009_v39, %v1008_v38 }
  0xb9   : > { %v728_v56 = vadd.f32 %v726_v51, %v720_v45  ;;  %v1067_v45 = vld [vmem:[%s1907_s1 + $0xe] sm:$0x3]  ;;  %v1040_v51 = vld [vmem:[%s1327_s7 + $0x18] sm:$0x3] }
  0xba   : > { %771 = vrot.lane.b32.xlu1 %v769_v55, %s1252_s3  ;;  %v211_v55 = vmul.f32 %v210_v41, %v209_v42  ;;  %v508_v59 = vmul.f32 %v1067_v45, %v1066_v43  ;;  %v992_v45 = vld [vmem:[%s1327_s7 + $0x8] sm:$0x3f] }
  0xbb   : > { %730 = vrot.lane.b32.xlu0 %v728_v56, %s1252_s3  ;;  %v832_v62 = vpop.permute.xlu1 %831 }
  0xbc   : > { %v807_v61 = vpop.permute.xlu0 %806  ;;  %v834_v31 = vadd.f32 %v832_v62, %v826_v24  ;;  %v679_v24 = vmul.f32 %v1131_v36, %v1130_v20 }
  0xbd   : > { %v809_v1 = vadd.f32 %v807_v61, %v801_v44  ;;  %v1055_v44 = vld [vmem:[%s1907_s1 + $0x30] sm:$0x3f]  ;;  %v1127_v61 = vld [vmem:[%s1907_s1 + $0x1a] sm:$0x3f] }
  0xbe   : > { %319 = vrot.lane.b32.xlu1 %v317_v63, %s1252_s3  ;;  %v464_v3 = vmul.f32 %v1055_v44, %v1054_v58  ;;  %v668_v11 = vmul.f32 %v1127_v61, %v1126_v35  ;;  %v1103_v58 = vld [vmem:[%s1907_s1 + $0x16] sm:$0x3]  ;;  %v1104_v44 = vld [vmem:[%s1327_s7 + $0x28] sm:$0x3]  ;;  %v1156_v61 = vld [vmem:[%s1327_s7 + $0x38] sm:$0x3f] }
  0xbf   : > { %811 = vrot.lane.b32.xlu0 %v809_v1, %s1253_s8  ;;  %v332_v9 = vpop.permute.xlu1 %331  ;;  %v430_v1 = vmul.f32 %v1041_v57, %v1040_v51  ;;  %v1102_v57 = vld [vmem:[%s1327_s7 + $0x16] sm:$0x3] }
  0xc0   : > { %v243_v8 = vpop.permute.xlu0 %242  ;;  %v334_v46 = vadd.f32 %v332_v9, %v326_v25  ;;  %v1071_v9 = vld [vmem:[%s1907_s1 + $0x20] sm:$0x3] }
  0xc1   : > { %v245_v30 = vadd.f32 %v243_v8, %v237_v19  ;;  %v519_v14 = vmul.f32 %v1071_v9, %v1070_v4  ;;  %v1180_v9 = vld [vmem:[%s1327_s7 + $0x2a] sm:$0x3f] }
  0xc2   : > { %396 = vrot.lane.b32.xlu1 %v394_v53, %s1253_s8  ;;  %v338_v0 = vadd.f32 %v337_v50, %v334_v46  ;;  %v1088_v53 = vld [vmem:[%s1327_s7 + $0x38] sm:$0x3f]  ;;  %v993_v46 = vld [vmem:[%s1907_s1 + $0x8] sm:$0x3f]  ;;  %v1019_v50 = vld [vmem:[%s1907_s1 + $0x10] sm:$0x3f] }
  0xc3   : > { %v459_v2 = vpop.permute.xlu1 %458  ;;  %v249_v56 = vadd.f32 %v248_v37, %v245_v30  ;;  %v571_v15 = vmul.f32 %v1089_v34, %v1088_v53  ;;  %v282_v47 = vmul.f32 %v993_v46, %v992_v45  ;;  %v1182_v53 = vld [vmem:[%s1327_s7 + $0x40] sm:$0x3f] }
  0xc4   : > { %v425_v16 = vpop.permute.xlu0 %424  ;;  %v461_v6 = vadd.f32 %v459_v2, %v453_v54  ;;  %v1152_v54 = vld [vmem:[%s1327_s7 + $0x22] sm:$0x3f] }
  0xc5   : > { %v427_v5 = vadd.f32 %v425_v16, %v419_v52  ;;  %v1183_v34 = vld [vmem:[%s1907_s1 + $0x40] sm:$0x3f] }
  0xc6   : > { %554 = vrot.lane.b32.xlu1 %v552_v18, %s1252_s3  ;;  %v465_v19 = vadd.f32 %v464_v3, %v461_v6  ;;  %v1167_v6 = vld [vmem:[%s1907_s1 + $0x3e] sm:$0x3] }
  0xc7   : > { %v566_v28 = vpop.permute.xlu1 %565  ;;  %v431_v18 = vadd.f32 %v430_v1, %v427_v5  ;;  %v1166_v5 = vld [vmem:[%s1327_s7 + $0x3e] sm:$0x3] }
  0xc8   : > { %v514_v27 = vpop.permute.xlu0 %513  ;;  %v568_v16 = vadd.f32 %v566_v28, %v560_v60  ;;  %v1138_v28 = vld [vmem:[%s1327_s7 + $0x36] sm:$0x3] }
  0xc9   : > { %v516_v10 = vadd.f32 %v514_v27, %v508_v59  ;;  %v1105_v59 = vld [vmem:[%s1907_s1 + $0x28] sm:$0x3] }
  0xca   : > { %645 = vrot.lane.b32.xlu1 %v643_v29, %s1253_s8  ;;  %v572_v27 = vadd.f32 %v571_v15, %v568_v16  ;;  %v1139_v29 = vld [vmem:[%s1907_s1 + $0x36] sm:$0x3] }
  0xcb   : > { %v1726_v49 = vpop.permute.xlu1 %742  ;;  %v520_v23 = vadd.f32 %v519_v14, %v516_v10  ;;  %v696_v40 = vmul.f32 %v1139_v29, %v1138_v28  ;;  %v821_v14 = vmul.f32 %v1183_v34, %v1182_v53  ;;  %v1030_v15 = vld [vmem:[%s1327_s7 + $0x16] sm:$0x3]  ;;  %v1116_v28 = vld [vmem:[%s1327_s7 + $0x2a] sm:$0x3f] }
  0xcc   : > { %v674_v33 = vpop.permute.xlu0 %673  ;;  %v1031_v16 = vld [vmem:[%s1907_s1 + $0x16] sm:$0x3]  ;;  %v1117_v29 = vld [vmem:[%s1907_s1 + $0x2a] sm:$0x3f] }
  0xcd   : > { %v676_v25 = vadd.f32 %v674_v33, %v668_v11  ;;  %v1018_v33 = vld [vmem:[%s1327_s7 + $0x10] sm:$0x3f]  ;;  %v777_v11 = vmul.f32 %v1167_v6, %v1166_v5 }
  0xce   : > { %836 = vrot.lane.b32.xlu1 %v834_v31, %s1253_s8 }
  0xcf   : > { %v257_v63 = vpop.permute.xlu1 %256  ;;  %v680_v39 = vadd.f32 %v679_v24, %v676_v25  ;;  %v402_v24 = vmul.f32 %v1031_v16, %v1030_v15 }
  0xd0   : > { %v219_v62 = vpop.permute.xlu0 %218  ;;  %v259_v8 = vadd.f32 %v257_v63, %v249_v56  ;;  %v370_v56 = vmul.f32 %v1019_v50, %v1018_v33  ;;  %v615_v63 = vmul.f32 %v1103_v58, %v1102_v57 }
  0xd1   : > { %v221_v7 = vadd.f32 %v219_v62, %v211_v55  ;;  %v1153_v55 = vld [vmem:[%s1907_s1 + $0x22] sm:$0x3f]  ;;  %v1157_v62 = vld [vmem:[%s1907_s1 + $0x38] sm:$0x3f] }
  0xd2   : > { %261 = vst.msk [vmem:[%s1475_s20 + $0x6] sm:$0x3] %vm260_vm2, %v259_v8  ;;  %v737_v60 = vmul.f32 %v1153_v55, %v1152_v54  ;;  %v748_v3 = vmul.f32 %v1157_v62, %v1156_v61 }
  0xd3   : > { %223 = vst.msk [vmem:[%s1475_s20] sm:$0x3f] %vm222_vm3, %v221_v7  ;;  %v346_v13 = vpop.permute.xlu1 %345 }
  0xd4   : > { %v290_v12 = vpop.permute.xlu0 %289  ;;  %v1753_v2 = vadd.f32 %v346_v13, %v338_v0  ;;  %v618_v0 = vmul.f32 %v1105_v59, %v1104_v44  ;;  %v745_v1 = vadd.f32 %v1726_v49, %v737_v60  ;;  %v1181_v49 = vld [vmem:[%s1907_s1 + $0x2a] sm:$0x3f] }
  0xd5   : > { %v292_v51 = vadd.f32 %v290_v12, %v282_v47  ;;  %v818_v13 = vmul.f32 %v1181_v49, %v1180_v9 }
  0xd6   : > { %v619_v8 = vadd.f32 %v618_v0, %v615_v63  ;;  %v749_v10 = vadd.f32 %v748_v3, %v745_v1 }
  0xd7   : > { %v473_v22 = vpop.permute.xlu1 %472 }
  0xd8   : > { %v437_v21 = vpop.permute.xlu0 %436  ;;  %v475_v26 = vadd.f32 %v473_v22, %v465_v19  ;;  %v1033_v19 = vld [vmem:[%s1907_s1 + $0x28] sm:$0x3] }
  0xd9   : > { %v439_v17 = vadd.f32 %v437_v21, %v431_v18  ;;  %v1032_v18 = vld [vmem:[%s1327_s7 + $0x28] sm:$0x3] }
  0xda   : > { %1058 = vst.msk [vmem:[%s1475_s20 + $0x1a] sm:$0x3f] %vm222_vm3, %v475_v26  ;;  %v405_v25 = vmul.f32 %v1033_v19, %v1032_v18 }
  0xdb   : > { %1044 = vst.msk [vmem:[%s1475_s20 + $0x18] sm:$0x3] %vm260_vm2, %v439_v17  ;;  %v580_v32 = vpop.permute.xlu1 %579 }
  0xdc   : > { %v526_v30 = vpop.permute.xlu0 %525  ;;  %v1767_v38 = vadd.f32 %v580_v32, %v572_v27  ;;  %v406_v27 = vadd.f32 %v405_v25, %v402_v24  ;;  %v1119_v32 = vld [vmem:[%s1907_s1 + $0x40] sm:$0x3f] }
  0xdd   : > { %v528_v37 = vadd.f32 %v526_v30, %v520_v23  ;;  %v822_v23 = vadd.f32 %v821_v14, %v818_v13  ;;  %v1118_v30 = vld [vmem:[%s1327_s7 + $0x40] sm:$0x3f] }
  0xdf   : > { %v702_v42 = vpop.permute.xlu1 %701 }
  0xe0   : > { %v686_v41 = vpop.permute.xlu0 %685  ;;  %v704_v43 = vadd.f32 %v702_v42, %v696_v40  ;;  %v1190_v42 = vld [vmem:[%s1327_s7 + $0x46] sm:$0x3]  ;;  %s1193_s7 = sshll.u32 (%p1299_p5), %s973_s12, 3 }
  0xe1   : > { %v688_v31 = vadd.f32 %v686_v41, %v680_v39  ;;  %v654_v39 = vmul.f32 %v1119_v32, %v1118_v30  ;;  %s852_s17 = scalar_lea.vmem (%p1299_p5), %s1908_s2, %s1193_s7 }
  0xe2   : > { %1142 = vst.msk [vmem:[%s1475_s20 + $0x36] sm:$0x3] %vm260_vm2, %v704_v43  ;;  %v902_v33 = vld [vmem:[%s1475_s20 + $0x18] sm:$0xff] (%p1299_p5) }
  0xe3   : > { %1134 = vst.msk [vmem:[%s1475_s20 + $0x30] sm:$0x3f] %vm222_vm3, %v688_v31  ;;  %v783_v7 = vpop.permute.xlu1 %782  ;;  %v1191_v31 = vld [vmem:[%s1907_s1 + $0x46] sm:$0x3]  ;;  %903 = vst [vmem:[%s852_s17 + $0x48] sm:$0xff] (%p1299_p5), %v902_v33 }
  0xe4   : > { %v755_v48 = vpop.permute.xlu0 %754  ;;  %v785_v36 = vadd.f32 %v783_v7, %v777_v11  ;;  %v842_v45 = vmul.f32 %v1191_v31, %v1190_v42 }
  0xe5   : > { %v757_v20 = vadd.f32 %v755_v48, %v749_v10 }
 0x11d   : > { %v275_v52 = vpop.permute.xlu0 %274 }
 0x11e   : > { %991 = vst.msk [vmem:[%s1475_s20 + $0x8] sm:$0x3f] %vm278_vm4, %v275_v52  ;;  %v908_v52 = vld [vmem:[%s1475_s20 + $0x30] sm:$0xff] (%p1299_p5) }
 0x11f   : > { %996 = vst.msk [vmem:[%s1475_s20 + $0x8] sm:$0x3f] %vm293_vm5, %v292_v51  ;;  %909 = vst [vmem:[%s852_s17 + $0x90] sm:$0xff] (%p1299_p5), %v908_v52 }
 0x121   : > { %v364_v35 = vpop.permute.xlu0 %363 }
 0x122   : > { %1017 = vst.msk [vmem:[%s1475_s20 + $0x10] sm:$0x3f] %vm207_vm0, %v364_v35 }
 0x123   : > { %1020 = vst.msk [vmem:[%s1475_s20 + $0x10] sm:$0x3f] %vm222_vm3, %v370_v56 }
 0x125   : > { %v502_v4 = vpop.permute.xlu0 %501 }
 0x126   : > { %1065 = vst.msk [vmem:[%s1475_s20 + $0x20] sm:$0x3] %vm322_vm6, %v502_v4 }
 0x127   : > { %1074 = vst.msk [vmem:[%s1475_s20 + $0x20] sm:$0x3] %vm349_vm7, %v528_v37 }
 0x129   : > { %v609_v12 = vpop.permute.xlu0 %608 }
 0x12a   : > { %1101 = vst.msk [vmem:[%s1475_s20 + $0x28] sm:$0x3] %vm233_vm1, %v609_v12 }
 0x12b   : > { %1106 = vst.msk [vmem:[%s1475_s20 + $0x28] sm:$0x3] %vm260_vm2, %v619_v8 }
 0x12c   : > { %v772_v21 = vpop.permute.xlu1 %771 }
 0x12d   : > { %v731_v22 = vpop.permute.xlu0 %730  ;;  %1165 = vst.msk [vmem:[%s1475_s20 + $0x3e] sm:$0x3] %vm322_vm6, %v772_v21 }
 0x12e   : > { %1151 = vst.msk [vmem:[%s1475_s20 + $0x38] sm:$0x3f] %vm278_vm4, %v731_v22 }
 0x12f   : > { %1170 = vst.msk [vmem:[%s1475_s20 + $0x3e] sm:$0x3] %vm349_vm7, %v785_v36 }
 0x130   : > { %1160 = vst.msk [vmem:[%s1475_s20 + $0x38] sm:$0x3f] %vm293_vm5, %v757_v20  ;;  %v320_v17 = vpop.permute.xlu1 %319 }
 0x131   : > { %v812_v26 = vpop.permute.xlu0 %811  ;;  %1003 = vst.msk [vmem:[%s1475_s20 + $0xe] sm:$0x3] %vm322_vm6, %v320_v17 }
 0x132   : > { %1179 = vst.msk [vmem:[%s1475_s20 + $0x40] sm:$0x3f] %vm207_vm0, %v812_v26 }
 0x133   : > { %1012 = vst.msk [vmem:[%s1475_s20 + $0xe] sm:$0x3] %vm349_vm7, %v1753_v2  ;;  %v651_v2 = vmul.f32 %v1117_v29, %v1116_v28 }
 0x134   : > { %1184 = vst.msk [vmem:[%s1475_s20 + $0x40] sm:$0x3f] %vm222_vm3, %v822_v23  ;;  %v397_v37 = vpop.permute.xlu1 %396 }
 0x135   : > { %1029 = vst.msk [vmem:[%s1475_s20 + $0x16] sm:$0x3] %vm233_vm1, %v397_v37  ;;  %v655_v41 = vadd.f32 %v654_v39, %v651_v2 }
 0x136   : > { %1034 = vst.msk [vmem:[%s1475_s20 + $0x16] sm:$0x3] %vm260_vm2, %v406_v27 }
 0x137   : > { %v910_v54 = vld [vmem:[%s1475_s20 + $0x38] sm:$0xff] (%p1299_p5) }
 0x138   : > { %v555_v40 = vpop.permute.xlu1 %554  ;;  %911 = vst [vmem:[%s852_s17 + $0xa8] sm:$0xff] (%p1299_p5), %v910_v54 }
 0x139   : > { %1083 = vst.msk [vmem:[%s1475_s20 + $0x22] sm:$0x3f] %vm278_vm4, %v555_v40 }
 0x13a   : > { %1092 = vst.msk [vmem:[%s1475_s20 + $0x22] sm:$0x3f] %vm293_vm5, %v1767_v38  ;;  %v896_v38 = vld [vmem:[%s1475_s20] sm:$0xff] (%p1299_p5)  ;;  %v898_v47 = vld [vmem:[%s1475_s20 + $0x8] sm:$0xff] (%p1299_p5) }
 0x13b   : > { %897 = vst [vmem:[%s852_s17] sm:$0xff] (%p1299_p5), %v896_v38  ;;  %899 = vst [vmem:[%s852_s17 + $0x18] sm:$0xff] (%p1299_p5), %v898_v47 }
 0x13c   : > { %v646_v43 = vpop.permute.xlu1 %645  ;;  %850 = sbr.rel (!%p1299_p5) target bundleno = 331 (0x14b), region = 70 }
 0x13d   : > { %1115 = vst.msk [vmem:[%s1475_s20 + $0x2a] sm:$0x3f] %vm207_vm0, %v646_v43  ;;  %v900_v48 = vld [vmem:[%s1475_s20 + $0x10] sm:$0xff] (%p1299_p5) }
 0x13e   : > { %1120 = vst.msk [vmem:[%s1475_s20 + $0x2a] sm:$0x3f] %vm222_vm3, %v655_v41  ;;  %901 = vst [vmem:[%s852_s17 + $0x30] sm:$0xff] (%p1299_p5), %v900_v48 }
 0x140   : > { %v837_v46 = vpop.permute.xlu1 %836 }
 0x141   : > { %1189 = vst.msk [vmem:[%s1475_s20 + $0x46] sm:$0x3] %vm233_vm1, %v837_v46  ;;  %v904_v50 = vld [vmem:[%s1475_s20 + $0x20] sm:$0xff] (%p1299_p5) }
 0x142   : > { %1192 = vst.msk [vmem:[%s1475_s20 + $0x46] sm:$0x3] %vm260_vm2, %v842_v45  ;;  %905 = vst [vmem:[%s852_s17 + $0x60] sm:$0xff] (%p1299_p5), %v904_v50 }
 0x145   : > { %v906_v51 = vld [vmem:[%s1475_s20 + $0x28] sm:$0xff] }
 0x146   : > { %907 = vst [vmem:[%s852_s17 + $0x78] sm:$0xff] %v906_v51 }
 0x149   : > { %v912_v55 = vld [vmem:[%s1475_s20 + $0x40] sm:$0xff] }
 0x14a   : > { %913 = vst [vmem:[%s852_s17 + $0xc0] sm:$0xff] %v912_v55 }
 0x14b PF: > { %p9_p10 = scmp.ge.s32.totalorder %s1286_s13, 5   ;;  %s1910_s9 = smov %s1244_s10 }
 0x14c   : > { %s1911_s10 = smov %s1297_s16  ;;  %s1912_s11 = smov %s1286_s13 }
 0x14d   :  { %11 = sbr.rel (!%p9_p10) target bundleno = 2 (0x2), region = 163 }

</bundles_post_ra>
